<compile_context>
chip_gen: v7x
topology: tpu7x:2x2x1
jax: 0.10.0
libtpu: 0.0.40
codegen_flags: <defaults>
</compile_context>

<pallas_src>
import jax
import jax.numpy as jnp
from jax.experimental import pallas as pl
from jax.experimental.pallas import tpu as pltpu


def _classifier_kernel(x_ref, w1_ref, b1_ref, w2_ref, b2_ref, w3_ref, b3_ref,
                       o_ref):
    # fc1: Linear + ReLU (Dropout == identity in eval mode).
    # bf16 operands, f32 accumulation on the MXU; bias/ReLU in f32.
    h1 = jnp.dot(x_ref[...], w1_ref[...], preferred_element_type=jnp.float32)
    h1 = jnp.maximum(h1 + b1_ref[...], 0.0)
    h1 = h1.astype(w2_ref.dtype)

    # fc2: Linear + ReLU (Dropout == identity in eval mode)
    h2 = jnp.dot(h1, w2_ref[...], preferred_element_type=jnp.float32)
    h2 = jnp.maximum(h2 + b2_ref[...], 0.0)
    h2 = h2.astype(w3_ref.dtype)

    # fc3: Linear (no activation); output columns are lane-padded to 128.
    out = jnp.dot(h2, w3_ref[...], preferred_element_type=jnp.float32)
    o_ref[...] = (out + b3_ref[...]).astype(o_ref.dtype)


def _round_up(x, m):
    return ((x + m - 1) // m) * m


def _pick_block_b(B):
    """Batch tile: MXU-friendly height, >= 2 grid steps when batch allows."""
    if B <= 16:
        return _round_up(B, 8)                       # single full tile
    if B >= 512:
        return 256                                   # full MXU tile height
    # multiple of 16 (native bf16 sublane tile), ~half the batch => >=2 steps
    return min(256, _round_up(pl.cdiv(B, 2), 16))


def classifier_forward(x, params, *, block_b=None, compute_dtype=jnp.bfloat16):
    """x: (B, input_channel) float32. Returns (B, num_classes) float32."""
    w1, b1, w2, b2, w3, b3 = (params[k] for k in
                              ("w1", "b1", "w2", "b2", "w3", "b3"))
    B, IN = x.shape
    H1 = w1.shape[1]       # 512
    H2 = w2.shape[1]       # 128
    C = w3.shape[1]        # num_classes

    # Lane-dense fc3 / output: pad classes to a multiple of 128.
    C_pad = _round_up(C, 128)
    if C_pad != C:
        w3 = jnp.pad(w3, ((0, 0), (0, C_pad - C)))
        b3 = jnp.pad(b3, ((0, 0), (0, C_pad - C)))

    # Batch tiling (no divisibility requirement on the caller's batch).
    if block_b is None:
        block_b = _pick_block_b(B)
    B_pad = _round_up(B, block_b)
    x_p = x if B_pad == B else jnp.pad(x, ((0, B_pad - B), (0, 0)))

    # Cast the HBM-dominant operands to bf16; biases stay f32.
    xc = x_p.astype(compute_dtype)
    w1c = w1.astype(compute_dtype)
    w2c = w2.astype(compute_dtype)
    w3c = w3.astype(compute_dtype)
    b1f = b1.astype(jnp.float32)
    b2f = b2.astype(jnp.float32)
    b3f = b3.astype(jnp.float32)

    n_steps = B_pad // block_b
    grid = (n_steps,)

    def build_specs(use_pipeline_hints):
        def invariant(shape):
            if use_pipeline_hints:
                # Grid-invariant operand: one resident copy is enough.
                return pl.BlockSpec(shape, lambda i: (0, 0),
                                    pipeline_mode=pl.Buffered(1))
            return pl.BlockSpec(shape, lambda i: (0, 0))

        if use_pipeline_hints:
            xo_buf = 3 if n_steps >= 3 else 2
            x_spec = pl.BlockSpec((block_b, IN), lambda i: (i, 0),
                                  pipeline_mode=pl.Buffered(xo_buf))
            o_spec = pl.BlockSpec((block_b, C_pad), lambda i: (i, 0),
                                  pipeline_mode=pl.Buffered(xo_buf))
        else:
            x_spec = pl.BlockSpec((block_b, IN), lambda i: (i, 0))
            o_spec = pl.BlockSpec((block_b, C_pad), lambda i: (i, 0))

        in_specs = [
            x_spec,                    # x tile
            invariant((IN, H1)),       # W1 (full, resident)
            invariant((1, H1)),        # b1
            invariant((H1, H2)),       # W2
            invariant((1, H2)),        # b2
            invariant((H2, C_pad)),    # W3 (class-padded)
            invariant((1, C_pad)),     # b3
        ]
        return in_specs, o_spec

    def run(use_pipeline_hints):
        in_specs, out_spec = build_specs(use_pipeline_hints)
        return pl.pallas_call(
            _classifier_kernel,
            out_shape=jax.ShapeDtypeStruct((B_pad, C_pad), jnp.float32),
            grid_spec=pltpu.PrefetchScalarGridSpec(
                num_scalar_prefetch=0,
                grid=grid,
                in_specs=in_specs,
                out_specs=out_spec,
            ),
            compiler_params=pltpu.CompilerParams(
                dimension_semantics=("parallel",),
                vmem_limit_bytes=32 * 1024 * 1024,
            ),
        )(xc, w1c, b1f, w2c, b2f, w3c, b3f)

    try:
        out = run(use_pipeline_hints=True)
    except Exception:
        # pipeline_mode hints unsupported in this JAX version -> default buffering.
        out = run(use_pipeline_hints=False)

    return out[:B, :C]


def init_params(key, input_channel, num_classes):
    """Deterministic synthetic params (uniform like PyTorch default init)."""
    def linear_init(k, fan_in, fan_out):
        kw, kb = jax.random.split(k)
        bound = 1.0 / jnp.sqrt(float(fan_in))
        w = jax.random.uniform(kw, (fan_in, fan_out), jnp.float32,
                               minval=-bound, maxval=bound)
        b = jax.random.uniform(kb, (1, fan_out), jnp.float32,
                               minval=-bound, maxval=bound)
        return w, b

    k1, k2, k3 = jax.random.split(key, 3)
    w1, b1 = linear_init(k1, input_channel, 512)
    w2, b2 = linear_init(k2, 512, 128)
    w3, b3 = linear_init(k3, 128, num_classes)
    return dict(w1=w1, b1=b1, w2=w2, b2=b2, w3=w3, b3=b3)


def reference_forward(x, p, compute_dtype=jnp.bfloat16):
    """Pure-JAX reference mirroring the kernel's bf16-matmul / f32-acc path."""
    cd = compute_dtype
    h1 = jnp.maximum(
        jnp.dot(x.astype(cd), p["w1"].astype(cd),
                preferred_element_type=jnp.float32) + p["b1"], 0.0)
    h2 = jnp.maximum(
        jnp.dot(h1.astype(cd), p["w2"].astype(cd),
                preferred_element_type=jnp.float32) + p["b2"], 0.0)
    return jnp.dot(h2.astype(cd), p["w3"].astype(cd),
                   preferred_element_type=jnp.float32) + p["b3"]


if __name__ == "__main__":
    INPUT_CHANNEL = 128 * 13   # 1664, per module default
    NUM_CLASSES = 7

    key = jax.random.PRNGKey(0)
    kx1, kx2, kp = jax.random.split(key, 3)
    params = init_params(kp, INPUT_CHANNEL, NUM_CLASSES)

    # Case 1: tiny batch (single grid step, full-tile path).
    x1 = jax.random.normal(kx1, (8, INPUT_CHANNEL), jnp.float32)
    out1 = jax.block_until_ready(classifier_forward(x1, params))
    ref1 = jax.block_until_ready(reference_forward(x1, params))
    assert out1.shape == (8, NUM_CLASSES)
    assert jnp.allclose(out1, ref1, atol=1e-2, rtol=1e-2), "mismatch (B=8)"

    # Case 2: awkward batch -> zero-padded tiles, >=2 parallel grid steps.
    x2 = jax.random.normal(kx2, (40, INPUT_CHANNEL), jnp.float32)
    out2 = jax.block_until_ready(classifier_forward(x2, params))
    ref2 = jax.block_until_ready(reference_forward(x2, params))
    assert out2.shape == (40, NUM_CLASSES)
    assert jnp.allclose(out2, ref2, atol=1e-2, rtol=1e-2), "mismatch (B=40)"

    print("KERNEL_OK")
</pallas_src>

<mosaic_0001>
module attributes {stable_mosaic.version = 11 : i64} {
  func.func @_classifier_kernel(%arg0: i32, %arg1: memref<8x1664xbf16, #tpu.memory_space<vmem>>, %arg2: memref<1664x512xbf16, #tpu.memory_space<vmem>>, %arg3: memref<1x512xf32, #tpu.memory_space<vmem>>, %arg4: memref<512x128xbf16, #tpu.memory_space<vmem>>, %arg5: memref<1x128xf32, #tpu.memory_space<vmem>>, %arg6: memref<128x128xbf16, #tpu.memory_space<vmem>>, %arg7: memref<1x128xf32, #tpu.memory_space<vmem>>, %arg8: memref<8x128xf32, #tpu.memory_space<vmem>>) attributes {dimension_semantics = [#tpu.dimension_semantics<parallel>], iteration_bounds = array<i64: 1>, scalar_prefetch = 0 : i64, scratch_operands = 0 : i64, tpu.core_type = #tpu.core_type<tc>, window_params = [{pipeline_mode = #tpu.pipeline_mode<double_buffered>, transform_indices = @transform_0, window_bounds = array<i64: 8, 1664>}, {pipeline_mode = #tpu.pipeline_mode<synchronous>, transform_indices = @transform_1, window_bounds = array<i64: 1664, 512>}, {pipeline_mode = #tpu.pipeline_mode<synchronous>, transform_indices = @transform_2, window_bounds = array<i64: 1, 512>}, {pipeline_mode = #tpu.pipeline_mode<synchronous>, transform_indices = @transform_3, window_bounds = array<i64: 512, 128>}, {pipeline_mode = #tpu.pipeline_mode<synchronous>, transform_indices = @transform_4, window_bounds = array<i64: 1, 128>}, {pipeline_mode = #tpu.pipeline_mode<synchronous>, transform_indices = @transform_5, window_bounds = array<i64: 128, 128>}, {pipeline_mode = #tpu.pipeline_mode<synchronous>, transform_indices = @transform_6, window_bounds = array<i64: 1, 128>}, {pipeline_mode = #tpu.pipeline_mode<double_buffered>, transform_indices = @transform_7, window_bounds = array<i64: 8, 128>}]} {
    %c0 = arith.constant 0 : index
    %c0_0 = arith.constant 0 : index
    %0 = vector.load %arg1[%c0, %c0_0] : memref<8x1664xbf16, #tpu.memory_space<vmem>>, vector<8x1664xbf16>
    %c0_1 = arith.constant 0 : index
    %c0_2 = arith.constant 0 : index
    %1 = vector.load %arg2[%c0_1, %c0_2] : memref<1664x512xbf16, #tpu.memory_space<vmem>>, vector<1664x512xbf16>
    %cst = arith.constant dense<0.000000e+00> : vector<8x512xf32>
    %2 = tpu.matmul %0, %1, %cst {dimension_numbers = #tpu.dot_dimension_numbers<[1], [0], [0], [1], [0, 0, 1, 1], [], []>} : vector<8x1664xbf16>, vector<1664x512xbf16>, vector<8x512xf32> -> vector<8x512xf32>
    %c0_3 = arith.constant 0 : index
    %c0_4 = arith.constant 0 : index
    %3 = vector.load %arg3[%c0_3, %c0_4] : memref<1x512xf32, #tpu.memory_space<vmem>>, vector<1x512xf32>
    %4 = vector.broadcast %3 : vector<1x512xf32> to vector<8x512xf32>
    %5 = arith.addf %2, %4 : vector<8x512xf32>
    %cst_5 = arith.constant 0.000000e+00 : f32
    %6 = vector.broadcast %cst_5 : f32 to vector<8x512xf32>
    %7 = arith.maximumf %5, %6 : vector<8x512xf32>
    %8 = arith.truncf %7 : vector<8x512xf32> to vector<8x512xbf16>
    %c0_6 = arith.constant 0 : index
    %c0_7 = arith.constant 0 : index
    %9 = vector.load %arg4[%c0_6, %c0_7] : memref<512x128xbf16, #tpu.memory_space<vmem>>, vector<512x128xbf16>
    %cst_8 = arith.constant dense<0.000000e+00> : vector<8x128xf32>
    %10 = tpu.matmul %8, %9, %cst_8 {dimension_numbers = #tpu.dot_dimension_numbers<[1], [0], [0], [1], [0, 0, 1, 1], [], []>} : vector<8x512xbf16>, vector<512x128xbf16>, vector<8x128xf32> -> vector<8x128xf32>
    %c0_9 = arith.constant 0 : index
    %c0_10 = arith.constant 0 : index
    %11 = vector.load %arg5[%c0_9, %c0_10] : memref<1x128xf32, #tpu.memory_space<vmem>>, vector<1x128xf32>
    %12 = vector.broadcast %11 : vector<1x128xf32> to vector<8x128xf32>
    %13 = arith.addf %10, %12 : vector<8x128xf32>
    %cst_11 = arith.constant 0.000000e+00 : f32
    %14 = vector.broadcast %cst_11 : f32 to vector<8x128xf32>
    %15 = arith.maximumf %13, %14 : vector<8x128xf32>
    %16 = arith.truncf %15 : vector<8x128xf32> to vector<8x128xbf16>
    %c0_12 = arith.constant 0 : index
    %c0_13 = arith.constant 0 : index
    %17 = vector.load %arg6[%c0_12, %c0_13] : memref<128x128xbf16, #tpu.memory_space<vmem>>, vector<128x128xbf16>
    %cst_14 = arith.constant dense<0.000000e+00> : vector<8x128xf32>
    %18 = tpu.matmul %16, %17, %cst_14 {dimension_numbers = #tpu.dot_dimension_numbers<[1], [0], [0], [1], [0, 0, 1, 1], [], []>} : vector<8x128xbf16>, vector<128x128xbf16>, vector<8x128xf32> -> vector<8x128xf32>
    %c0_15 = arith.constant 0 : index
    %c0_16 = arith.constant 0 : index
    %19 = vector.load %arg7[%c0_15, %c0_16] : memref<1x128xf32, #tpu.memory_space<vmem>>, vector<1x128xf32>
    %20 = vector.broadcast %19 : vector<1x128xf32> to vector<8x128xf32>
    %21 = arith.addf %18, %20 : vector<8x128xf32>
    %c0_17 = arith.constant 0 : index
    %c0_18 = arith.constant 0 : index
    %22 = vector.load %arg8[%c0_17, %c0_18] : memref<8x128xf32, #tpu.memory_space<vmem>>, vector<8x128xf32>
    tpu.vector_store %arg8[%c0_17, %c0_18], %21 {strides = array<i32>} : memref<8x128xf32, #tpu.memory_space<vmem>>, vector<8x128xf32>,
    return
  }
  func.func @transform_0(%arg0: i32) -> (i32, i32) {
    %c0_i32 = arith.constant 0 : i32
    %c0_i32_0 = arith.constant 0 : i32
    return %arg0, %c0_i32 : i32, i32
  }
  func.func @transform_1(%arg0: i32) -> (i32, i32) {
    %c0_i32 = arith.constant 0 : i32
    %c0_i32_0 = arith.constant 0 : i32
    %c0_i32_1 = arith.constant 0 : i32
    return %c0_i32, %c0_i32_0 : i32, i32
  }
  func.func @transform_2(%arg0: i32) -> (i32, i32) {
    %c0_i32 = arith.constant 0 : i32
    %c0_i32_0 = arith.constant 0 : i32
    %c0_i32_1 = arith.constant 0 : i32
    return %c0_i32, %c0_i32_0 : i32, i32
  }
  func.func @transform_3(%arg0: i32) -> (i32, i32) {
    %c0_i32 = arith.constant 0 : i32
    %c0_i32_0 = arith.constant 0 : i32
    %c0_i32_1 = arith.constant 0 : i32
    return %c0_i32, %c0_i32_0 : i32, i32
  }
  func.func @transform_4(%arg0: i32) -> (i32, i32) {
    %c0_i32 = arith.constant 0 : i32
    %c0_i32_0 = arith.constant 0 : i32
    %c0_i32_1 = arith.constant 0 : i32
    return %c0_i32, %c0_i32_0 : i32, i32
  }
  func.func @transform_5(%arg0: i32) -> (i32, i32) {
    %c0_i32 = arith.constant 0 : i32
    %c0_i32_0 = arith.constant 0 : i32
    %c0_i32_1 = arith.constant 0 : i32
    return %c0_i32, %c0_i32_0 : i32, i32
  }
  func.func @transform_6(%arg0: i32) -> (i32, i32) {
    %c0_i32 = arith.constant 0 : i32
    %c0_i32_0 = arith.constant 0 : i32
    %c0_i32_1 = arith.constant 0 : i32
    return %c0_i32, %c0_i32_0 : i32, i32
  }
  func.func @transform_7(%arg0: i32) -> (i32, i32) {
    %c0_i32 = arith.constant 0 : i32
    %c0_i32_0 = arith.constant 0 : i32
    return %arg0, %c0_i32 : i32, i32
  }
}

module attributes {stable_mosaic.version = 11 : i64} {
  func.func @_classifier_kernel(%arg0: i32, %arg1: memref<8x1664xbf16, #tpu.memory_space<vmem>>, %arg2: memref<1664x512xbf16, #tpu.memory_space<vmem>>, %arg3: memref<1x512xf32, #tpu.memory_space<vmem>>, %arg4: memref<512x128xbf16, #tpu.memory_space<vmem>>, %arg5: memref<1x128xf32, #tpu.memory_space<vmem>>, %arg6: memref<128x128xbf16, #tpu.memory_space<vmem>>, %arg7: memref<1x128xf32, #tpu.memory_space<vmem>>, %arg8: memref<8x128xf32, #tpu.memory_space<vmem>>) attributes {dimension_semantics = [#tpu.dimension_semantics<parallel>], iteration_bounds = array<i64: 1>, scalar_prefetch = 0 : i64, scratch_operands = 0 : i64, tpu.core_type = #tpu.core_type<tc>, window_params = [{transform_indices = @transform_0, window_bounds = array<i64: 8, 1664>}, {pipeline_mode = #tpu.pipeline_mode<synchronous>, transform_indices = @transform_1, window_bounds = array<i64: 1664, 512>}, {pipeline_mode = #tpu.pipeline_mode<synchronous>, transform_indices = @transform_2, window_bounds = array<i64: 1, 512>}, {pipeline_mode = #tpu.pipeline_mode<synchronous>, transform_indices = @transform_3, window_bounds = array<i64: 512, 128>}, {pipeline_mode = #tpu.pipeline_mode<synchronous>, transform_indices = @transform_4, window_bounds = array<i64: 1, 128>}, {pipeline_mode = #tpu.pipeline_mode<synchronous>, transform_indices = @transform_5, window_bounds = array<i64: 128, 128>}, {pipeline_mode = #tpu.pipeline_mode<synchronous>, transform_indices = @transform_6, window_bounds = array<i64: 1, 128>}, {transform_indices = @transform_7, window_bounds = array<i64: 8, 128>}]} {
    %c0 = arith.constant 0 : index
    %c0_0 = arith.constant 0 : index
    %0 = vector.load %arg1[%c0, %c0_0] : memref<8x1664xbf16, #tpu.memory_space<vmem>>, vector<8x1664xbf16>
    %c0_1 = arith.constant 0 : index
    %c0_2 = arith.constant 0 : index
    %1 = vector.load %arg2[%c0_1, %c0_2] : memref<1664x512xbf16, #tpu.memory_space<vmem>>, vector<1664x512xbf16>
    %cst = arith.constant dense<0.000000e+00> : vector<8x512xf32>
    %2 = tpu.matmul %0, %1, %cst {dimension_numbers = #tpu.dot_dimension_numbers<[1], [0], [0], [1], [0, 0, 1, 1], [], []>} : vector<8x1664xbf16>, vector<1664x512xbf16>, vector<8x512xf32> -> vector<8x512xf32>
    %c0_3 = arith.constant 0 : index
    %c0_4 = arith.constant 0 : index
    %3 = vector.load %arg3[%c0_3, %c0_4] : memref<1x512xf32, #tpu.memory_space<vmem>>, vector<1x512xf32>
    %4 = vector.broadcast %3 : vector<1x512xf32> to vector<8x512xf32>
    %5 = arith.addf %2, %4 : vector<8x512xf32>
    %cst_5 = arith.constant 0.000000e+00 : f32
    %6 = vector.broadcast %cst_5 : f32 to vector<8x512xf32>
    %7 = arith.maximumf %5, %6 : vector<8x512xf32>
    %8 = arith.truncf %7 : vector<8x512xf32> to vector<8x512xbf16>
    %c0_6 = arith.constant 0 : index
    %c0_7 = arith.constant 0 : index
    %9 = vector.load %arg4[%c0_6, %c0_7] : memref<512x128xbf16, #tpu.memory_space<vmem>>, vector<512x128xbf16>
    %cst_8 = arith.constant dense<0.000000e+00> : vector<8x128xf32>
    %10 = tpu.matmul %8, %9, %cst_8 {dimension_numbers = #tpu.dot_dimension_numbers<[1], [0], [0], [1], [0, 0, 1, 1], [], []>} : vector<8x512xbf16>, vector<512x128xbf16>, vector<8x128xf32> -> vector<8x128xf32>
    %c0_9 = arith.constant 0 : index
    %c0_10 = arith.constant 0 : index
    %11 = vector.load %arg5[%c0_9, %c0_10] : memref<1x128xf32, #tpu.memory_space<vmem>>, vector<1x128xf32>
    %12 = vector.broadcast %11 : vector<1x128xf32> to vector<8x128xf32>
    %13 = arith.addf %10, %12 : vector<8x128xf32>
    %cst_11 = arith.constant 0.000000e+00 : f32
    %14 = vector.broadcast %cst_11 : f32 to vector<8x128xf32>
    %15 = arith.maximumf %13, %14 : vector<8x128xf32>
    %16 = arith.truncf %15 : vector<8x128xf32> to vector<8x128xbf16>
    %c0_12 = arith.constant 0 : index
    %c0_13 = arith.constant 0 : index
    %17 = vector.load %arg6[%c0_12, %c0_13] : memref<128x128xbf16, #tpu.memory_space<vmem>>, vector<128x128xbf16>
    %cst_14 = arith.constant dense<0.000000e+00> : vector<8x128xf32>
    %18 = tpu.matmul %16, %17, %cst_14 {dimension_numbers = #tpu.dot_dimension_numbers<[1], [0], [0], [1], [0, 0, 1, 1], [], []>} : vector<8x128xbf16>, vector<128x128xbf16>, vector<8x128xf32> -> vector<8x128xf32>
    %c0_15 = arith.constant 0 : index
    %c0_16 = arith.constant 0 : index
    %19 = vector.load %arg7[%c0_15, %c0_16] : memref<1x128xf32, #tpu.memory_space<vmem>>, vector<1x128xf32>
    %20 = vector.broadcast %19 : vector<1x128xf32> to vector<8x128xf32>
    %21 = arith.addf %18, %20 : vector<8x128xf32>
    %c0_17 = arith.constant 0 : index
    %c0_18 = arith.constant 0 : index
    %22 = vector.load %arg8[%c0_17, %c0_18] : memref<8x128xf32, #tpu.memory_space<vmem>>, vector<8x128xf32>
    tpu.vector_store %arg8[%c0_17, %c0_18], %21 {strides = array<i32>} : memref<8x128xf32, #tpu.memory_space<vmem>>, vector<8x128xf32>,
    return
  }
  func.func @transform_0(%arg0: i32) -> (i32, i32) {
    %c0_i32 = arith.constant 0 : i32
    %c0_i32_0 = arith.constant 0 : i32
    return %arg0, %c0_i32 : i32, i32
  }
  func.func @transform_1(%arg0: i32) -> (i32, i32) {
    %c0_i32 = arith.constant 0 : i32
    %c0_i32_0 = arith.constant 0 : i32
    %c0_i32_1 = arith.constant 0 : i32
    return %c0_i32, %c0_i32_0 : i32, i32
  }
  func.func @transform_2(%arg0: i32) -> (i32, i32) {
    %c0_i32 = arith.constant 0 : i32
    %c0_i32_0 = arith.constant 0 : i32
    %c0_i32_1 = arith.constant 0 : i32
    return %c0_i32, %c0_i32_0 : i32, i32
  }
  func.func @transform_3(%arg0: i32) -> (i32, i32) {
    %c0_i32 = arith.constant 0 : i32
    %c0_i32_0 = arith.constant 0 : i32
    %c0_i32_1 = arith.constant 0 : i32
    return %c0_i32, %c0_i32_0 : i32, i32
  }
  func.func @transform_4(%arg0: i32) -> (i32, i32) {
    %c0_i32 = arith.constant 0 : i32
    %c0_i32_0 = arith.constant 0 : i32
    %c0_i32_1 = arith.constant 0 : i32
    return %c0_i32, %c0_i32_0 : i32, i32
  }
  func.func @transform_5(%arg0: i32) -> (i32, i32) {
    %c0_i32 = arith.constant 0 : i32
    %c0_i32_0 = arith.constant 0 : i32
    %c0_i32_1 = arith.constant 0 : i32
    return %c0_i32, %c0_i32_0 : i32, i32
  }
  func.func @transform_6(%arg0: i32) -> (i32, i32) {
    %c0_i32 = arith.constant 0 : i32
    %c0_i32_0 = arith.constant 0 : i32
    %c0_i32_1 = arith.constant 0 : i32
    return %c0_i32, %c0_i32_0 : i32, i32
  }
  func.func @transform_7(%arg0: i32) -> (i32, i32) {
    %c0_i32 = arith.constant 0 : i32
    %c0_i32_0 = arith.constant 0 : i32
    return %arg0, %c0_i32 : i32, i32
  }
}

</mosaic_0001>

<bundles_post_ra>
// kernel: tpu_custom_call.1
= control target key start
LH: loop header
LB: loop body
LE: loop exit
PB: predicated region body
PF: predicated region fallthrough
CT: control target
= control target key end

     0   :  { %12 = vsyncpa [#allocation3], 0  ;;  %s5398_s0 = inlined_call_operand.hbm [shape: bf16[8,1664], index: 0, kind: input, shape index: {}]   ;;  %s5399_s1 = inlined_call_operand.hbm [shape: bf16[1664,512], index: 1, kind: input, shape index: {}]   ;;  %s5400_s2 = inlined_call_operand.hbm [shape: f32[1,512], index: 2, kind: input, shape index: {}]   ;;  %s5401_s3 = inlined_call_operand.hbm [shape: bf16[512,128], index: 3, kind: input, shape index: {}]   ;;  %s5402_s4 = inlined_call_operand.hbm [shape: f32[1,128], index: 4, kind: input, shape index: {}]   ;;  %s5403_s5 = inlined_call_operand.hbm [shape: bf16[128,128], index: 5, kind: input, shape index: {}]   ;;  %s5404_s6 = inlined_call_operand.hbm [shape: f32[1,128], index: 6, kind: input, shape index: {}]   ;;  %s5405_s7 = inlined_call_operand.hbm [shape: f32[8,128], index: 7, kind: output, shape index: {}]  }
   0x1   :  { %13 = vsyncpa [#allocation6], 0 }
   0x2   :  { %14 = vsyncpa [#allocation9], 0 }
   0x3   :  { %15 = vsyncpa [#allocation12], 0 }
   0x4   :  { %16 = vsyncpa [#allocation4], 0  ;;  %s5217_s24 = smov [#allocation5]   ;;  %s5031_s28 = scalar_lea.hbm %s5399_s1, 53248 }
   0x5   :  { %s32_s25 = sshll.u32 %s5217_s24, 4  ;;  %p5032_p0 = scmp.ne.s32.totalorder %s5399_s1, %s5031_s28  ;;  %s33_s25 = int_to_ptr.vmem [resolvable:$true] %s32_s25 }
   0x6   :  { %p5035_p1 = scmp.lt.u32.totalorder %s5031_s28, %s5399_s1 }
   0x8   :  { %p5037_p2 = pnand %p5035_p1, %p5032_p0 }
   0xa   :  { %5040 = shalt.err (!%p5037_p2)
}
   0xb   :  { %s5041_s10 = scalar_lea.vmem %s33_s25, 53248  ;;  %p5046_p4 = scmp.lt.s32.totalorder %s33_s25, %s33_s25 }
   0xc   :  { %p5042_p3 = scmp.ne.s32.totalorder %s33_s25, %s5041_s10  ;;  %p5047_p5 = scmp.lt.s32.totalorder %s5041_s10, %s5041_s10 }
   0xe   :  { %p5048_p6 = por %p5047_p5, %p5046_p4 }
  0x10   :  { %p5049_p7 = pnand %p5048_p6, %p5042_p3 }
  0x12   :  { %5052 = shalt.err (!%p5049_p7)
}
  0x13   :  { %s5218_s11 = smov 256   ;;  %s5219_s12 = smov 16  }
  0x14   :  { %38 = dma.hbm_to_vmem [thread:$0]  %s5399_s1, 53248, %s33_s25, [#allocation6], %s5218_s11, %s5218_s11, %s5219_s12  }
  0x15   :  { %s5220_s15 = smov [#allocation8]   ;;  %s5053_s19 = scalar_lea.hbm %s5401_s3, 4096 }
  0x16   :  { %s54_s16 = sshll.u32 %s5220_s15, 4  ;;  %p5054_p8 = scmp.ne.s32.totalorder %s5401_s3, %s5053_s19  ;;  %s55_s16 = int_to_ptr.vmem [resolvable:$true] %s54_s16 }
  0x17   :  { %p5057_p9 = scmp.lt.u32.totalorder %s5053_s19, %s5401_s3 }
  0x19   :  { %p5059_p10 = pnand %p5057_p9, %p5054_p8 }
  0x1b   :  { %5062 = shalt.err (!%p5059_p10)
}
  0x1c   :  { %s5063_s24 = scalar_lea.vmem %s55_s16, 4096  ;;  %p5068_p12 = scmp.lt.s32.totalorder %s55_s16, %s55_s16 }
  0x1d   :  { %p5064_p11 = scmp.ne.s32.totalorder %s55_s16, %s5063_s24  ;;  %p5069_p13 = scmp.lt.s32.totalorder %s5063_s24, %s5063_s24 }
  0x1f   :  { %p5070_p0 = por %p5069_p13, %p5068_p12 }
  0x21   :  { %p5071_p1 = pnand %p5070_p0, %p5064_p11 }
  0x23   :  { %5074 = shalt.err (!%p5071_p1)
}
  0x24   :  { %s5221_s1 = smov 64   ;;  %s5222_s25 = smov 4  }
  0x25   :  { %60 = dma.hbm_to_vmem [thread:$0]  %s5401_s3, 4096, %s55_s16, [#allocation9], %s5221_s1, %s5221_s1, %s5222_s25  }
  0x26   :  { %s5223_s28 = smov [#allocation11]   ;;  %s5224_s30 = smov [#allocation2]  }
  0x27   :  { %s76_s29 = sshll.u32 %s5223_s28, 4  ;;  %s23_s8 = sshll.u32 %s5224_s30, 4  ;;  %s77_s29 = int_to_ptr.vmem [resolvable:$true] %s76_s29  ;;  %s24_s8 = int_to_ptr.vmem [resolvable:$true] %s23_s8 }
  0x28   :  { %s5075_s11 = scalar_lea.hbm %s5403_s5, 1024 }
  0x29   :  { %p5076_p2 = scmp.ne.s32.totalorder %s5403_s5, %s5075_s11  ;;  %p5079_p3 = scmp.lt.u32.totalorder %s5075_s11, %s5403_s5 }
  0x2b   :  { %p5081_p4 = pnand %p5079_p3, %p5076_p2 }
  0x2d   :  { %5084 = shalt.err (!%p5081_p4)
}
  0x2e   :  { %s5085_s3 = scalar_lea.vmem %s77_s29, 1024  ;;  %p5090_p6 = scmp.lt.s32.totalorder %s77_s29, %s77_s29 }
  0x2f   :  { %p5086_p5 = scmp.ne.s32.totalorder %s77_s29, %s5085_s3  ;;  %p5091_p7 = scmp.lt.s32.totalorder %s5085_s3, %s5085_s3 }
  0x31   :  { %p5092_p8 = por %p5091_p7, %p5090_p6 }
  0x33   :  { %p5093_p9 = pnand %p5092_p8, %p5086_p5 }
  0x35   :  { %5096 = shalt.err (!%p5093_p9)
}
  0x36   :  { %82 = dma.hbm_to_vmem [thread:$0]  %s5403_s5, 1024, %s77_s29, [#allocation12], %s5221_s1, %s5221_s1, %s5222_s25  }
  0x37   :  { %s5097_s20 = scalar_lea.hbm %s5398_s0, 832 }
  0x38   :  { %p5098_p10 = scmp.ne.s32.totalorder %s5398_s0, %s5097_s20  ;;  %p5101_p11 = scmp.lt.u32.totalorder %s5097_s20, %s5398_s0 }
  0x3a   :  { %p5103_p12 = pnand %p5101_p11, %p5098_p10 }
  0x3c   :  { %5106 = shalt.err (!%p5103_p12)
}
  0x3d   :  { %s5107_s26 = scalar_lea.vmem %s24_s8, 832  ;;  %p5112_p0 = scmp.lt.s32.totalorder %s24_s8, %s24_s8 }
  0x3e   :  { %p5108_p13 = scmp.ne.s32.totalorder %s24_s8, %s5107_s26  ;;  %p5113_p1 = scmp.lt.s32.totalorder %s5107_s26, %s5107_s26 }
  0x40   :  { %p5114_p2 = por %p5113_p1, %p5112_p0 }
  0x42   :  { %p5115_p3 = pnand %p5114_p2, %p5108_p13 }
  0x44   :  { %5118 = shalt.err (!%p5115_p3)
}
  0x45   :  { %26 = dma.hbm_to_vmem [thread:$0]  %s5398_s0, 832, %s24_s8, [#allocation3]  }
  0x46   :  { %s5225_s25 = smov [#allocation7]   ;;  %s5226_s28 = smov [#allocation10]  }
  0x47   :  { %s45_s27 = sshll.u32 %s5225_s25, 4  ;;  %s67_s29 = sshll.u32 %s5226_s28, 4  ;;  %s46_s27 = int_to_ptr.vmem [resolvable:$true] %s45_s27  ;;  %s68_s29 = int_to_ptr.vmem [resolvable:$true] %s67_s29 }
  0x48   :  { %s5119_s10 = scalar_lea.hbm %s5400_s2, 64 }
  0x49   :  { %p5120_p4 = scmp.ne.s32.totalorder %s5400_s2, %s5119_s10  ;;  %p5123_p5 = scmp.lt.u32.totalorder %s5119_s10, %s5400_s2 }
  0x4b   :  { %p5125_p6 = pnand %p5123_p5, %p5120_p4 }
  0x4d   :  { %5128 = shalt.err (!%p5125_p6)
}
  0x4e   :  { %s5129_s0 = scalar_lea.vmem %s46_s27, 64  ;;  %p5134_p8 = scmp.lt.s32.totalorder %s46_s27, %s46_s27 }
  0x4f   :  { %p5130_p7 = scmp.ne.s32.totalorder %s46_s27, %s5129_s0  ;;  %p5135_p9 = scmp.lt.s32.totalorder %s5129_s0, %s5129_s0 }
  0x51   :  { %p5136_p10 = por %p5135_p9, %p5134_p8 }
  0x53   :  { %p5137_p11 = pnand %p5136_p10, %p5130_p7 }
  0x55   :  { %5140 = shalt.err (!%p5137_p11)
}
  0x56   :  { %48 = dma.hbm_to_vmem [thread:$0]  %s5400_s2, 64, %s46_s27, [#allocation6]  }
  0x57   :  { %s5141_s17 = scalar_lea.hbm %s5402_s4, 16 }
  0x58   :  { %p5142_p12 = scmp.ne.s32.totalorder %s5402_s4, %s5141_s17  ;;  %p5145_p13 = scmp.lt.u32.totalorder %s5141_s17, %s5402_s4 }
  0x5a   :  { %p5147_p0 = pnand %p5145_p13, %p5142_p12 }
  0x5c   :  { %5150 = shalt.err (!%p5147_p0)
}
  0x5d   :  { %s5151_s22 = scalar_lea.vmem %s68_s29, 16  ;;  %s5155_s23 = scalar_lea.vmem %s68_s29, 32 }
  0x5e   :  { %p5152_p1 = scmp.ne.s32.totalorder %s68_s29, %s5151_s22  ;;  %p5156_p2 = scmp.lt.s32.totalorder %s68_s29, %s68_s29 }
  0x5f   :  { %p5157_p3 = scmp.lt.s32.totalorder %s5155_s23, %s5151_s22 }
  0x61   :  { %p5158_p4 = por %p5157_p3, %p5156_p2 }
  0x63   :  { %p5159_p5 = pnand %p5158_p4, %p5152_p1 }
  0x65   :  { %5162 = shalt.err (!%p5159_p5)
}
  0x66   :  { %70 = dma.hbm_to_vmem [thread:$0]  %s5402_s4, 16, %s68_s29, [#allocation9]  }
  0x67   :  { %s5227_s26 = smov [#allocation13]   ;;  %s5163_s27 = scalar_lea.hbm %s5404_s6, 16 }
  0x68   :  { %s89_s5 = sshll.u32 %s5227_s26, 4  ;;  %p5164_p6 = scmp.ne.s32.totalorder %s5404_s6, %s5163_s27  ;;  %s90_s5 = int_to_ptr.vmem [resolvable:$true] %s89_s5 }
  0x69   :  { %p5167_p7 = scmp.lt.u32.totalorder %s5163_s27, %s5404_s6 }
  0x6b   :  { %p5169_p8 = pnand %p5167_p7, %p5164_p6 }
  0x6d   :  { %5172 = shalt.err (!%p5169_p8)
}
  0x6e   :  { %s5173_s11 = scalar_lea.vmem %s90_s5, 16  ;;  %s5177_s4 = scalar_lea.vmem %s90_s5, 32 }
  0x6f   :  { %p5174_p9 = scmp.ne.s32.totalorder %s90_s5, %s5173_s11  ;;  %p5178_p10 = scmp.lt.s32.totalorder %s90_s5, %s90_s5 }
  0x70   :  { %p5179_p11 = scmp.lt.s32.totalorder %s5177_s4, %s5173_s11 }
  0x72   :  { %p5180_p12 = por %p5179_p11, %p5178_p10 }
  0x74   :  { %p5181_p13 = pnand %p5180_p12, %p5174_p9 }
  0x76   :  { %5184 = shalt.err (!%p5181_p13)
}
  0x77   :  { %92 = dma.hbm_to_vmem [thread:$0]  %s5404_s6, 16, %s90_s5, [#allocation12]  }
  0x78   :  { %5207 = dma.done.wait [#allocation3], 832  }
  0x79   :  { %5208 = vsyncadd [#allocation3], 4294966464 }
  0x7a   :  { %5209 = dma.done.wait [#allocation6], 53312  }
  0x7b   :  { %5210 = vsyncadd [#allocation6], 4294913984 }
  0x7c   :  { %5211 = dma.done.wait [#allocation9], 4112  }
  0x7d   :  { %5212 = vsyncadd [#allocation9], 4294963184 }
  0x7e   :  { %5213 = dma.done.wait [#allocation12], 1040  }
  0x7f   :  { %5214 = vsyncadd [#allocation12], 4294966256  ;;  %v4354_v0 = vld [vmem:[#allocation5 + $0x4] ss:$16 sps:$4 sm:$0xff]   ;;  %v4356_v1 = vld [vmem:[#allocation5 + $0xc] ss:$16 sps:$4 sm:$0xff]  }
  0x80   :  { %2686 = vmatprep.subr.bf16.mxu0 %v4354_v0  ;;  %v4358_v2 = vld [vmem:[#allocation5] ss:$16 sps:$4 sm:$0xff]   ;;  %v4359_v3 = vld [vmem:[#allocation5 + $0x8] ss:$16 sps:$4 sm:$0xff]   ;;  %2973 = vmatprep.subr.bf16.mxu1 %v4356_v1  ;;  %v4360_v4 = vld [vmem:[#allocation5 + $0x24] ss:$16 sps:$4 sm:$0xff]  }
  0x81   :  { %2687 = vmatpush1.bf16.msra.mxu0 %v4358_v2  ;;  %2974 = vmatpush1.bf16.msra.mxu1 %v4359_v3  ;;  %v4362_v5 = vld [vmem:[#allocation5 + $0x2c] ss:$16 sps:$4 sm:$0xff]   ;;  %v4364_v6 = vld [vmem:[#allocation5 + $0x20] ss:$16 sps:$4 sm:$0xff]   ;;  %v4365_v7 = vld [vmem:[#allocation5 + $0x28] ss:$16 sps:$4 sm:$0xff]  }
  0x82   :  { %2688 = vmatprep.subr.bf16.mxu0 %v4360_v4  ;;  %2975 = vmatprep.subr.bf16.mxu1 %v4362_v5  ;;  %v4366_v8 = vld [vmem:[#allocation5 + $0x44] ss:$16 sps:$4 sm:$0xff]   ;;  %v4368_v9 = vld [vmem:[#allocation5 + $0x4c] ss:$16 sps:$4 sm:$0xff]   ;;  %v4370_v10 = vld [vmem:[#allocation5 + $0x40] ss:$16 sps:$4 sm:$0xff]  }
  0x83   :  { %v4371_v11 = vld [vmem:[#allocation5 + $0x48] ss:$16 sps:$4 sm:$0xff]   ;;  %v4372_v12 = vld [vmem:[#allocation5 + $0x64] ss:$16 sps:$4 sm:$0xff]   ;;  %v4374_v13 = vld [vmem:[#allocation5 + $0x6c] ss:$16 sps:$4 sm:$0xff]  }
  0x84   :  { %v4376_v14 = vld [vmem:[#allocation5 + $0x60] ss:$16 sps:$4 sm:$0xff]   ;;  %v4377_v15 = vld [vmem:[#allocation5 + $0x68] ss:$16 sps:$4 sm:$0xff]   ;;  %v4378_v16 = vld [vmem:[#allocation5 + $0x84] ss:$16 sps:$4 sm:$0xff]  }
  0x85   :  { %2689 = vmatpush1.bf16.msra.mxu0 %v4364_v6  ;;  %2976 = vmatpush1.bf16.msra.mxu1 %v4365_v7  ;;  %v4380_v17 = vld [vmem:[#allocation5 + $0x8c] ss:$16 sps:$4 sm:$0xff]   ;;  %v4382_v18 = vld [vmem:[#allocation5 + $0x80] ss:$16 sps:$4 sm:$0xff]   ;;  %v4383_v19 = vld [vmem:[#allocation5 + $0x88] ss:$16 sps:$4 sm:$0xff]  }
  0x86   :  { %2690 = vmatprep.subr.bf16.mxu0 %v4366_v8  ;;  %2977 = vmatprep.subr.bf16.mxu1 %v4368_v9  ;;  %v4384_v20 = vld [vmem:[#allocation5 + $0xa4] ss:$16 sps:$4 sm:$0xff]   ;;  %v4386_v21 = vld [vmem:[#allocation5 + $0xac] ss:$16 sps:$4 sm:$0xff]   ;;  %v4388_v22 = vld [vmem:[#allocation5 + $0xa0] ss:$16 sps:$4 sm:$0xff]  }
  0x87   :  { %v4389_v23 = vld [vmem:[#allocation5 + $0xa8] ss:$16 sps:$4 sm:$0xff]   ;;  %v4390_v24 = vld [vmem:[#allocation5 + $0xc4] ss:$16 sps:$4 sm:$0xff]   ;;  %v4392_v25 = vld [vmem:[#allocation5 + $0xcc] ss:$16 sps:$4 sm:$0xff]  }
  0x88   :  { %v4394_v26 = vld [vmem:[#allocation5 + $0xc0] ss:$16 sps:$4 sm:$0xff]   ;;  %v4395_v27 = vld [vmem:[#allocation5 + $0xc8] ss:$16 sps:$4 sm:$0xff]   ;;  %v4396_v28 = vld [vmem:[#allocation5 + $0xe4] ss:$16 sps:$4 sm:$0xff]  }
  0x89   :  { %2691 = vmatpush1.bf16.msra.mxu0 %v4370_v10  ;;  %2978 = vmatpush1.bf16.msra.mxu1 %v4371_v11  ;;  %v4398_v29 = vld [vmem:[#allocation5 + $0xec] ss:$16 sps:$4 sm:$0xff]   ;;  %v4400_v30 = vld [vmem:[#allocation5 + $0xe0] ss:$16 sps:$4 sm:$0xff]   ;;  %v4401_v31 = vld [vmem:[#allocation5 + $0xe8] ss:$16 sps:$4 sm:$0xff]  }
  0x8a   :  { %2692 = vmatprep.subr.bf16.mxu0 %v4372_v12  ;;  %2979 = vmatprep.subr.bf16.mxu1 %v4374_v13  ;;  %v4402_v32 = vld [vmem:[#allocation5 + $0x104] ss:$16 sps:$4 sm:$0xff]   ;;  %v4404_v33 = vld [vmem:[#allocation5 + $0x10c] ss:$16 sps:$4 sm:$0xff]   ;;  %v4406_v34 = vld [vmem:[#allocation5 + $0x100] ss:$16 sps:$4 sm:$0xff]  }
  0x8b   :  { %v4407_v35 = vld [vmem:[#allocation5 + $0x108] ss:$16 sps:$4 sm:$0xff]   ;;  %v4408_v36 = vld [vmem:[#allocation5 + $0x124] ss:$16 sps:$4 sm:$0xff]   ;;  %v4410_v37 = vld [vmem:[#allocation5 + $0x12c] ss:$16 sps:$4 sm:$0xff]  }
  0x8c   :  { %v4412_v38 = vld [vmem:[#allocation5 + $0x120] ss:$16 sps:$4 sm:$0xff]   ;;  %v4413_v39 = vld [vmem:[#allocation5 + $0x128] ss:$16 sps:$4 sm:$0xff]   ;;  %v4414_v40 = vld [vmem:[#allocation5 + $0x144] ss:$16 sps:$4 sm:$0xff]  }
  0x8d   :  { %2693 = vmatpush1.bf16.msra.mxu0 %v4376_v14  ;;  %2980 = vmatpush1.bf16.msra.mxu1 %v4377_v15  ;;  %v4416_v41 = vld [vmem:[#allocation5 + $0x14c] ss:$16 sps:$4 sm:$0xff]   ;;  %v4418_v42 = vld [vmem:[#allocation5 + $0x140] ss:$16 sps:$4 sm:$0xff]   ;;  %v4419_v43 = vld [vmem:[#allocation5 + $0x148] ss:$16 sps:$4 sm:$0xff]  }
  0x8e   :  { %2694 = vmatprep.subr.bf16.mxu0 %v4378_v16  ;;  %2981 = vmatprep.subr.bf16.mxu1 %v4380_v17  ;;  %v4420_v44 = vld [vmem:[#allocation5 + $0x164] ss:$16 sps:$4 sm:$0xff]   ;;  %v4422_v45 = vld [vmem:[#allocation5 + $0x16c] ss:$16 sps:$4 sm:$0xff]   ;;  %v4424_v47 = vld [vmem:[#allocation5 + $0x160] ss:$16 sps:$4 sm:$0xff]  }
  0x8f   :  { %v115_v46 = vld [vmem:[#allocation2] sm:$0xff]  ;;  %v4425_v49 = vld [vmem:[#allocation5 + $0x168] ss:$16 sps:$4 sm:$0xff]   ;;  %v4426_v50 = vld [vmem:[#allocation5 + $0x184] ss:$16 sps:$4 sm:$0xff]   ;;  %vm5230_vm0 = vmmov 0  }
  0x90   :  { %v3744_v48 = vcombine.high %v115_v46, %v115_v46  ;;  %v4428_v51 = vld [vmem:[#allocation5 + $0x18c] ss:$16 sps:$4 sm:$0xff]   ;;  %v4430_v52 = vld [vmem:[#allocation5 + $0x180] ss:$16 sps:$4 sm:$0xff]   ;;  %v4431_v53 = vld [vmem:[#allocation5 + $0x188] ss:$16 sps:$4 sm:$0xff]   ;;  %v3743_v4 = vcombine.low %v115_v46, %v115_v46 }
  0x91   :  { %2695 = vmatpush1.bf16.msra.mxu0 %v4382_v18  ;;  %2982 = vmatpush1.bf16.msra.mxu1 %v4383_v19  ;;  %v4432_v54 = vld [vmem:[#allocation5 + $0x1a4] ss:$16 sps:$4 sm:$0xff]   ;;  %v4434_v55 = vld [vmem:[#allocation5 + $0x1ac] ss:$16 sps:$4 sm:$0xff]   ;;  %v4436_v56 = vld [vmem:[#allocation5 + $0x1a0] ss:$16 sps:$4 sm:$0xff]  }
  0x92   :  { %2696 = vmatprep.subr.bf16.mxu0 %v4384_v20  ;;  %2983 = vmatprep.subr.bf16.mxu1 %v4386_v21  ;;  %v4437_v57 = vld [vmem:[#allocation5 + $0x1a8] ss:$16 sps:$4 sm:$0xff]   ;;  %v4438_v58 = vld [vmem:[#allocation5 + $0x1c4] ss:$16 sps:$4 sm:$0xff]   ;;  %v4440_v59 = vld [vmem:[#allocation5 + $0x1cc] ss:$16 sps:$4 sm:$0xff]  }
  0x93   :  { %2718 = vmatprep.mubr.bf16.mxu0 %v3744_v48  ;;  %3005 = vmatprep.mubr.bf16.mxu1 %v3744_v48  ;;  %v4442_v60 = vld [vmem:[#allocation5 + $0x1c0] ss:$16 sps:$4 sm:$0xff]   ;;  %v4443_v61 = vld [vmem:[#allocation5 + $0x1c8] ss:$16 sps:$4 sm:$0xff]   ;;  %v4444_v62 = vld [vmem:[#allocation5 + $0x1e4] ss:$16 sps:$4 sm:$0xff]  }
  0x94   :  { %v4446_v63 = vld [vmem:[#allocation5 + $0x1ec] ss:$16 sps:$4 sm:$0xff]   ;;  %v4448_v0 = vld [vmem:[#allocation5 + $0x1e0] ss:$16 sps:$4 sm:$0xff]   ;;  %v4449_v1 = vld [vmem:[#allocation5 + $0x1e8] ss:$16 sps:$4 sm:$0xff]  }
  0x95   :  { %2697 = vmatpush1.bf16.msra.mxu0 %v4388_v22  ;;  %2984 = vmatpush1.bf16.msra.mxu1 %v4389_v23  ;;  %v4454_v2 = vld [vmem:[#allocation5 + $0x204] ss:$16 sps:$4 sm:$0xff]   ;;  %v4457_v3 = vld [vmem:[#allocation5 + $0x20c] ss:$16 sps:$4 sm:$0xff]   ;;  %v4452_v5 = vld [vmem:[#allocation5 + $0x200] ss:$16 sps:$4 sm:$0xff]  }
  0x96   :  { %2698 = vmatprep.subr.bf16.mxu0 %v4390_v24  ;;  %2985 = vmatprep.subr.bf16.mxu1 %v4392_v25  ;;  %v4455_v6 = vld [vmem:[#allocation5 + $0x208] ss:$16 sps:$4 sm:$0xff]   ;;  %v4460_v7 = vld [vmem:[#allocation5 + $0x224] ss:$16 sps:$4 sm:$0xff]   ;;  %v4463_v8 = vld [vmem:[#allocation5 + $0x22c] ss:$16 sps:$4 sm:$0xff]  }
  0x97   :  { %v4458_v9 = vld [vmem:[#allocation5 + $0x220] ss:$16 sps:$4 sm:$0xff]   ;;  %v4461_v10 = vld [vmem:[#allocation5 + $0x228] ss:$16 sps:$4 sm:$0xff]   ;;  %v4466_v11 = vld [vmem:[#allocation5 + $0x244] ss:$16 sps:$4 sm:$0xff]  }
  0x98   :  { %v4469_v12 = vld [vmem:[#allocation5 + $0x24c] ss:$16 sps:$4 sm:$0xff]   ;;  %v4464_v13 = vld [vmem:[#allocation5 + $0x240] ss:$16 sps:$4 sm:$0xff]   ;;  %v4467_v14 = vld [vmem:[#allocation5 + $0x248] ss:$16 sps:$4 sm:$0xff]  }
  0x99   :  { %2699 = vmatpush1.bf16.msra.mxu0 %v4394_v26  ;;  %2986 = vmatpush1.bf16.msra.mxu1 %v4395_v27  ;;  %v4472_v15 = vld [vmem:[#allocation5 + $0x264] ss:$16 sps:$4 sm:$0xff]   ;;  %v4475_v16 = vld [vmem:[#allocation5 + $0x26c] ss:$16 sps:$4 sm:$0xff]   ;;  %v4470_v17 = vld [vmem:[#allocation5 + $0x260] ss:$16 sps:$4 sm:$0xff]  }
  0x9a   :  { %2700 = vmatprep.subr.bf16.mxu0 %v4396_v28  ;;  %2987 = vmatprep.subr.bf16.mxu1 %v4398_v29  ;;  %v4473_v18 = vld [vmem:[#allocation5 + $0x268] ss:$16 sps:$4 sm:$0xff]   ;;  %v4478_v19 = vld [vmem:[#allocation5 + $0x284] ss:$16 sps:$4 sm:$0xff]   ;;  %v4481_v20 = vld [vmem:[#allocation5 + $0x28c] ss:$16 sps:$4 sm:$0xff]  }
  0x9b   :  { %v4476_v21 = vld [vmem:[#allocation5 + $0x280] ss:$16 sps:$4 sm:$0xff]   ;;  %v4479_v22 = vld [vmem:[#allocation5 + $0x288] ss:$16 sps:$4 sm:$0xff]   ;;  %v4484_v23 = vld [vmem:[#allocation5 + $0x2a4] ss:$16 sps:$4 sm:$0xff]  }
  0x9c   :  { %v4487_v24 = vld [vmem:[#allocation5 + $0x2ac] ss:$16 sps:$4 sm:$0xff]   ;;  %v4482_v25 = vld [vmem:[#allocation5 + $0x2a0] ss:$16 sps:$4 sm:$0xff]   ;;  %v4485_v26 = vld [vmem:[#allocation5 + $0x2a8] ss:$16 sps:$4 sm:$0xff]  }
  0x9d   :  { %2701 = vmatpush1.bf16.msra.mxu0 %v4400_v30  ;;  %2988 = vmatpush1.bf16.msra.mxu1 %v4401_v31  ;;  %v4490_v27 = vld [vmem:[#allocation5 + $0x2c4] ss:$16 sps:$4 sm:$0xff]   ;;  %v4493_v28 = vld [vmem:[#allocation5 + $0x2cc] ss:$16 sps:$4 sm:$0xff]   ;;  %v4488_v31 = vld [vmem:[#allocation5 + $0x2c0] ss:$16 sps:$4 sm:$0xff]  }
  0x9e   :  { %2702 = vmatprep.subr.bf16.mxu0 %v4402_v32  ;;  %2989 = vmatprep.subr.bf16.mxu1 %v4404_v33  ;;  %v5356_v29 = vld [vmem:[#allocation2 + $0x8] sm:$0xff]  ;;  %v4517_v46 = vld [vmem:[#allocation5 + $0x34c] ss:$16 sps:$4 sm:$0xff]   ;;  %s5231_s6 = smov [#allocation14]  }
  0x9f   :  { %v3746_v30 = vcombine.high %v5356_v29, %v5356_v29  ;;  %v4491_v32 = vld [vmem:[#allocation5 + $0x2c8] ss:$16 sps:$4 sm:$0xff]   ;;  %v4496_v33 = vld [vmem:[#allocation5 + $0x2e4] ss:$16 sps:$4 sm:$0xff]   ;;  %s3731_s13 = sshll.u32 %s5231_s6, 4  ;;  %s3732_s13 = int_to_ptr.vmem [resolvable:$true] %s3731_s13 }
  0xa0   :  { %v4515_v48 = vld [vmem:[#allocation5 + $0x348] ss:$16 sps:$4 sm:$0xff]   ;;  %s5185_s14 = scalar_lea.vmem %s3732_s13, 128  ;;  %p5190_p1 = scmp.lt.s32.totalorder %s3732_s13, %s3732_s13 }
  0xa1   :  { %2703 = vmatpush1.bf16.msra.mxu0 %v4406_v34  ;;  %2990 = vmatpush1.bf16.msra.mxu1 %v4407_v35  ;;  %v4499_v34 = vld [vmem:[#allocation5 + $0x2ec] ss:$16 sps:$4 sm:$0xff]   ;;  %v4494_v35 = vld [vmem:[#allocation5 + $0x2e0] ss:$16 sps:$4 sm:$0xff]   ;;  %p5186_p0 = scmp.ne.s32.totalorder %s3732_s13, %s5185_s14  ;;  %p5191_p2 = scmp.lt.s32.totalorder %s5185_s14, %s5185_s14 }
  0xa2   :  { %2704 = vmatprep.subr.bf16.mxu0 %v4408_v36  ;;  %2991 = vmatprep.subr.bf16.mxu1 %v4410_v37  ;;  %v4497_v36 = vld [vmem:[#allocation5 + $0x2e8] ss:$16 sps:$4 sm:$0xff]   ;;  %v4502_v37 = vld [vmem:[#allocation5 + $0x304] ss:$16 sps:$4 sm:$0xff]  }
  0xa3   :  { %p5192_p3 = por %p5191_p2, %p5190_p1 }
  0xa5   :  { %2705 = vmatpush1.bf16.msra.mxu0 %v4412_v38  ;;  %2992 = vmatpush1.bf16.msra.mxu1 %v4413_v39  ;;  %v4505_v38 = vld [vmem:[#allocation5 + $0x30c] ss:$16 sps:$4 sm:$0xff]   ;;  %v4500_v39 = vld [vmem:[#allocation5 + $0x300] ss:$16 sps:$4 sm:$0xff]   ;;  %p5193_p4 = pnand %p5192_p3, %p5186_p0 }
  0xa6   :  { %2706 = vmatprep.subr.bf16.mxu0 %v4414_v40  ;;  %2993 = vmatprep.subr.bf16.mxu1 %v4416_v41  ;;  %v4503_v40 = vld [vmem:[#allocation5 + $0x308] ss:$16 sps:$4 sm:$0xff]   ;;  %v4508_v41 = vld [vmem:[#allocation5 + $0x324] ss:$16 sps:$4 sm:$0xff]  }
  0xa9   :  { %2707 = vmatpush1.bf16.msra.mxu0 %v4418_v42  ;;  %2994 = vmatpush1.bf16.msra.mxu1 %v4419_v43  ;;  %v4511_v42 = vld [vmem:[#allocation5 + $0x32c] ss:$16 sps:$4 sm:$0xff]   ;;  %v4506_v43 = vld [vmem:[#allocation5 + $0x320] ss:$16 sps:$4 sm:$0xff]  }
  0xaa   :  { %2708 = vmatprep.subr.bf16.mxu0 %v4420_v44  ;;  %2995 = vmatprep.subr.bf16.mxu1 %v4422_v45  ;;  %v4509_v44 = vld [vmem:[#allocation5 + $0x328] ss:$16 sps:$4 sm:$0xff]   ;;  %v4514_v45 = vld [vmem:[#allocation5 + $0x344] ss:$16 sps:$4 sm:$0xff]  }
  0xad   :  { %2709 = vmatpush1.bf16.msra.mxu0 %v4424_v47  ;;  %2996 = vmatpush1.bf16.msra.mxu1 %v4425_v49  ;;  %v4512_v47 = vld [vmem:[#allocation5 + $0x340] ss:$16 sps:$4 sm:$0xff]   ;;  %v4520_v49 = vld [vmem:[#allocation5 + $0x364] ss:$16 sps:$4 sm:$0xff]  }
  0xae   :  { %2710 = vmatprep.subr.bf16.mxu0 %v4426_v50  ;;  %2997 = vmatprep.subr.bf16.mxu1 %v4428_v51  ;;  %v4523_v50 = vld [vmem:[#allocation5 + $0x36c] ss:$16 sps:$4 sm:$0xff]   ;;  %v4518_v51 = vld [vmem:[#allocation5 + $0x360] ss:$16 sps:$4 sm:$0xff]  }
  0xb1   :  { %2711 = vmatpush1.bf16.msra.mxu0 %v4430_v52  ;;  %2998 = vmatpush1.bf16.msra.mxu1 %v4431_v53  ;;  %v4521_v52 = vld [vmem:[#allocation5 + $0x368] ss:$16 sps:$4 sm:$0xff]   ;;  %v4526_v53 = vld [vmem:[#allocation5 + $0x384] ss:$16 sps:$4 sm:$0xff]  }
  0xb2   :  { %2712 = vmatprep.subr.bf16.mxu0 %v4432_v54  ;;  %2999 = vmatprep.subr.bf16.mxu1 %v4434_v55  ;;  %v4529_v54 = vld [vmem:[#allocation5 + $0x38c] ss:$16 sps:$4 sm:$0xff]   ;;  %v4524_v55 = vld [vmem:[#allocation5 + $0x380] ss:$16 sps:$4 sm:$0xff]  }
  0xb5   :  { %2713 = vmatpush1.bf16.msra.mxu0 %v4436_v56  ;;  %3000 = vmatpush1.bf16.msra.mxu1 %v4437_v57  ;;  %v4527_v56 = vld [vmem:[#allocation5 + $0x388] ss:$16 sps:$4 sm:$0xff]   ;;  %v4532_v57 = vld [vmem:[#allocation5 + $0x3a4] ss:$16 sps:$4 sm:$0xff]  }
  0xb6   :  { %2714 = vmatprep.subr.bf16.mxu0 %v4438_v58  ;;  %3001 = vmatprep.subr.bf16.mxu1 %v4440_v59  ;;  %v4535_v58 = vld [vmem:[#allocation5 + $0x3ac] ss:$16 sps:$4 sm:$0xff]   ;;  %v4530_v59 = vld [vmem:[#allocation5 + $0x3a0] ss:$16 sps:$4 sm:$0xff]  }
  0xb9   :  { %2715 = vmatpush1.bf16.msra.mxu0 %v4442_v60  ;;  %3002 = vmatpush1.bf16.msra.mxu1 %v4443_v61  ;;  %v4533_v60 = vld [vmem:[#allocation5 + $0x3a8] ss:$16 sps:$4 sm:$0xff]   ;;  %v4538_v61 = vld [vmem:[#allocation5 + $0x3c4] ss:$16 sps:$4 sm:$0xff]  }
  0xba   :  { %2716 = vmatprep.subr.bf16.mxu0 %v4444_v62  ;;  %3003 = vmatprep.subr.bf16.mxu1 %v4446_v63  ;;  %v4541_v62 = vld [vmem:[#allocation5 + $0x3cc] ss:$16 sps:$4 sm:$0xff]   ;;  %v4536_v63 = vld [vmem:[#allocation5 + $0x3c0] ss:$16 sps:$4 sm:$0xff]  }
  0xbd   :  { %2717 = vmatpush1.bf16.msra.mxu0 %v4448_v0  ;;  %3004 = vmatpush1.bf16.msra.mxu1 %v4449_v1  ;;  %v4539_v0 = vld [vmem:[#allocation5 + $0x3c8] ss:$16 sps:$4 sm:$0xff]   ;;  %v4544_v1 = vld [vmem:[#allocation5 + $0x3e4] ss:$16 sps:$4 sm:$0xff]  }
  0xbe   :  { %2727 = vmatprep.subr.bf16.mxu0 %v4454_v2  ;;  %3014 = vmatprep.subr.bf16.mxu1 %v4457_v3  ;;  %v4547_v2 = vld [vmem:[#allocation5 + $0x3ec] ss:$16 sps:$4 sm:$0xff]   ;;  %v4542_v3 = vld [vmem:[#allocation5 + $0x3e0] ss:$16 sps:$4 sm:$0xff]  }
  0xc0   :  { %2719 = vmatmul.mubr.bf16.vlgmr.msra.gmra.mrb[0].mxu0 %v3743_v4  ;;  %3006 = vmatmul.mubr.bf16.vlgmr.msra.gmra.mrb[0].mxu1 %v3743_v4  ;;  %v4545_v4 = vld [vmem:[#allocation5 + $0x3e8] ss:$16 sps:$4 sm:$0xff]  }
  0xc1   :  { %2728 = vmatpush1.bf16.msra.mxu0 %v4452_v5  ;;  %3015 = vmatpush1.bf16.msra.mxu1 %v4455_v6  ;;  %v4552_v5 = vld [vmem:[#allocation5 + $0x404] ss:$16 sps:$4 sm:$0xff]   ;;  %v4555_v6 = vld [vmem:[#allocation5 + $0x40c] ss:$16 sps:$4 sm:$0xff]  }
  0xc2   :  { %2729 = vmatprep.subr.bf16.mxu0 %v4460_v7  ;;  %3016 = vmatprep.subr.bf16.mxu1 %v4463_v8  ;;  %v3745_v7 = vcombine.low %v5356_v29, %v5356_v29  ;;  %v4550_v8 = vld [vmem:[#allocation5 + $0x400] ss:$16 sps:$4 sm:$0xff]   ;;  %v4585_v29 = vld [vmem:[#allocation5 + $0x4ac] ss:$16 sps:$4 sm:$0xff]  }
  0xc3   :  { %2759 = vmatprep.mubr.bf16.mxu0 %v3746_v30  ;;  %3046 = vmatprep.mubr.bf16.mxu1 %v3746_v30  ;;  %v4580_v30 = vld [vmem:[#allocation5 + $0x4a0] ss:$16 sps:$4 sm:$0xff]  }
  0xc5   :  { %2730 = vmatpush1.bf16.msra.mxu0 %v4458_v9  ;;  %3017 = vmatpush1.bf16.msra.mxu1 %v4461_v10  ;;  %v4553_v9 = vld [vmem:[#allocation5 + $0x408] ss:$16 sps:$4 sm:$0xff]   ;;  %v4558_v10 = vld [vmem:[#allocation5 + $0x424] ss:$16 sps:$4 sm:$0xff]  }
  0xc6   :  { %2731 = vmatprep.subr.bf16.mxu0 %v4466_v11  ;;  %3018 = vmatprep.subr.bf16.mxu1 %v4469_v12  ;;  %v5362_v11 = vld [vmem:[#allocation2 + $0x10] sm:$0xff] }
  0xc7   :  { %v4561_v12 = vld [vmem:[#allocation5 + $0x42c] ss:$16 sps:$4 sm:$0xff]  }
  0xc9   :  { %2732 = vmatpush1.bf16.msra.mxu0 %v4464_v13  ;;  %3019 = vmatpush1.bf16.msra.mxu1 %v4467_v14  ;;  %v3748_v13 = vcombine.high %v5362_v11, %v5362_v11  ;;  %v4556_v14 = vld [vmem:[#allocation5 + $0x420] ss:$16 sps:$4 sm:$0xff]  }
  0xca   :  { %2733 = vmatprep.subr.bf16.mxu0 %v4472_v15  ;;  %3020 = vmatprep.subr.bf16.mxu1 %v4475_v16  ;;  %v4559_v15 = vld [vmem:[#allocation5 + $0x428] ss:$16 sps:$4 sm:$0xff]   ;;  %v4564_v16 = vld [vmem:[#allocation5 + $0x444] ss:$16 sps:$4 sm:$0xff]  }
  0xcd   :  { %2734 = vmatpush1.bf16.msra.mxu0 %v4470_v17  ;;  %3021 = vmatpush1.bf16.msra.mxu1 %v4473_v18  ;;  %v4567_v17 = vld [vmem:[#allocation5 + $0x44c] ss:$16 sps:$4 sm:$0xff]   ;;  %v4562_v18 = vld [vmem:[#allocation5 + $0x440] ss:$16 sps:$4 sm:$0xff]  }
  0xce   :  { %2735 = vmatprep.subr.bf16.mxu0 %v4478_v19  ;;  %3022 = vmatprep.subr.bf16.mxu1 %v4481_v20  ;;  %v4565_v19 = vld [vmem:[#allocation5 + $0x448] ss:$16 sps:$4 sm:$0xff]   ;;  %v4570_v20 = vld [vmem:[#allocation5 + $0x464] ss:$16 sps:$4 sm:$0xff]  }
  0xd1   :  { %2736 = vmatpush1.bf16.msra.mxu0 %v4476_v21  ;;  %3023 = vmatpush1.bf16.msra.mxu1 %v4479_v22  ;;  %v4573_v21 = vld [vmem:[#allocation5 + $0x46c] ss:$16 sps:$4 sm:$0xff]   ;;  %v4568_v22 = vld [vmem:[#allocation5 + $0x460] ss:$16 sps:$4 sm:$0xff]  }
  0xd2   :  { %2737 = vmatprep.subr.bf16.mxu0 %v4484_v23  ;;  %3024 = vmatprep.subr.bf16.mxu1 %v4487_v24  ;;  %v4571_v23 = vld [vmem:[#allocation5 + $0x468] ss:$16 sps:$4 sm:$0xff]   ;;  %v4576_v24 = vld [vmem:[#allocation5 + $0x484] ss:$16 sps:$4 sm:$0xff]  }
  0xd5   :  { %2738 = vmatpush1.bf16.msra.mxu0 %v4482_v25  ;;  %3025 = vmatpush1.bf16.msra.mxu1 %v4485_v26  ;;  %v4579_v25 = vld [vmem:[#allocation5 + $0x48c] ss:$16 sps:$4 sm:$0xff]   ;;  %v4574_v26 = vld [vmem:[#allocation5 + $0x480] ss:$16 sps:$4 sm:$0xff]  }
  0xd6   :  { %2739 = vmatprep.subr.bf16.mxu0 %v4490_v27  ;;  %3026 = vmatprep.subr.bf16.mxu1 %v4493_v28  ;;  %v4577_v27 = vld [vmem:[#allocation5 + $0x488] ss:$16 sps:$4 sm:$0xff]   ;;  %v4582_v28 = vld [vmem:[#allocation5 + $0x4a4] ss:$16 sps:$4 sm:$0xff]  }
  0xd9   :  { %2740 = vmatpush1.bf16.msra.mxu0 %v4488_v31  ;;  %3027 = vmatpush1.bf16.msra.mxu1 %v4491_v32  ;;  %v4583_v31 = vld [vmem:[#allocation5 + $0x4a8] ss:$16 sps:$4 sm:$0xff]   ;;  %v4588_v32 = vld [vmem:[#allocation5 + $0x4c4] ss:$16 sps:$4 sm:$0xff]  }
  0xda   :  { %2741 = vmatprep.subr.bf16.mxu0 %v4496_v33  ;;  %3028 = vmatprep.subr.bf16.mxu1 %v4499_v34  ;;  %v4591_v33 = vld [vmem:[#allocation5 + $0x4cc] ss:$16 sps:$4 sm:$0xff]   ;;  %v4586_v34 = vld [vmem:[#allocation5 + $0x4c0] ss:$16 sps:$4 sm:$0xff]  }
  0xdd   :  { %2742 = vmatpush1.bf16.msra.mxu0 %v4494_v35  ;;  %3029 = vmatpush1.bf16.msra.mxu1 %v4497_v36  ;;  %v4589_v35 = vld [vmem:[#allocation5 + $0x4c8] ss:$16 sps:$4 sm:$0xff]   ;;  %v4594_v36 = vld [vmem:[#allocation5 + $0x4e4] ss:$16 sps:$4 sm:$0xff]  }
  0xde   :  { %2743 = vmatprep.subr.bf16.mxu0 %v4502_v37  ;;  %3030 = vmatprep.subr.bf16.mxu1 %v4505_v38  ;;  %v4597_v37 = vld [vmem:[#allocation5 + $0x4ec] ss:$16 sps:$4 sm:$0xff]   ;;  %v4592_v38 = vld [vmem:[#allocation5 + $0x4e0] ss:$16 sps:$4 sm:$0xff]  }
  0xe1   :  { %2744 = vmatpush1.bf16.msra.mxu0 %v4500_v39  ;;  %3031 = vmatpush1.bf16.msra.mxu1 %v4503_v40  ;;  %v4595_v39 = vld [vmem:[#allocation5 + $0x4e8] ss:$16 sps:$4 sm:$0xff]   ;;  %v4600_v40 = vld [vmem:[#allocation5 + $0x504] ss:$16 sps:$4 sm:$0xff]  }
  0xe2   :  { %2745 = vmatprep.subr.bf16.mxu0 %v4508_v41  ;;  %3032 = vmatprep.subr.bf16.mxu1 %v4511_v42  ;;  %v4603_v41 = vld [vmem:[#allocation5 + $0x50c] ss:$16 sps:$4 sm:$0xff]   ;;  %v4598_v42 = vld [vmem:[#allocation5 + $0x500] ss:$16 sps:$4 sm:$0xff]  }
  0xe5   :  { %2746 = vmatpush1.bf16.msra.mxu0 %v4506_v43  ;;  %3033 = vmatpush1.bf16.msra.mxu1 %v4509_v44  ;;  %v4601_v43 = vld [vmem:[#allocation5 + $0x508] ss:$16 sps:$4 sm:$0xff]   ;;  %v4606_v44 = vld [vmem:[#allocation5 + $0x524] ss:$16 sps:$4 sm:$0xff]  }
  0xe6   :  { %2747 = vmatprep.subr.bf16.mxu0 %v4514_v45  ;;  %3034 = vmatprep.subr.bf16.mxu1 %v4517_v46  ;;  %v4609_v45 = vld [vmem:[#allocation5 + $0x52c] ss:$16 sps:$4 sm:$0xff]   ;;  %v4604_v46 = vld [vmem:[#allocation5 + $0x520] ss:$16 sps:$4 sm:$0xff]  }
  0xe9   :  { %2748 = vmatpush1.bf16.msra.mxu0 %v4512_v47  ;;  %3035 = vmatpush1.bf16.msra.mxu1 %v4515_v48  ;;  %v4607_v47 = vld [vmem:[#allocation5 + $0x528] ss:$16 sps:$4 sm:$0xff]   ;;  %v4612_v48 = vld [vmem:[#allocation5 + $0x544] ss:$16 sps:$4 sm:$0xff]  }
  0xea   :  { %2749 = vmatprep.subr.bf16.mxu0 %v4520_v49  ;;  %3036 = vmatprep.subr.bf16.mxu1 %v4523_v50  ;;  %v4615_v49 = vld [vmem:[#allocation5 + $0x54c] ss:$16 sps:$4 sm:$0xff]   ;;  %v4610_v50 = vld [vmem:[#allocation5 + $0x540] ss:$16 sps:$4 sm:$0xff]  }
  0xed   :  { %2750 = vmatpush1.bf16.msra.mxu0 %v4518_v51  ;;  %3037 = vmatpush1.bf16.msra.mxu1 %v4521_v52  ;;  %v4613_v51 = vld [vmem:[#allocation5 + $0x548] ss:$16 sps:$4 sm:$0xff]   ;;  %v4618_v52 = vld [vmem:[#allocation5 + $0x564] ss:$16 sps:$4 sm:$0xff]  }
  0xee   :  { %2751 = vmatprep.subr.bf16.mxu0 %v4526_v53  ;;  %3038 = vmatprep.subr.bf16.mxu1 %v4529_v54  ;;  %v4621_v53 = vld [vmem:[#allocation5 + $0x56c] ss:$16 sps:$4 sm:$0xff]   ;;  %v4616_v54 = vld [vmem:[#allocation5 + $0x560] ss:$16 sps:$4 sm:$0xff]  }
  0xf1   :  { %2752 = vmatpush1.bf16.msra.mxu0 %v4524_v55  ;;  %3039 = vmatpush1.bf16.msra.mxu1 %v4527_v56  ;;  %v4619_v55 = vld [vmem:[#allocation5 + $0x568] ss:$16 sps:$4 sm:$0xff]   ;;  %v4624_v56 = vld [vmem:[#allocation5 + $0x584] ss:$16 sps:$4 sm:$0xff]  }
  0xf2   :  { %2753 = vmatprep.subr.bf16.mxu0 %v4532_v57  ;;  %3040 = vmatprep.subr.bf16.mxu1 %v4535_v58  ;;  %v4627_v57 = vld [vmem:[#allocation5 + $0x58c] ss:$16 sps:$4 sm:$0xff]   ;;  %v4622_v58 = vld [vmem:[#allocation5 + $0x580] ss:$16 sps:$4 sm:$0xff]  }
  0xf5   :  { %2754 = vmatpush1.bf16.msra.mxu0 %v4530_v59  ;;  %3041 = vmatpush1.bf16.msra.mxu1 %v4533_v60  ;;  %v4625_v59 = vld [vmem:[#allocation5 + $0x588] ss:$16 sps:$4 sm:$0xff]   ;;  %v4630_v60 = vld [vmem:[#allocation5 + $0x5a4] ss:$16 sps:$4 sm:$0xff]  }
  0xf6   :  { %2755 = vmatprep.subr.bf16.mxu0 %v4538_v61  ;;  %3042 = vmatprep.subr.bf16.mxu1 %v4541_v62  ;;  %v4633_v61 = vld [vmem:[#allocation5 + $0x5ac] ss:$16 sps:$4 sm:$0xff]   ;;  %v4628_v62 = vld [vmem:[#allocation5 + $0x5a0] ss:$16 sps:$4 sm:$0xff]  }
  0xf9   :  { %2756 = vmatpush1.bf16.msra.mxu0 %v4536_v63  ;;  %3043 = vmatpush1.bf16.msra.mxu1 %v4539_v0  ;;  %v4631_v63 = vld [vmem:[#allocation5 + $0x5a8] ss:$16 sps:$4 sm:$0xff]   ;;  %v4636_v0 = vld [vmem:[#allocation5 + $0x5c4] ss:$16 sps:$4 sm:$0xff]  }
  0xfa   :  { %2757 = vmatprep.subr.bf16.mxu0 %v4544_v1  ;;  %3044 = vmatprep.subr.bf16.mxu1 %v4547_v2  ;;  %v4639_v1 = vld [vmem:[#allocation5 + $0x5cc] ss:$16 sps:$4 sm:$0xff]   ;;  %v4634_v2 = vld [vmem:[#allocation5 + $0x5c0] ss:$16 sps:$4 sm:$0xff]  }
  0xfd   :  { %2758 = vmatpush1.bf16.msra.mxu0 %v4542_v3  ;;  %3045 = vmatpush1.bf16.msra.mxu1 %v4545_v4  ;;  %v4637_v3 = vld [vmem:[#allocation5 + $0x5c8] ss:$16 sps:$4 sm:$0xff]   ;;  %v4642_v4 = vld [vmem:[#allocation5 + $0x5e4] ss:$16 sps:$4 sm:$0xff]  }
  0xfe   :  { %2768 = vmatprep.subr.bf16.mxu0 %v4552_v5  ;;  %3055 = vmatprep.subr.bf16.mxu1 %v4555_v6  ;;  %v4645_v5 = vld [vmem:[#allocation5 + $0x5ec] ss:$16 sps:$4 sm:$0xff]   ;;  %v4640_v6 = vld [vmem:[#allocation5 + $0x5e0] ss:$16 sps:$4 sm:$0xff]  }
 0x100   :  { %2760 = vmatmul.mubr.bf16.vlgmr.msra.gmra.mrb[0].mxu0 %v3745_v7  ;;  %3047 = vmatmul.mubr.bf16.vlgmr.msra.gmra.mrb[0].mxu1 %v3745_v7  ;;  %v4643_v7 = vld [vmem:[#allocation5 + $0x5e8] ss:$16 sps:$4 sm:$0xff]  }
 0x101   :  { %2769 = vmatpush1.bf16.msra.mxu0 %v4550_v8  ;;  %3056 = vmatpush1.bf16.msra.mxu1 %v4553_v9  ;;  %v4650_v8 = vld [vmem:[#allocation5 + $0x604] ss:$16 sps:$4 sm:$0xff]   ;;  %v4653_v9 = vld [vmem:[#allocation5 + $0x60c] ss:$16 sps:$4 sm:$0xff]  }
 0x102   :  { %2770 = vmatprep.subr.bf16.mxu0 %v4558_v10  ;;  %3057 = vmatprep.subr.bf16.mxu1 %v4561_v12  ;;  %v4648_v10 = vld [vmem:[#allocation5 + $0x600] ss:$16 sps:$4 sm:$0xff]   ;;  %v3747_v12 = vcombine.low %v5362_v11, %v5362_v11  ;;  %v4665_v11 = vld [vmem:[#allocation5 + $0x64c] ss:$16 sps:$4 sm:$0xff]  }
 0x103   :  { %2800 = vmatprep.mubr.bf16.mxu0 %v3748_v13  ;;  %3087 = vmatprep.mubr.bf16.mxu1 %v3748_v13  ;;  %v4651_v13 = vld [vmem:[#allocation5 + $0x608] ss:$16 sps:$4 sm:$0xff]  }
 0x105   :  { %2771 = vmatpush1.bf16.msra.mxu0 %v4556_v14  ;;  %3058 = vmatpush1.bf16.msra.mxu1 %v4559_v15  ;;  %v5368_v14 = vld [vmem:[#allocation2 + $0x18] sm:$0xff] }
 0x106   :  { %2772 = vmatprep.subr.bf16.mxu0 %v4564_v16  ;;  %3059 = vmatprep.subr.bf16.mxu1 %v4567_v17  ;;  %v4656_v15 = vld [vmem:[#allocation5 + $0x624] ss:$16 sps:$4 sm:$0xff]   ;;  %v4659_v16 = vld [vmem:[#allocation5 + $0x62c] ss:$16 sps:$4 sm:$0xff]   ;;  %v3750_v17 = vcombine.high %v5368_v14, %v5368_v14 }
 0x109   :  { %2773 = vmatpush1.bf16.msra.mxu0 %v4562_v18  ;;  %3060 = vmatpush1.bf16.msra.mxu1 %v4565_v19  ;;  %v4654_v18 = vld [vmem:[#allocation5 + $0x620] ss:$16 sps:$4 sm:$0xff]   ;;  %v4657_v19 = vld [vmem:[#allocation5 + $0x628] ss:$16 sps:$4 sm:$0xff]  }
 0x10a   :  { %2774 = vmatprep.subr.bf16.mxu0 %v4570_v20  ;;  %3061 = vmatprep.subr.bf16.mxu1 %v4573_v21  ;;  %v4662_v20 = vld [vmem:[#allocation5 + $0x644] ss:$16 sps:$4 sm:$0xff]   ;;  %v4660_v21 = vld [vmem:[#allocation5 + $0x640] ss:$16 sps:$4 sm:$0xff]  }
 0x10d   :  { %2775 = vmatpush1.bf16.msra.mxu0 %v4568_v22  ;;  %3062 = vmatpush1.bf16.msra.mxu1 %v4571_v23  ;;  %v4663_v22 = vld [vmem:[#allocation5 + $0x648] ss:$16 sps:$4 sm:$0xff]   ;;  %v4668_v23 = vld [vmem:[#allocation5 + $0x664] ss:$16 sps:$4 sm:$0xff]  }
 0x10e   :  { %2776 = vmatprep.subr.bf16.mxu0 %v4576_v24  ;;  %3063 = vmatprep.subr.bf16.mxu1 %v4579_v25  ;;  %v4671_v24 = vld [vmem:[#allocation5 + $0x66c] ss:$16 sps:$4 sm:$0xff]   ;;  %v4666_v25 = vld [vmem:[#allocation5 + $0x660] ss:$16 sps:$4 sm:$0xff]  }
 0x111   :  { %2777 = vmatpush1.bf16.msra.mxu0 %v4574_v26  ;;  %3064 = vmatpush1.bf16.msra.mxu1 %v4577_v27  ;;  %v4669_v26 = vld [vmem:[#allocation5 + $0x668] ss:$16 sps:$4 sm:$0xff]   ;;  %v4674_v27 = vld [vmem:[#allocation5 + $0x684] ss:$16 sps:$4 sm:$0xff]  }
 0x112   :  { %2778 = vmatprep.subr.bf16.mxu0 %v4582_v28  ;;  %3065 = vmatprep.subr.bf16.mxu1 %v4585_v29  ;;  %v4677_v28 = vld [vmem:[#allocation5 + $0x68c] ss:$16 sps:$4 sm:$0xff]   ;;  %v4672_v29 = vld [vmem:[#allocation5 + $0x680] ss:$16 sps:$4 sm:$0xff]  }
 0x115   :  { %2779 = vmatpush1.bf16.msra.mxu0 %v4580_v30  ;;  %3066 = vmatpush1.bf16.msra.mxu1 %v4583_v31  ;;  %v4675_v30 = vld [vmem:[#allocation5 + $0x688] ss:$16 sps:$4 sm:$0xff]   ;;  %v4680_v31 = vld [vmem:[#allocation5 + $0x6a4] ss:$16 sps:$4 sm:$0xff]  }
 0x116   :  { %2780 = vmatprep.subr.bf16.mxu0 %v4588_v32  ;;  %3067 = vmatprep.subr.bf16.mxu1 %v4591_v33  ;;  %v4683_v32 = vld [vmem:[#allocation5 + $0x6ac] ss:$16 sps:$4 sm:$0xff]   ;;  %v4678_v33 = vld [vmem:[#allocation5 + $0x6a0] ss:$16 sps:$4 sm:$0xff]  }
 0x119   :  { %2781 = vmatpush1.bf16.msra.mxu0 %v4586_v34  ;;  %3068 = vmatpush1.bf16.msra.mxu1 %v4589_v35  ;;  %v4681_v34 = vld [vmem:[#allocation5 + $0x6a8] ss:$16 sps:$4 sm:$0xff]   ;;  %v4686_v35 = vld [vmem:[#allocation5 + $0x6c4] ss:$16 sps:$4 sm:$0xff]  }
 0x11a   :  { %2782 = vmatprep.subr.bf16.mxu0 %v4594_v36  ;;  %3069 = vmatprep.subr.bf16.mxu1 %v4597_v37  ;;  %v4689_v36 = vld [vmem:[#allocation5 + $0x6cc] ss:$16 sps:$4 sm:$0xff]   ;;  %v4684_v37 = vld [vmem:[#allocation5 + $0x6c0] ss:$16 sps:$4 sm:$0xff]  }
 0x11d   :  { %2783 = vmatpush1.bf16.msra.mxu0 %v4592_v38  ;;  %3070 = vmatpush1.bf16.msra.mxu1 %v4595_v39  ;;  %v4687_v38 = vld [vmem:[#allocation5 + $0x6c8] ss:$16 sps:$4 sm:$0xff]   ;;  %v4692_v39 = vld [vmem:[#allocation5 + $0x6e4] ss:$16 sps:$4 sm:$0xff]  }
 0x11e   :  { %2784 = vmatprep.subr.bf16.mxu0 %v4600_v40  ;;  %3071 = vmatprep.subr.bf16.mxu1 %v4603_v41  ;;  %v4695_v40 = vld [vmem:[#allocation5 + $0x6ec] ss:$16 sps:$4 sm:$0xff]   ;;  %v4690_v41 = vld [vmem:[#allocation5 + $0x6e0] ss:$16 sps:$4 sm:$0xff]  }
 0x121   :  { %2785 = vmatpush1.bf16.msra.mxu0 %v4598_v42  ;;  %3072 = vmatpush1.bf16.msra.mxu1 %v4601_v43  ;;  %v4693_v42 = vld [vmem:[#allocation5 + $0x6e8] ss:$16 sps:$4 sm:$0xff]   ;;  %v4698_v43 = vld [vmem:[#allocation5 + $0x704] ss:$16 sps:$4 sm:$0xff]  }
 0x122   :  { %2786 = vmatprep.subr.bf16.mxu0 %v4606_v44  ;;  %3073 = vmatprep.subr.bf16.mxu1 %v4609_v45  ;;  %v4701_v44 = vld [vmem:[#allocation5 + $0x70c] ss:$16 sps:$4 sm:$0xff]   ;;  %v4696_v45 = vld [vmem:[#allocation5 + $0x700] ss:$16 sps:$4 sm:$0xff]  }
 0x125   :  { %2787 = vmatpush1.bf16.msra.mxu0 %v4604_v46  ;;  %3074 = vmatpush1.bf16.msra.mxu1 %v4607_v47  ;;  %v4699_v46 = vld [vmem:[#allocation5 + $0x708] ss:$16 sps:$4 sm:$0xff]   ;;  %v4704_v47 = vld [vmem:[#allocation5 + $0x724] ss:$16 sps:$4 sm:$0xff]  }
 0x126   :  { %2788 = vmatprep.subr.bf16.mxu0 %v4612_v48  ;;  %3075 = vmatprep.subr.bf16.mxu1 %v4615_v49  ;;  %v4707_v48 = vld [vmem:[#allocation5 + $0x72c] ss:$16 sps:$4 sm:$0xff]   ;;  %v4702_v49 = vld [vmem:[#allocation5 + $0x720] ss:$16 sps:$4 sm:$0xff]  }
 0x129   :  { %2789 = vmatpush1.bf16.msra.mxu0 %v4610_v50  ;;  %3076 = vmatpush1.bf16.msra.mxu1 %v4613_v51  ;;  %v4705_v50 = vld [vmem:[#allocation5 + $0x728] ss:$16 sps:$4 sm:$0xff]   ;;  %v4710_v51 = vld [vmem:[#allocation5 + $0x744] ss:$16 sps:$4 sm:$0xff]  }
 0x12a   :  { %2790 = vmatprep.subr.bf16.mxu0 %v4618_v52  ;;  %3077 = vmatprep.subr.bf16.mxu1 %v4621_v53  ;;  %v4713_v52 = vld [vmem:[#allocation5 + $0x74c] ss:$16 sps:$4 sm:$0xff]   ;;  %v4708_v53 = vld [vmem:[#allocation5 + $0x740] ss:$16 sps:$4 sm:$0xff]  }
 0x12d   :  { %2791 = vmatpush1.bf16.msra.mxu0 %v4616_v54  ;;  %3078 = vmatpush1.bf16.msra.mxu1 %v4619_v55  ;;  %v4711_v54 = vld [vmem:[#allocation5 + $0x748] ss:$16 sps:$4 sm:$0xff]   ;;  %v4716_v55 = vld [vmem:[#allocation5 + $0x764] ss:$16 sps:$4 sm:$0xff]  }
 0x12e   :  { %2792 = vmatprep.subr.bf16.mxu0 %v4624_v56  ;;  %3079 = vmatprep.subr.bf16.mxu1 %v4627_v57  ;;  %v4719_v56 = vld [vmem:[#allocation5 + $0x76c] ss:$16 sps:$4 sm:$0xff]   ;;  %v4714_v57 = vld [vmem:[#allocation5 + $0x760] ss:$16 sps:$4 sm:$0xff]  }
 0x131   :  { %2793 = vmatpush1.bf16.msra.mxu0 %v4622_v58  ;;  %3080 = vmatpush1.bf16.msra.mxu1 %v4625_v59  ;;  %v4717_v58 = vld [vmem:[#allocation5 + $0x768] ss:$16 sps:$4 sm:$0xff]   ;;  %v4722_v59 = vld [vmem:[#allocation5 + $0x784] ss:$16 sps:$4 sm:$0xff]  }
 0x132   :  { %2794 = vmatprep.subr.bf16.mxu0 %v4630_v60  ;;  %3081 = vmatprep.subr.bf16.mxu1 %v4633_v61  ;;  %v4725_v60 = vld [vmem:[#allocation5 + $0x78c] ss:$16 sps:$4 sm:$0xff]   ;;  %v4720_v61 = vld [vmem:[#allocation5 + $0x780] ss:$16 sps:$4 sm:$0xff]  }
 0x135   :  { %2795 = vmatpush1.bf16.msra.mxu0 %v4628_v62  ;;  %3082 = vmatpush1.bf16.msra.mxu1 %v4631_v63  ;;  %v4723_v62 = vld [vmem:[#allocation5 + $0x788] ss:$16 sps:$4 sm:$0xff]   ;;  %v4728_v63 = vld [vmem:[#allocation5 + $0x7a4] ss:$16 sps:$4 sm:$0xff]  }
 0x136   :  { %2796 = vmatprep.subr.bf16.mxu0 %v4636_v0  ;;  %3083 = vmatprep.subr.bf16.mxu1 %v4639_v1  ;;  %v4731_v0 = vld [vmem:[#allocation5 + $0x7ac] ss:$16 sps:$4 sm:$0xff]   ;;  %v4726_v1 = vld [vmem:[#allocation5 + $0x7a0] ss:$16 sps:$4 sm:$0xff]  }
 0x139   :  { %2797 = vmatpush1.bf16.msra.mxu0 %v4634_v2  ;;  %3084 = vmatpush1.bf16.msra.mxu1 %v4637_v3  ;;  %v4729_v2 = vld [vmem:[#allocation5 + $0x7a8] ss:$16 sps:$4 sm:$0xff]   ;;  %v4734_v3 = vld [vmem:[#allocation5 + $0x7c4] ss:$16 sps:$4 sm:$0xff]  }
 0x13a   :  { %2798 = vmatprep.subr.bf16.mxu0 %v4642_v4  ;;  %3085 = vmatprep.subr.bf16.mxu1 %v4645_v5  ;;  %v4737_v4 = vld [vmem:[#allocation5 + $0x7cc] ss:$16 sps:$4 sm:$0xff]   ;;  %v4732_v5 = vld [vmem:[#allocation5 + $0x7c0] ss:$16 sps:$4 sm:$0xff]  }
 0x13d   :  { %2799 = vmatpush1.bf16.msra.mxu0 %v4640_v6  ;;  %3086 = vmatpush1.bf16.msra.mxu1 %v4643_v7  ;;  %v4735_v6 = vld [vmem:[#allocation5 + $0x7c8] ss:$16 sps:$4 sm:$0xff]   ;;  %v4740_v7 = vld [vmem:[#allocation5 + $0x7e4] ss:$16 sps:$4 sm:$0xff]  }
 0x13e   :  { %2809 = vmatprep.subr.bf16.mxu0 %v4650_v8  ;;  %3096 = vmatprep.subr.bf16.mxu1 %v4653_v9  ;;  %v4743_v8 = vld [vmem:[#allocation5 + $0x7ec] ss:$16 sps:$4 sm:$0xff]   ;;  %v4738_v9 = vld [vmem:[#allocation5 + $0x7e0] ss:$16 sps:$4 sm:$0xff]  }
 0x140   :  { %2801 = vmatmul.mubr.bf16.vlgmr.msra.gmra.mrb[0].mxu0 %v3747_v12  ;;  %3088 = vmatmul.mubr.bf16.vlgmr.msra.gmra.mrb[0].mxu1 %v3747_v12  ;;  %v4748_v12 = vld [vmem:[#allocation5 + $0x804] ss:$16 sps:$4 sm:$0xff]  }
 0x141   :  { %2810 = vmatpush1.bf16.msra.mxu0 %v4648_v10  ;;  %3097 = vmatpush1.bf16.msra.mxu1 %v4651_v13  ;;  %v4741_v10 = vld [vmem:[#allocation5 + $0x7e8] ss:$16 sps:$4 sm:$0xff]   ;;  %v4751_v13 = vld [vmem:[#allocation5 + $0x80c] ss:$16 sps:$4 sm:$0xff]  }
 0x142   :  { %2811 = vmatprep.subr.bf16.mxu0 %v4656_v15  ;;  %3098 = vmatprep.subr.bf16.mxu1 %v4659_v16  ;;  %v4746_v15 = vld [vmem:[#allocation5 + $0x800] ss:$16 sps:$4 sm:$0xff]   ;;  %v3749_v16 = vcombine.low %v5368_v14, %v5368_v14  ;;  %v4760_v14 = vld [vmem:[#allocation5 + $0x844] ss:$16 sps:$4 sm:$0xff]  }
 0x143   :  { %2841 = vmatprep.mubr.bf16.mxu0 %v3750_v17  ;;  %3128 = vmatprep.mubr.bf16.mxu1 %v3750_v17  ;;  %v5374_v17 = vld [vmem:[#allocation2 + $0x20] sm:$0xff] }
 0x145   :  { %2812 = vmatpush1.bf16.msra.mxu0 %v4654_v18  ;;  %3099 = vmatpush1.bf16.msra.mxu1 %v4657_v19  ;;  %v4749_v18 = vld [vmem:[#allocation5 + $0x808] ss:$16 sps:$4 sm:$0xff]   ;;  %v4754_v19 = vld [vmem:[#allocation5 + $0x824] ss:$16 sps:$4 sm:$0xff]  }
 0x146   :  { %2813 = vmatprep.subr.bf16.mxu0 %v4662_v20  ;;  %3100 = vmatprep.subr.bf16.mxu1 %v4665_v11  ;;  %v4757_v20 = vld [vmem:[#allocation5 + $0x82c] ss:$16 sps:$4 sm:$0xff]   ;;  %v3752_v11 = vcombine.high %v5374_v17, %v5374_v17 }
 0x149   :  { %2814 = vmatpush1.bf16.msra.mxu0 %v4660_v21  ;;  %3101 = vmatpush1.bf16.msra.mxu1 %v4663_v22  ;;  %v4752_v21 = vld [vmem:[#allocation5 + $0x820] ss:$16 sps:$4 sm:$0xff]   ;;  %v4755_v22 = vld [vmem:[#allocation5 + $0x828] ss:$16 sps:$4 sm:$0xff]  }
 0x14a   :  { %2815 = vmatprep.subr.bf16.mxu0 %v4668_v23  ;;  %3102 = vmatprep.subr.bf16.mxu1 %v4671_v24  ;;  %v4763_v23 = vld [vmem:[#allocation5 + $0x84c] ss:$16 sps:$4 sm:$0xff]   ;;  %v4758_v24 = vld [vmem:[#allocation5 + $0x840] ss:$16 sps:$4 sm:$0xff]  }
 0x14d   :  { %2816 = vmatpush1.bf16.msra.mxu0 %v4666_v25  ;;  %3103 = vmatpush1.bf16.msra.mxu1 %v4669_v26  ;;  %v4761_v25 = vld [vmem:[#allocation5 + $0x848] ss:$16 sps:$4 sm:$0xff]   ;;  %v4766_v26 = vld [vmem:[#allocation5 + $0x864] ss:$16 sps:$4 sm:$0xff]  }
 0x14e   :  { %2817 = vmatprep.subr.bf16.mxu0 %v4674_v27  ;;  %3104 = vmatprep.subr.bf16.mxu1 %v4677_v28  ;;  %v4769_v27 = vld [vmem:[#allocation5 + $0x86c] ss:$16 sps:$4 sm:$0xff]   ;;  %v4764_v28 = vld [vmem:[#allocation5 + $0x860] ss:$16 sps:$4 sm:$0xff]  }
 0x151   :  { %2818 = vmatpush1.bf16.msra.mxu0 %v4672_v29  ;;  %3105 = vmatpush1.bf16.msra.mxu1 %v4675_v30  ;;  %v4767_v29 = vld [vmem:[#allocation5 + $0x868] ss:$16 sps:$4 sm:$0xff]   ;;  %v4772_v30 = vld [vmem:[#allocation5 + $0x884] ss:$16 sps:$4 sm:$0xff]  }
 0x152   :  { %2819 = vmatprep.subr.bf16.mxu0 %v4680_v31  ;;  %3106 = vmatprep.subr.bf16.mxu1 %v4683_v32  ;;  %v4775_v31 = vld [vmem:[#allocation5 + $0x88c] ss:$16 sps:$4 sm:$0xff]   ;;  %v4770_v32 = vld [vmem:[#allocation5 + $0x880] ss:$16 sps:$4 sm:$0xff]  }
 0x155   :  { %2820 = vmatpush1.bf16.msra.mxu0 %v4678_v33  ;;  %3107 = vmatpush1.bf16.msra.mxu1 %v4681_v34  ;;  %v4773_v33 = vld [vmem:[#allocation5 + $0x888] ss:$16 sps:$4 sm:$0xff]   ;;  %v4778_v34 = vld [vmem:[#allocation5 + $0x8a4] ss:$16 sps:$4 sm:$0xff]  }
 0x156   :  { %2821 = vmatprep.subr.bf16.mxu0 %v4686_v35  ;;  %3108 = vmatprep.subr.bf16.mxu1 %v4689_v36  ;;  %v4781_v35 = vld [vmem:[#allocation5 + $0x8ac] ss:$16 sps:$4 sm:$0xff]   ;;  %v4776_v36 = vld [vmem:[#allocation5 + $0x8a0] ss:$16 sps:$4 sm:$0xff]  }
 0x159   :  { %2822 = vmatpush1.bf16.msra.mxu0 %v4684_v37  ;;  %3109 = vmatpush1.bf16.msra.mxu1 %v4687_v38  ;;  %v4779_v37 = vld [vmem:[#allocation5 + $0x8a8] ss:$16 sps:$4 sm:$0xff]   ;;  %v4784_v38 = vld [vmem:[#allocation5 + $0x8c4] ss:$16 sps:$4 sm:$0xff]  }
 0x15a   :  { %2823 = vmatprep.subr.bf16.mxu0 %v4692_v39  ;;  %3110 = vmatprep.subr.bf16.mxu1 %v4695_v40  ;;  %v4787_v39 = vld [vmem:[#allocation5 + $0x8cc] ss:$16 sps:$4 sm:$0xff]   ;;  %v4782_v40 = vld [vmem:[#allocation5 + $0x8c0] ss:$16 sps:$4 sm:$0xff]  }
 0x15d   :  { %2824 = vmatpush1.bf16.msra.mxu0 %v4690_v41  ;;  %3111 = vmatpush1.bf16.msra.mxu1 %v4693_v42  ;;  %v4785_v41 = vld [vmem:[#allocation5 + $0x8c8] ss:$16 sps:$4 sm:$0xff]   ;;  %v4790_v42 = vld [vmem:[#allocation5 + $0x8e4] ss:$16 sps:$4 sm:$0xff]  }
 0x15e   :  { %2825 = vmatprep.subr.bf16.mxu0 %v4698_v43  ;;  %3112 = vmatprep.subr.bf16.mxu1 %v4701_v44  ;;  %v4793_v43 = vld [vmem:[#allocation5 + $0x8ec] ss:$16 sps:$4 sm:$0xff]   ;;  %v4788_v44 = vld [vmem:[#allocation5 + $0x8e0] ss:$16 sps:$4 sm:$0xff]  }
 0x161   :  { %2826 = vmatpush1.bf16.msra.mxu0 %v4696_v45  ;;  %3113 = vmatpush1.bf16.msra.mxu1 %v4699_v46  ;;  %v4791_v45 = vld [vmem:[#allocation5 + $0x8e8] ss:$16 sps:$4 sm:$0xff]   ;;  %v4796_v46 = vld [vmem:[#allocation5 + $0x904] ss:$16 sps:$4 sm:$0xff]  }
 0x162   :  { %2827 = vmatprep.subr.bf16.mxu0 %v4704_v47  ;;  %3114 = vmatprep.subr.bf16.mxu1 %v4707_v48  ;;  %v4799_v47 = vld [vmem:[#allocation5 + $0x90c] ss:$16 sps:$4 sm:$0xff]   ;;  %v4794_v48 = vld [vmem:[#allocation5 + $0x900] ss:$16 sps:$4 sm:$0xff]  }
 0x165   :  { %2828 = vmatpush1.bf16.msra.mxu0 %v4702_v49  ;;  %3115 = vmatpush1.bf16.msra.mxu1 %v4705_v50  ;;  %v4797_v49 = vld [vmem:[#allocation5 + $0x908] ss:$16 sps:$4 sm:$0xff]   ;;  %v4802_v50 = vld [vmem:[#allocation5 + $0x924] ss:$16 sps:$4 sm:$0xff]  }
 0x166   :  { %2829 = vmatprep.subr.bf16.mxu0 %v4710_v51  ;;  %3116 = vmatprep.subr.bf16.mxu1 %v4713_v52  ;;  %v4805_v51 = vld [vmem:[#allocation5 + $0x92c] ss:$16 sps:$4 sm:$0xff]   ;;  %v4800_v52 = vld [vmem:[#allocation5 + $0x920] ss:$16 sps:$4 sm:$0xff]  }
 0x169   :  { %2830 = vmatpush1.bf16.msra.mxu0 %v4708_v53  ;;  %3117 = vmatpush1.bf16.msra.mxu1 %v4711_v54  ;;  %v4803_v53 = vld [vmem:[#allocation5 + $0x928] ss:$16 sps:$4 sm:$0xff]   ;;  %v4808_v54 = vld [vmem:[#allocation5 + $0x944] ss:$16 sps:$4 sm:$0xff]  }
 0x16a   :  { %2831 = vmatprep.subr.bf16.mxu0 %v4716_v55  ;;  %3118 = vmatprep.subr.bf16.mxu1 %v4719_v56  ;;  %v4811_v55 = vld [vmem:[#allocation5 + $0x94c] ss:$16 sps:$4 sm:$0xff]   ;;  %v4806_v56 = vld [vmem:[#allocation5 + $0x940] ss:$16 sps:$4 sm:$0xff]  }
 0x16d   :  { %2832 = vmatpush1.bf16.msra.mxu0 %v4714_v57  ;;  %3119 = vmatpush1.bf16.msra.mxu1 %v4717_v58  ;;  %v4809_v57 = vld [vmem:[#allocation5 + $0x948] ss:$16 sps:$4 sm:$0xff]   ;;  %v4814_v58 = vld [vmem:[#allocation5 + $0x964] ss:$16 sps:$4 sm:$0xff]  }
 0x16e   :  { %2833 = vmatprep.subr.bf16.mxu0 %v4722_v59  ;;  %3120 = vmatprep.subr.bf16.mxu1 %v4725_v60  ;;  %v4817_v59 = vld [vmem:[#allocation5 + $0x96c] ss:$16 sps:$4 sm:$0xff]   ;;  %v4812_v60 = vld [vmem:[#allocation5 + $0x960] ss:$16 sps:$4 sm:$0xff]  }
 0x171   :  { %2834 = vmatpush1.bf16.msra.mxu0 %v4720_v61  ;;  %3121 = vmatpush1.bf16.msra.mxu1 %v4723_v62  ;;  %v4815_v61 = vld [vmem:[#allocation5 + $0x968] ss:$16 sps:$4 sm:$0xff]   ;;  %v4820_v62 = vld [vmem:[#allocation5 + $0x984] ss:$16 sps:$4 sm:$0xff]  }
 0x172   :  { %2835 = vmatprep.subr.bf16.mxu0 %v4728_v63  ;;  %3122 = vmatprep.subr.bf16.mxu1 %v4731_v0  ;;  %v4823_v63 = vld [vmem:[#allocation5 + $0x98c] ss:$16 sps:$4 sm:$0xff]   ;;  %v4818_v0 = vld [vmem:[#allocation5 + $0x980] ss:$16 sps:$4 sm:$0xff]  }
 0x175   :  { %2836 = vmatpush1.bf16.msra.mxu0 %v4726_v1  ;;  %3123 = vmatpush1.bf16.msra.mxu1 %v4729_v2  ;;  %v4821_v1 = vld [vmem:[#allocation5 + $0x988] ss:$16 sps:$4 sm:$0xff]   ;;  %v4826_v2 = vld [vmem:[#allocation5 + $0x9a4] ss:$16 sps:$4 sm:$0xff]  }
 0x176   :  { %2837 = vmatprep.subr.bf16.mxu0 %v4734_v3  ;;  %3124 = vmatprep.subr.bf16.mxu1 %v4737_v4  ;;  %v4829_v3 = vld [vmem:[#allocation5 + $0x9ac] ss:$16 sps:$4 sm:$0xff]   ;;  %v4824_v4 = vld [vmem:[#allocation5 + $0x9a0] ss:$16 sps:$4 sm:$0xff]  }
 0x179   :  { %2838 = vmatpush1.bf16.msra.mxu0 %v4732_v5  ;;  %3125 = vmatpush1.bf16.msra.mxu1 %v4735_v6  ;;  %v4827_v5 = vld [vmem:[#allocation5 + $0x9a8] ss:$16 sps:$4 sm:$0xff]   ;;  %v4832_v6 = vld [vmem:[#allocation5 + $0x9c4] ss:$16 sps:$4 sm:$0xff]  }
 0x17a   :  { %2839 = vmatprep.subr.bf16.mxu0 %v4740_v7  ;;  %3126 = vmatprep.subr.bf16.mxu1 %v4743_v8  ;;  %v4835_v7 = vld [vmem:[#allocation5 + $0x9cc] ss:$16 sps:$4 sm:$0xff]   ;;  %v4830_v8 = vld [vmem:[#allocation5 + $0x9c0] ss:$16 sps:$4 sm:$0xff]  }
 0x17d   :  { %2840 = vmatpush1.bf16.msra.mxu0 %v4738_v9  ;;  %3127 = vmatpush1.bf16.msra.mxu1 %v4741_v10  ;;  %v4833_v9 = vld [vmem:[#allocation5 + $0x9c8] ss:$16 sps:$4 sm:$0xff]   ;;  %v4838_v10 = vld [vmem:[#allocation5 + $0x9e4] ss:$16 sps:$4 sm:$0xff]  }
 0x17e   :  { %2850 = vmatprep.subr.bf16.mxu0 %v4748_v12  ;;  %3137 = vmatprep.subr.bf16.mxu1 %v4751_v13  ;;  %v4841_v12 = vld [vmem:[#allocation5 + $0x9ec] ss:$16 sps:$4 sm:$0xff]   ;;  %v4836_v13 = vld [vmem:[#allocation5 + $0x9e0] ss:$16 sps:$4 sm:$0xff]  }
 0x180   :  { %2842 = vmatmul.mubr.bf16.vlgmr.msra.gmra.mrb[0].mxu0 %v3749_v16  ;;  %3129 = vmatmul.mubr.bf16.vlgmr.msra.gmra.mrb[0].mxu1 %v3749_v16  ;;  %v4846_v16 = vld [vmem:[#allocation5 + $0xa04] ss:$16 sps:$4 sm:$0xff]  }
 0x181   :  { %2851 = vmatpush1.bf16.msra.mxu0 %v4746_v15  ;;  %3138 = vmatpush1.bf16.msra.mxu1 %v4749_v18  ;;  %v4839_v15 = vld [vmem:[#allocation5 + $0x9e8] ss:$16 sps:$4 sm:$0xff]   ;;  %v4849_v18 = vld [vmem:[#allocation5 + $0xa0c] ss:$16 sps:$4 sm:$0xff]  }
 0x182   :  { %2852 = vmatprep.subr.bf16.mxu0 %v4754_v19  ;;  %3139 = vmatprep.subr.bf16.mxu1 %v4757_v20  ;;  %v3751_v19 = vcombine.low %v5374_v17, %v5374_v17  ;;  %v5380_v20 = vld [vmem:[#allocation2 + $0x28] sm:$0xff] }
 0x183   :  { %2882 = vmatprep.mubr.bf16.mxu0 %v3752_v11  ;;  %3169 = vmatprep.mubr.bf16.mxu1 %v3752_v11  ;;  %v4844_v11 = vld [vmem:[#allocation5 + $0xa00] ss:$16 sps:$4 sm:$0xff]   ;;  %v4858_v17 = vld [vmem:[#allocation5 + $0xa44] ss:$16 sps:$4 sm:$0xff]  }
 0x185   :  { %2853 = vmatpush1.bf16.msra.mxu0 %v4752_v21  ;;  %3140 = vmatpush1.bf16.msra.mxu1 %v4755_v22  ;;  %v4847_v21 = vld [vmem:[#allocation5 + $0xa08] ss:$16 sps:$4 sm:$0xff]   ;;  %v4852_v22 = vld [vmem:[#allocation5 + $0xa24] ss:$16 sps:$4 sm:$0xff]  }
 0x186   :  { %2854 = vmatprep.subr.bf16.mxu0 %v4760_v14  ;;  %3141 = vmatprep.subr.bf16.mxu1 %v4763_v23  ;;  %v4855_v14 = vld [vmem:[#allocation5 + $0xa2c] ss:$16 sps:$4 sm:$0xff]   ;;  %v3754_v23 = vcombine.high %v5380_v20, %v5380_v20 }
 0x189   :  { %2855 = vmatpush1.bf16.msra.mxu0 %v4758_v24  ;;  %3142 = vmatpush1.bf16.msra.mxu1 %v4761_v25  ;;  %v4850_v24 = vld [vmem:[#allocation5 + $0xa20] ss:$16 sps:$4 sm:$0xff]   ;;  %v4853_v25 = vld [vmem:[#allocation5 + $0xa28] ss:$16 sps:$4 sm:$0xff]  }
 0x18a   :  { %2856 = vmatprep.subr.bf16.mxu0 %v4766_v26  ;;  %3143 = vmatprep.subr.bf16.mxu1 %v4769_v27  ;;  %v4861_v26 = vld [vmem:[#allocation5 + $0xa4c] ss:$16 sps:$4 sm:$0xff]   ;;  %v4856_v27 = vld [vmem:[#allocation5 + $0xa40] ss:$16 sps:$4 sm:$0xff]  }
 0x18d   :  { %2857 = vmatpush1.bf16.msra.mxu0 %v4764_v28  ;;  %3144 = vmatpush1.bf16.msra.mxu1 %v4767_v29  ;;  %v4859_v28 = vld [vmem:[#allocation5 + $0xa48] ss:$16 sps:$4 sm:$0xff]   ;;  %v4864_v29 = vld [vmem:[#allocation5 + $0xa64] ss:$16 sps:$4 sm:$0xff]  }
 0x18e   :  { %2858 = vmatprep.subr.bf16.mxu0 %v4772_v30  ;;  %3145 = vmatprep.subr.bf16.mxu1 %v4775_v31  ;;  %v4867_v30 = vld [vmem:[#allocation5 + $0xa6c] ss:$16 sps:$4 sm:$0xff]   ;;  %v4862_v31 = vld [vmem:[#allocation5 + $0xa60] ss:$16 sps:$4 sm:$0xff]  }
 0x191   :  { %2859 = vmatpush1.bf16.msra.mxu0 %v4770_v32  ;;  %3146 = vmatpush1.bf16.msra.mxu1 %v4773_v33  ;;  %v4865_v32 = vld [vmem:[#allocation5 + $0xa68] ss:$16 sps:$4 sm:$0xff]   ;;  %v4870_v33 = vld [vmem:[#allocation5 + $0xa84] ss:$16 sps:$4 sm:$0xff]  }
 0x192   :  { %2860 = vmatprep.subr.bf16.mxu0 %v4778_v34  ;;  %3147 = vmatprep.subr.bf16.mxu1 %v4781_v35  ;;  %v4873_v34 = vld [vmem:[#allocation5 + $0xa8c] ss:$16 sps:$4 sm:$0xff]   ;;  %v4868_v35 = vld [vmem:[#allocation5 + $0xa80] ss:$16 sps:$4 sm:$0xff]  }
 0x195   :  { %2861 = vmatpush1.bf16.msra.mxu0 %v4776_v36  ;;  %3148 = vmatpush1.bf16.msra.mxu1 %v4779_v37  ;;  %v4871_v36 = vld [vmem:[#allocation5 + $0xa88] ss:$16 sps:$4 sm:$0xff]   ;;  %v4876_v37 = vld [vmem:[#allocation5 + $0xaa4] ss:$16 sps:$4 sm:$0xff]  }
 0x196   :  { %2862 = vmatprep.subr.bf16.mxu0 %v4784_v38  ;;  %3149 = vmatprep.subr.bf16.mxu1 %v4787_v39  ;;  %v4879_v38 = vld [vmem:[#allocation5 + $0xaac] ss:$16 sps:$4 sm:$0xff]   ;;  %v4874_v39 = vld [vmem:[#allocation5 + $0xaa0] ss:$16 sps:$4 sm:$0xff]  }
 0x199   :  { %2863 = vmatpush1.bf16.msra.mxu0 %v4782_v40  ;;  %3150 = vmatpush1.bf16.msra.mxu1 %v4785_v41  ;;  %v4877_v40 = vld [vmem:[#allocation5 + $0xaa8] ss:$16 sps:$4 sm:$0xff]   ;;  %v4882_v41 = vld [vmem:[#allocation5 + $0xac4] ss:$16 sps:$4 sm:$0xff]  }
 0x19a   :  { %2864 = vmatprep.subr.bf16.mxu0 %v4790_v42  ;;  %3151 = vmatprep.subr.bf16.mxu1 %v4793_v43  ;;  %v4885_v42 = vld [vmem:[#allocation5 + $0xacc] ss:$16 sps:$4 sm:$0xff]   ;;  %v4880_v43 = vld [vmem:[#allocation5 + $0xac0] ss:$16 sps:$4 sm:$0xff]  }
 0x19d   :  { %2865 = vmatpush1.bf16.msra.mxu0 %v4788_v44  ;;  %3152 = vmatpush1.bf16.msra.mxu1 %v4791_v45  ;;  %v4883_v44 = vld [vmem:[#allocation5 + $0xac8] ss:$16 sps:$4 sm:$0xff]   ;;  %v4888_v45 = vld [vmem:[#allocation5 + $0xae4] ss:$16 sps:$4 sm:$0xff]  }
 0x19e   :  { %2866 = vmatprep.subr.bf16.mxu0 %v4796_v46  ;;  %3153 = vmatprep.subr.bf16.mxu1 %v4799_v47  ;;  %v4891_v46 = vld [vmem:[#allocation5 + $0xaec] ss:$16 sps:$4 sm:$0xff]   ;;  %v4886_v47 = vld [vmem:[#allocation5 + $0xae0] ss:$16 sps:$4 sm:$0xff]  }
 0x1a1   :  { %2867 = vmatpush1.bf16.msra.mxu0 %v4794_v48  ;;  %3154 = vmatpush1.bf16.msra.mxu1 %v4797_v49  ;;  %v4889_v48 = vld [vmem:[#allocation5 + $0xae8] ss:$16 sps:$4 sm:$0xff]   ;;  %v4894_v49 = vld [vmem:[#allocation5 + $0xb04] ss:$16 sps:$4 sm:$0xff]  }
 0x1a2   :  { %2868 = vmatprep.subr.bf16.mxu0 %v4802_v50  ;;  %3155 = vmatprep.subr.bf16.mxu1 %v4805_v51  ;;  %v4897_v50 = vld [vmem:[#allocation5 + $0xb0c] ss:$16 sps:$4 sm:$0xff]   ;;  %v4892_v51 = vld [vmem:[#allocation5 + $0xb00] ss:$16 sps:$4 sm:$0xff]  }
 0x1a5   :  { %2869 = vmatpush1.bf16.msra.mxu0 %v4800_v52  ;;  %3156 = vmatpush1.bf16.msra.mxu1 %v4803_v53  ;;  %v4895_v52 = vld [vmem:[#allocation5 + $0xb08] ss:$16 sps:$4 sm:$0xff]   ;;  %v4900_v53 = vld [vmem:[#allocation5 + $0xb24] ss:$16 sps:$4 sm:$0xff]  }
 0x1a6   :  { %2870 = vmatprep.subr.bf16.mxu0 %v4808_v54  ;;  %3157 = vmatprep.subr.bf16.mxu1 %v4811_v55  ;;  %v4903_v54 = vld [vmem:[#allocation5 + $0xb2c] ss:$16 sps:$4 sm:$0xff]   ;;  %v4898_v55 = vld [vmem:[#allocation5 + $0xb20] ss:$16 sps:$4 sm:$0xff]  }
 0x1a9   :  { %2871 = vmatpush1.bf16.msra.mxu0 %v4806_v56  ;;  %3158 = vmatpush1.bf16.msra.mxu1 %v4809_v57  ;;  %v4901_v56 = vld [vmem:[#allocation5 + $0xb28] ss:$16 sps:$4 sm:$0xff]   ;;  %v4906_v57 = vld [vmem:[#allocation5 + $0xb44] ss:$16 sps:$4 sm:$0xff]  }
 0x1aa   :  { %2872 = vmatprep.subr.bf16.mxu0 %v4814_v58  ;;  %3159 = vmatprep.subr.bf16.mxu1 %v4817_v59  ;;  %v4909_v58 = vld [vmem:[#allocation5 + $0xb4c] ss:$16 sps:$4 sm:$0xff]   ;;  %v4904_v59 = vld [vmem:[#allocation5 + $0xb40] ss:$16 sps:$4 sm:$0xff]  }
 0x1ad   :  { %2873 = vmatpush1.bf16.msra.mxu0 %v4812_v60  ;;  %3160 = vmatpush1.bf16.msra.mxu1 %v4815_v61  ;;  %v4907_v60 = vld [vmem:[#allocation5 + $0xb48] ss:$16 sps:$4 sm:$0xff]   ;;  %v4912_v61 = vld [vmem:[#allocation5 + $0xb64] ss:$16 sps:$4 sm:$0xff]  }
 0x1ae   :  { %2874 = vmatprep.subr.bf16.mxu0 %v4820_v62  ;;  %3161 = vmatprep.subr.bf16.mxu1 %v4823_v63  ;;  %v4915_v62 = vld [vmem:[#allocation5 + $0xb6c] ss:$16 sps:$4 sm:$0xff]   ;;  %v4910_v63 = vld [vmem:[#allocation5 + $0xb60] ss:$16 sps:$4 sm:$0xff]  }
 0x1b1   :  { %2875 = vmatpush1.bf16.msra.mxu0 %v4818_v0  ;;  %3162 = vmatpush1.bf16.msra.mxu1 %v4821_v1  ;;  %v4913_v0 = vld [vmem:[#allocation5 + $0xb68] ss:$16 sps:$4 sm:$0xff]   ;;  %v4918_v1 = vld [vmem:[#allocation5 + $0xb84] ss:$16 sps:$4 sm:$0xff]  }
 0x1b2   :  { %2876 = vmatprep.subr.bf16.mxu0 %v4826_v2  ;;  %3163 = vmatprep.subr.bf16.mxu1 %v4829_v3  ;;  %v4921_v2 = vld [vmem:[#allocation5 + $0xb8c] ss:$16 sps:$4 sm:$0xff]   ;;  %v4916_v3 = vld [vmem:[#allocation5 + $0xb80] ss:$16 sps:$4 sm:$0xff]  }
 0x1b5   :  { %2877 = vmatpush1.bf16.msra.mxu0 %v4824_v4  ;;  %3164 = vmatpush1.bf16.msra.mxu1 %v4827_v5  ;;  %v4919_v4 = vld [vmem:[#allocation5 + $0xb88] ss:$16 sps:$4 sm:$0xff]   ;;  %v4924_v5 = vld [vmem:[#allocation5 + $0xba4] ss:$16 sps:$4 sm:$0xff]  }
 0x1b6   :  { %2878 = vmatprep.subr.bf16.mxu0 %v4832_v6  ;;  %3165 = vmatprep.subr.bf16.mxu1 %v4835_v7  ;;  %v4927_v6 = vld [vmem:[#allocation5 + $0xbac] ss:$16 sps:$4 sm:$0xff]   ;;  %v4922_v7 = vld [vmem:[#allocation5 + $0xba0] ss:$16 sps:$4 sm:$0xff]  }
 0x1b9   :  { %2879 = vmatpush1.bf16.msra.mxu0 %v4830_v8  ;;  %3166 = vmatpush1.bf16.msra.mxu1 %v4833_v9  ;;  %v4925_v8 = vld [vmem:[#allocation5 + $0xba8] ss:$16 sps:$4 sm:$0xff]   ;;  %v4930_v9 = vld [vmem:[#allocation5 + $0xbc4] ss:$16 sps:$4 sm:$0xff]  }
 0x1ba   :  { %2880 = vmatprep.subr.bf16.mxu0 %v4838_v10  ;;  %3167 = vmatprep.subr.bf16.mxu1 %v4841_v12  ;;  %v4933_v10 = vld [vmem:[#allocation5 + $0xbcc] ss:$16 sps:$4 sm:$0xff]   ;;  %v4928_v12 = vld [vmem:[#allocation5 + $0xbc0] ss:$16 sps:$4 sm:$0xff]  }
 0x1bd   :  { %2881 = vmatpush1.bf16.msra.mxu0 %v4836_v13  ;;  %3168 = vmatpush1.bf16.msra.mxu1 %v4839_v15  ;;  %v4931_v13 = vld [vmem:[#allocation5 + $0xbc8] ss:$16 sps:$4 sm:$0xff]   ;;  %v4936_v15 = vld [vmem:[#allocation5 + $0xbe4] ss:$16 sps:$4 sm:$0xff]  }
 0x1be   :  { %2891 = vmatprep.subr.bf16.mxu0 %v4846_v16  ;;  %3178 = vmatprep.subr.bf16.mxu1 %v4849_v18  ;;  %v4939_v16 = vld [vmem:[#allocation5 + $0xbec] ss:$16 sps:$4 sm:$0xff]   ;;  %v4934_v18 = vld [vmem:[#allocation5 + $0xbe0] ss:$16 sps:$4 sm:$0xff]  }
 0x1c0   :  { %2883 = vmatmul.mubr.bf16.vlgmr.msra.gmra.mrb[0].mxu0 %v3751_v19  ;;  %3170 = vmatmul.mubr.bf16.vlgmr.msra.gmra.mrb[0].mxu1 %v3751_v19  ;;  %v4937_v19 = vld [vmem:[#allocation5 + $0xbe8] ss:$16 sps:$4 sm:$0xff]  }
 0x1c1   :  { %2892 = vmatpush1.bf16.msra.mxu0 %v4844_v11  ;;  %3179 = vmatpush1.bf16.msra.mxu1 %v4847_v21  ;;  %v4944_v11 = vld [vmem:[#allocation5 + $0xc04] ss:$16 sps:$4 sm:$0xff]   ;;  %v4947_v21 = vld [vmem:[#allocation5 + $0xc0c] ss:$16 sps:$4 sm:$0xff]  }
 0x1c2   :  { %2893 = vmatprep.subr.bf16.mxu0 %v4852_v22  ;;  %3180 = vmatprep.subr.bf16.mxu1 %v4855_v14  ;;  %v3753_v22 = vcombine.low %v5380_v20, %v5380_v20  ;;  %v4942_v14 = vld [vmem:[#allocation5 + $0xc00] ss:$16 sps:$4 sm:$0xff]  }
 0x1c3   :  { %2923 = vmatprep.mubr.bf16.mxu0 %v3754_v23  ;;  %3210 = vmatprep.mubr.bf16.mxu1 %v3754_v23  ;;  %v4945_v23 = vld [vmem:[#allocation5 + $0xc08] ss:$16 sps:$4 sm:$0xff]   ;;  %v4954_v20 = vld [vmem:[#allocation5 + $0xc40] ss:$16 sps:$4 sm:$0xff]  }
 0x1c5   :  { %2894 = vmatpush1.bf16.msra.mxu0 %v4850_v24  ;;  %3181 = vmatpush1.bf16.msra.mxu1 %v4853_v25  ;;  %v4950_v24 = vld [vmem:[#allocation5 + $0xc24] ss:$16 sps:$4 sm:$0xff]   ;;  %v4953_v25 = vld [vmem:[#allocation5 + $0xc2c] ss:$16 sps:$4 sm:$0xff]  }
 0x1c6   :  { %2895 = vmatprep.subr.bf16.mxu0 %v4858_v17  ;;  %3182 = vmatprep.subr.bf16.mxu1 %v4861_v26  ;;  %v4948_v17 = vld [vmem:[#allocation5 + $0xc20] ss:$16 sps:$4 sm:$0xff]   ;;  %v4951_v26 = vld [vmem:[#allocation5 + $0xc28] ss:$16 sps:$4 sm:$0xff]  }
 0x1c9   :  { %2896 = vmatpush1.bf16.msra.mxu0 %v4856_v27  ;;  %3183 = vmatpush1.bf16.msra.mxu1 %v4859_v28  ;;  %v4956_v27 = vld [vmem:[#allocation5 + $0xc44] ss:$16 sps:$4 sm:$0xff]   ;;  %v4959_v28 = vld [vmem:[#allocation5 + $0xc4c] ss:$16 sps:$4 sm:$0xff]  }
 0x1ca   :  { %2897 = vmatprep.subr.bf16.mxu0 %v4864_v29  ;;  %3184 = vmatprep.subr.bf16.mxu1 %v4867_v30  ;;  %v5228_v29 = vmov 0   ;;  %v4957_v30 = vld [vmem:[#allocation5 + $0xc48] ss:$16 sps:$4 sm:$0xff]  }
 0x1cd   :  { %2898 = vmatpush1.bf16.msra.mxu0 %v4862_v31  ;;  %3185 = vmatpush1.bf16.msra.mxu1 %v4865_v32  ;;  %v4962_v31 = vld [vmem:[#allocation5 + $0xc64] ss:$16 sps:$4 sm:$0xff]   ;;  %v4965_v32 = vld [vmem:[#allocation5 + $0xc6c] ss:$16 sps:$4 sm:$0xff]  }
 0x1ce   :  { %2899 = vmatprep.subr.bf16.mxu0 %v4870_v33  ;;  %3186 = vmatprep.subr.bf16.mxu1 %v4873_v34  ;;  %v4960_v33 = vld [vmem:[#allocation5 + $0xc60] ss:$16 sps:$4 sm:$0xff]   ;;  %v4963_v34 = vld [vmem:[#allocation5 + $0xc68] ss:$16 sps:$4 sm:$0xff]  }
 0x1d1   :  { %2900 = vmatpush1.bf16.msra.mxu0 %v4868_v35  ;;  %3187 = vmatpush1.bf16.msra.mxu1 %v4871_v36  ;;  %v4968_v35 = vld [vmem:[#allocation5 + $0xc84] ss:$16 sps:$4 sm:$0xff]   ;;  %v4971_v36 = vld [vmem:[#allocation5 + $0xc8c] ss:$16 sps:$4 sm:$0xff]  }
 0x1d2   :  { %2901 = vmatprep.subr.bf16.mxu0 %v4876_v37  ;;  %3188 = vmatprep.subr.bf16.mxu1 %v4879_v38  ;;  %v4966_v37 = vld [vmem:[#allocation5 + $0xc80] ss:$16 sps:$4 sm:$0xff]   ;;  %v4969_v38 = vld [vmem:[#allocation5 + $0xc88] ss:$16 sps:$4 sm:$0xff]  }
 0x1d5   :  { %2902 = vmatpush1.bf16.msra.mxu0 %v4874_v39  ;;  %3189 = vmatpush1.bf16.msra.mxu1 %v4877_v40  ;;  %v4974_v39 = vld [vmem:[#allocation5 + $0xca4] ss:$16 sps:$4 sm:$0xff]   ;;  %v4977_v40 = vld [vmem:[#allocation5 + $0xcac] ss:$16 sps:$4 sm:$0xff]  }
 0x1d6   :  { %2903 = vmatprep.subr.bf16.mxu0 %v4882_v41  ;;  %3190 = vmatprep.subr.bf16.mxu1 %v4885_v42  ;;  %v4972_v41 = vld [vmem:[#allocation5 + $0xca0] ss:$16 sps:$4 sm:$0xff]   ;;  %v4975_v42 = vld [vmem:[#allocation5 + $0xca8] ss:$16 sps:$4 sm:$0xff]  }
 0x1d9   :  { %2904 = vmatpush1.bf16.msra.mxu0 %v4880_v43  ;;  %3191 = vmatpush1.bf16.msra.mxu1 %v4883_v44  ;;  %v4980_v43 = vld [vmem:[#allocation5 + $0xcc4] ss:$16 sps:$4 sm:$0xff]   ;;  %v4983_v44 = vld [vmem:[#allocation5 + $0xccc] ss:$16 sps:$4 sm:$0xff]  }
 0x1da   :  { %2905 = vmatprep.subr.bf16.mxu0 %v4888_v45  ;;  %3192 = vmatprep.subr.bf16.mxu1 %v4891_v46  ;;  %v4978_v45 = vld [vmem:[#allocation5 + $0xcc0] ss:$16 sps:$4 sm:$0xff]   ;;  %v4981_v46 = vld [vmem:[#allocation5 + $0xcc8] ss:$16 sps:$4 sm:$0xff]  }
 0x1dd   :  { %2906 = vmatpush1.bf16.msra.mxu0 %v4886_v47  ;;  %3193 = vmatpush1.bf16.msra.mxu1 %v4889_v48  ;;  %v4986_v47 = vld [vmem:[#allocation5 + $0xce4] ss:$16 sps:$4 sm:$0xff]   ;;  %v4989_v48 = vld [vmem:[#allocation5 + $0xcec] ss:$16 sps:$4 sm:$0xff]  }
 0x1de   :  { %2907 = vmatprep.subr.bf16.mxu0 %v4894_v49  ;;  %3194 = vmatprep.subr.bf16.mxu1 %v4897_v50  ;;  %v4984_v49 = vld [vmem:[#allocation5 + $0xce0] ss:$16 sps:$4 sm:$0xff]   ;;  %v4987_v50 = vld [vmem:[#allocation5 + $0xce8] ss:$16 sps:$4 sm:$0xff]  }
 0x1e1   :  { %2908 = vmatpush1.bf16.msra.mxu0 %v4892_v51  ;;  %3195 = vmatpush1.bf16.msra.mxu1 %v4895_v52  ;;  %v4991_v51 = vld [vmem:[#allocation8 + $0x40] sm:$0xff]  }
 0x1e2   :  { %2909 = vmatprep.subr.bf16.mxu0 %v4900_v53  ;;  %3196 = vmatprep.subr.bf16.mxu1 %v4903_v54  ;;  %v4992_v52 = vld [vmem:[#allocation8 + $0xc0] sm:$0xff]   ;;  %v4990_v53 = vld [vmem:[#allocation2 + $0x30] ss:$0 sps:$4 sm:$0xff]  }
 0x1e3   :  { %v4993_v54 = vld [vmem:[#allocation8] sm:$0xff]  }
 0x1e5   :  { %2910 = vmatpush1.bf16.msra.mxu0 %v4898_v55  ;;  %3197 = vmatpush1.bf16.msra.mxu1 %v4901_v56  ;;  %v4994_v55 = vld [vmem:[#allocation8 + $0x80] sm:$0xff]   ;;  %v4995_v56 = vld [vmem:[#allocation8 + $0x48] sm:$0xff]  }
 0x1e6   :  { %2911 = vmatprep.subr.bf16.mxu0 %v4906_v57  ;;  %3198 = vmatprep.subr.bf16.mxu1 %v4909_v58  ;;  %v4996_v57 = vld [vmem:[#allocation8 + $0xc8] sm:$0xff]  }
 0x1e7   :  { %v4997_v58 = vld [vmem:[#allocation8 + $0x8] sm:$0xff]  }
 0x1e9   :  { %2912 = vmatpush1.bf16.msra.mxu0 %v4904_v59  ;;  %3199 = vmatpush1.bf16.msra.mxu1 %v4907_v60  ;;  %v4998_v59 = vld [vmem:[#allocation8 + $0x88] sm:$0xff]   ;;  %v4999_v60 = vld [vmem:[#allocation8 + $0x50] sm:$0xff]  }
 0x1ea   :  { %2913 = vmatprep.subr.bf16.mxu0 %v4912_v61  ;;  %3200 = vmatprep.subr.bf16.mxu1 %v4915_v62  ;;  %v5000_v61 = vld [vmem:[#allocation8 + $0xd0] sm:$0xff]  }
 0x1eb   :  { %v5001_v62 = vld [vmem:[#allocation8 + $0x10] sm:$0xff]  }
 0x1ed   :  { %2914 = vmatpush1.bf16.msra.mxu0 %v4910_v63  ;;  %3201 = vmatpush1.bf16.msra.mxu1 %v4913_v0  ;;  %v5002_v63 = vld [vmem:[#allocation8 + $0x90] sm:$0xff]   ;;  %v5003_v0 = vld [vmem:[#allocation8 + $0x58] sm:$0xff]  }
 0x1ee   :  { %2915 = vmatprep.subr.bf16.mxu0 %v4918_v1  ;;  %3202 = vmatprep.subr.bf16.mxu1 %v4921_v2  ;;  %v5004_v1 = vld [vmem:[#allocation8 + $0xd8] sm:$0xff]  }
 0x1ef   :  { %v5005_v2 = vld [vmem:[#allocation8 + $0x18] sm:$0xff]  }
 0x1f1   :  { %2916 = vmatpush1.bf16.msra.mxu0 %v4916_v3  ;;  %3203 = vmatpush1.bf16.msra.mxu1 %v4919_v4  ;;  %v5006_v3 = vld [vmem:[#allocation8 + $0x98] sm:$0xff]   ;;  %v5007_v4 = vld [vmem:[#allocation8 + $0x60] sm:$0xff]  }
 0x1f2   :  { %2917 = vmatprep.subr.bf16.mxu0 %v4924_v5  ;;  %3204 = vmatprep.subr.bf16.mxu1 %v4927_v6  ;;  %v5008_v5 = vld [vmem:[#allocation8 + $0xe0] sm:$0xff]  }
 0x1f3   :  { %v5009_v6 = vld [vmem:[#allocation8 + $0x20] sm:$0xff]  }
 0x1f5   :  { %2918 = vmatpush1.bf16.msra.mxu0 %v4922_v7  ;;  %3205 = vmatpush1.bf16.msra.mxu1 %v4925_v8  ;;  %v5010_v7 = vld [vmem:[#allocation8 + $0xa0] sm:$0xff]   ;;  %v5011_v8 = vld [vmem:[#allocation8 + $0x68] sm:$0xff]  }
 0x1f6   :  { %2919 = vmatprep.subr.bf16.mxu0 %v4930_v9  ;;  %3206 = vmatprep.subr.bf16.mxu1 %v4933_v10  ;;  %v5012_v9 = vld [vmem:[#allocation8 + $0xe8] sm:$0xff]  }
 0x1f7   :  { %v5013_v10 = vld [vmem:[#allocation8 + $0x28] sm:$0xff]  }
 0x1f9   :  { %2920 = vmatpush1.bf16.msra.mxu0 %v4928_v12  ;;  %3207 = vmatpush1.bf16.msra.mxu1 %v4931_v13  ;;  %v5014_v12 = vld [vmem:[#allocation8 + $0xa8] sm:$0xff]   ;;  %v5015_v13 = vld [vmem:[#allocation8 + $0x70] sm:$0xff]  }
 0x1fa   :  { %2921 = vmatprep.subr.bf16.mxu0 %v4936_v15  ;;  %3208 = vmatprep.subr.bf16.mxu1 %v4939_v16  ;;  %v5016_v15 = vld [vmem:[#allocation8 + $0xf0] sm:$0xff]  }
 0x1fb   :  { %v5017_v16 = vld [vmem:[#allocation8 + $0x30] sm:$0xff]  }
 0x1fd   :  { %2922 = vmatpush1.bf16.msra.mxu0 %v4934_v18  ;;  %3209 = vmatpush1.bf16.msra.mxu1 %v4937_v19  ;;  %v5018_v18 = vld [vmem:[#allocation8 + $0xb0] sm:$0xff]   ;;  %v5019_v19 = vld [vmem:[#allocation8 + $0x78] sm:$0xff]  }
 0x1fe   :  { %2932 = vmatprep.subr.bf16.mxu0 %v4944_v11  ;;  %3219 = vmatprep.subr.bf16.mxu1 %v4947_v21  ;;  %v5020_v11 = vld [vmem:[#allocation8 + $0xf8] sm:$0xff]  }
 0x1ff   :  { %v5021_v21 = vld [vmem:[#allocation8 + $0x38] sm:$0xff]  }
 0x200   :  { %2924 = vmatmul.mubr.bf16.vlgmr.msra.gmra.mrb[0].mxu0 %v3753_v22  ;;  %3211 = vmatmul.mubr.bf16.vlgmr.msra.gmra.mrb[0].mxu1 %v3753_v22  ;;  %v5022_v22 = vld [vmem:[#allocation8 + $0xb8] sm:$0xff]  }
 0x201   :  { %2933 = vmatpush1.bf16.msra.mxu0 %v4942_v14  ;;  %3220 = vmatpush1.bf16.msra.mxu1 %v4945_v23  ;;  %v5229_v14 = vmov 0.0   ;;  %v540_v23 = vlaneseq }
 0x202   :  { %2934 = vmatprep.subr.bf16.mxu0 %v4950_v24  ;;  %3221 = vmatprep.subr.bf16.mxu1 %v4953_v25 }
 0x203   :  { %2964 = vmatprep.mubr.bf16.mxu0 %v5228_v29  ;;  %3251 = vmatprep.mubr.bf16.mxu1 %v5228_v29  ;;  %v541_v24 = vshrl.u32 %v540_v23, 7 }
 0x205   :  { %2935 = vmatpush1.bf16.msra.mxu0 %v4948_v17  ;;  %3222 = vmatpush1.bf16.msra.mxu1 %v4951_v26  ;;  %v542_v25 = vsub.s32 0, %v541_v24  ;;  %v550_v17 = vsub.s32 2, %v541_v24  ;;  %v538_v26 = vld [vmem:[#allocation7] sm:$0xf] }
 0x206   :  { %2936 = vmatprep.subr.bf16.mxu0 %v4956_v27  ;;  %3223 = vmatprep.subr.bf16.mxu1 %v4959_v28  ;;  %v546_v27 = vsub.s32 1, %v541_v24  ;;  %v554_v28 = vsub.s32 3, %v541_v24 }
 0x207   :  { %v543_v29 = vrot.slane %v538_v26, %v542_v25 }
 0x209   :  { %2937 = vmatpush1.bf16.msra.mxu0 %v4954_v20  ;;  %3224 = vmatpush1.bf16.msra.mxu1 %v4957_v30  ;;  %v551_v20 = vrot.slane %v538_v26, %v550_v17  ;;  %v547_v30 = vrot.slane %v538_v26, %v546_v27 }
 0x20a   :  { %2938 = vmatprep.subr.bf16.mxu0 %v4962_v31  ;;  %3225 = vmatprep.subr.bf16.mxu1 %v4965_v32  ;;  %v555_v31 = vrot.slane %v538_v26, %v554_v28 }
 0x20d   :  { %2939 = vmatpush1.bf16.msra.mxu0 %v4960_v33  ;;  %3226 = vmatpush1.bf16.msra.mxu1 %v4963_v34 }
 0x20e   :  { %2940 = vmatprep.subr.bf16.mxu0 %v4968_v35  ;;  %3227 = vmatprep.subr.bf16.mxu1 %v4971_v36 }
 0x211   :  { %2941 = vmatpush1.bf16.msra.mxu0 %v4966_v37  ;;  %3228 = vmatpush1.bf16.msra.mxu1 %v4969_v38 }
 0x212   :  { %2942 = vmatprep.subr.bf16.mxu0 %v4974_v39  ;;  %3229 = vmatprep.subr.bf16.mxu1 %v4977_v40 }
 0x215   :  { %2943 = vmatpush1.bf16.msra.mxu0 %v4972_v41  ;;  %3230 = vmatpush1.bf16.msra.mxu1 %v4975_v42 }
 0x216   :  { %2944 = vmatprep.subr.bf16.mxu0 %v4980_v43  ;;  %3231 = vmatprep.subr.bf16.mxu1 %v4983_v44 }
 0x219   :  { %2945 = vmatpush1.bf16.msra.mxu0 %v4978_v45  ;;  %3232 = vmatpush1.bf16.msra.mxu1 %v4981_v46 }
 0x21a   :  { %2946 = vmatprep.subr.bf16.mxu0 %v4986_v47  ;;  %3233 = vmatprep.subr.bf16.mxu1 %v4989_v48 }
 0x21d   :  { %2947 = vmatpush1.bf16.msra.mxu0 %v4984_v49  ;;  %3234 = vmatpush1.bf16.msra.mxu1 %v4987_v50  ;;  %v5023_v50 = vld [vmem:[#allocation11] sm:$0xff]  }
 0x21e   :  { %4214 = vmatprep.subr.bf16.mxu0 %v4991_v51  ;;  %4236 = vmatprep.subr.bf16.mxu1 %v4992_v52 }
 0x220   :  { %2965 = vmatmul.mubr.bf16.vlgmr.msra.gmra.mrb[0].mxu0 %v4990_v53  ;;  %3252 = vmatmul.mubr.bf16.vlgmr.msra.gmra.mrb[0].mxu1 %v4990_v53  ;;  %v5024_v53 = vld [vmem:[#allocation11 + $0x8] sm:$0xff]  }
 0x221   :  { %4215 = vmatpush3.bf16.msra.mxu0 %v4993_v54  ;;  %4237 = vmatpush3.bf16.msra.mxu1 %v4994_v55  ;;  %v5025_v54 = vld [vmem:[#allocation11 + $0x10] sm:$0xff]   ;;  %v5026_v55 = vld [vmem:[#allocation11 + $0x18] sm:$0xff]  }
 0x222   :  { %4216 = vmatprep.subr.bf16.mxu0 %v4995_v56  ;;  %4238 = vmatprep.subr.bf16.mxu1 %v4996_v57  ;;  %v5027_v56 = vld [vmem:[#allocation11 + $0x20] sm:$0xff]   ;;  %v5028_v57 = vld [vmem:[#allocation11 + $0x28] sm:$0xff]  }
 0x225   :  { %4217 = vmatpush3.bf16.msra.mxu0 %v4997_v58  ;;  %4239 = vmatpush3.bf16.msra.mxu1 %v4998_v59  ;;  %v5029_v58 = vld [vmem:[#allocation11 + $0x30] sm:$0xff]   ;;  %v5030_v59 = vld [vmem:[#allocation11 + $0x38] sm:$0xff]  }
 0x226   :  { %4218 = vmatprep.subr.bf16.mxu0 %v4999_v60  ;;  %4240 = vmatprep.subr.bf16.mxu1 %v5000_v61 }
 0x229   :  { %4219 = vmatpush3.bf16.msra.mxu0 %v5001_v62  ;;  %4241 = vmatpush3.bf16.msra.mxu1 %v5002_v63  ;;  %v4172_v62 = vld [vmem:[#allocation10] ss:$0 sm:$0xff] }
 0x22a   :  { %4220 = vmatprep.subr.bf16.mxu0 %v5003_v0  ;;  %4242 = vmatprep.subr.bf16.mxu1 %v5004_v1 }
 0x22d   :  { %4221 = vmatpush3.bf16.msra.mxu0 %v5005_v2  ;;  %4243 = vmatpush3.bf16.msra.mxu1 %v5006_v3 }
 0x22e   :  { %4222 = vmatprep.subr.bf16.mxu0 %v5007_v4  ;;  %4244 = vmatprep.subr.bf16.mxu1 %v5008_v5 }
 0x231   :  { %4223 = vmatpush3.bf16.msra.mxu0 %v5009_v6  ;;  %4245 = vmatpush3.bf16.msra.mxu1 %v5010_v7 }
 0x232   :  { %4224 = vmatprep.subr.bf16.mxu0 %v5011_v8  ;;  %4246 = vmatprep.subr.bf16.mxu1 %v5012_v9 }
 0x235   :  { %4225 = vmatpush3.bf16.msra.mxu0 %v5013_v10  ;;  %4247 = vmatpush3.bf16.msra.mxu1 %v5014_v12  ;;  %v4205_v12 = vld [vmem:[#allocation13] ss:$0 sm:$0xff] }
 0x236   :  { %4226 = vmatprep.subr.bf16.mxu0 %v5015_v13  ;;  %4248 = vmatprep.subr.bf16.mxu1 %v5016_v15 }
 0x239   :  { %4227 = vmatpush3.bf16.msra.mxu0 %v5017_v16  ;;  %4249 = vmatpush3.bf16.msra.mxu1 %v5018_v18 }
 0x23a   :  { %4228 = vmatprep.subr.bf16.mxu0 %v5019_v19  ;;  %4250 = vmatprep.subr.bf16.mxu1 %v5020_v11 }
 0x23d   :  { %4229 = vmatpush3.bf16.msra.mxu0 %v5021_v21  ;;  %4251 = vmatpush3.bf16.msra.mxu1 %v5022_v22 }
 0x23e   :  { %4267 = vmatprep.subr.bf16.mxu0 %v5229_v14 }
 0x2f3   :  { %v2966_v32 = vpop.f32.mrb[0].mxu0  ;;  %v3253_v33 = vpop.f32.mrb[0].mxu1 }
 0x2f4   :  { %v4287_v34 = vadd.f32 %v2966_v32, %v543_v29  ;;  %v4289_v35 = vadd.f32 %v3253_v33, %v551_v20  ;;  %v2968_v36 = vpop.f32.mrb[1].mxu0  ;;  %v3255_v37 = vpop.f32.mrb[1].mxu1 }
 0x2f5   :  { %v4288_v38 = vadd.f32 %v2968_v36, %v547_v30  ;;  %v4290_v39 = vadd.f32 %v3255_v37, %v555_v31  ;;  %v2970_v40 = vpop.f32.mrb[2].mxu0  ;;  %v3257_v41 = vpop.f32.mrb[2].mxu1 }
 0x2f6   :  { %v3260_v42 = vmax.f32 %v4287_v34, 0.0  ;;  %v3262_v43 = vmax.f32 %v4289_v35, 0.0  ;;  %v2971_v44 = vpop.f32.mrb[3].mxu0  ;;  %v3258_v45 = vpop.f32.mrb[3].mxu1 }
 0x2f7   :  { %v3261_v46 = vmax.f32 %v4288_v38, 0.0  ;;  %v3263_v47 = vmax.f32 %v4290_v39, 0.0 }
 0x2f8   :  { %v3264_v51 = vpack.c.bf16 %v3260_v42, %v3260_v42  ;;  %v3266_v52 = vpack.c.bf16 %v3262_v43, %v3262_v43 }
 0x2f9   :  { %v3265_v48 = vpack.c.bf16 %v3261_v46, %v3261_v46  ;;  %v3267_v49 = vpack.c.bf16 %v3263_v47, %v3263_v47 }
 0x2fb   :  { %3563 = vmatprep.mubr.bf16.mxu0 %v3265_v48  ;;  %3603 = vmatprep.mubr.bf16.mxu1 %v3267_v49 }
 0x2fc   :  { %3564 = vmatmul.mubr.bf16.vlgmr.msra.gmra.mrb[4].mxu0 %v3264_v51  ;;  %3604 = vmatmul.mubr.bf16.vlgmr.msra.gmra.mrb[4].mxu1 %v3266_v52 }
 0x2fd   :  { %4268 = vmatpush3.bf16.msra.mxu0 %v5023_v50  ;;  %4283 = vmatprep.mubr.msk.bf16.mxu0 %vm5230_vm0, %v5229_v14 }
 0x2fe   :  { %4269 = vmatprep.subr.bf16.mxu0 %v5229_v14 }
 0x301   :  { %4270 = vmatpush3.bf16.msra.mxu0 %v5024_v53 }
 0x302   :  { %4271 = vmatprep.subr.bf16.mxu0 %v5229_v14 }
 0x305   :  { %4272 = vmatpush3.bf16.msra.mxu0 %v5025_v54 }
 0x306   :  { %4273 = vmatprep.subr.bf16.mxu0 %v5229_v14 }
 0x309   :  { %4274 = vmatpush3.bf16.msra.mxu0 %v5026_v55 }
 0x30a   :  { %4275 = vmatprep.subr.bf16.mxu0 %v5229_v14 }
 0x30d   :  { %4276 = vmatpush3.bf16.msra.mxu0 %v5027_v56 }
 0x30e   :  { %4277 = vmatprep.subr.bf16.mxu0 %v5229_v14 }
 0x311   :  { %4278 = vmatpush3.bf16.msra.mxu0 %v5028_v57 }
 0x312   :  { %4279 = vmatprep.subr.bf16.mxu0 %v5229_v14 }
 0x315   :  { %4280 = vmatpush3.bf16.msra.mxu0 %v5029_v58 }
 0x316   :  { %4281 = vmatprep.subr.bf16.mxu0 %v5229_v14 }
 0x319   :  { %4282 = vmatpush3.bf16.msra.mxu0 %v5030_v59 }
 0x3cf   :  { %v4230_v60 = vpop.f32.mrb[4].mxu0  ;;  %v4252_v61 = vpop.f32.mrb[4].mxu1 }
 0x3d0   :  { %v4231_v63 = vpop.f32.mrb[5].mxu0  ;;  %v4253_v0 = vpop.f32.mrb[5].mxu1 }
 0x3d1   :  { %v4232_v1 = vadd.f32 %v4231_v63, %v4230_v60  ;;  %v4254_v2 = vadd.f32 %v4253_v0, %v4252_v61  ;;  %v4233_v3 = vpop.f32.mrb[6].mxu0  ;;  %v4255_v4 = vpop.f32.mrb[6].mxu1 }
 0x3d2   :  { %v4234_v5 = vpop.f32.mrb[7].mxu0  ;;  %v4256_v6 = vpop.f32.mrb[7].mxu1 }
 0x3d3   :  { %v3566_v7 = vadd.f32 %v4232_v1, %v4172_v62 }
 0x3d5   :  { %v3606_v8 = vadd.f32 %v4254_v2, %v3566_v7 }
 0x3d7   :  { %v3611_v9 = vmax.f32 %v3606_v8, 0.0 }
 0x3d9   :  { %v3612_v10 = vpack.c.bf16 %v3611_v9, %v3611_v9 }
 0x3db   :  { %4284 = vmatmul.mubr.bf16.vlgmr.msra.gmra.mrb[8].mxu0 %v3612_v10 }
 0x4ae   :  { %v3718_v13 = vpop.f32.mrb[8].mxu0 }
 0x4af   :  { %v3719_v15 = vadd.f32 %v4205_v12, %v3718_v13  ;;  %v4285_v16 = vpop.f32.mrb[9].mxu0 }
 0x4b0   :  { %v3721_v18 = vpop.f32.mrb[10].mxu0 }
 0x4b1   :  { %3724 = vst [vmem:[#allocation14] sm:$0xff] %v3719_v15  ;;  %v4286_v19 = vpop.f32.mrb[11].mxu0 }
 0x4b2   :  { %5196 = shalt.err (!%p5193_p4)
}
 0x4b3   :  { %s5197_s15 = scalar_lea.hbm %s5405_s7, 128 }
 0x4b4   :  { %p5198_p5 = scmp.ne.s32.totalorder %s5405_s7, %s5197_s15  ;;  %p5201_p6 = scmp.lt.u32.totalorder %s5197_s15, %s5405_s7 }
 0x4b6   :  { %p5203_p7 = pnand %p5201_p6, %p5198_p5 }
 0x4b8   :  { %5206 = shalt.err (!%p5203_p7)
}
 0x4b9   :  { %3734 = dma.vmem_to_hbm [thread:$0]  %s3732_s13, 128, %s5405_s7, [#allocation4]  }
 0x4ba   :  { %5215 = dma.done.wait [#allocation4], 128  }
 0x4bb   :  { %5216 = vsyncadd [#allocation4], 4294967168 }
 0x4bc   :  { %3738 = vsyncpa [#allocation3], 1 }
 0x4bd   :  { %3739 = vsyncpa [#allocation6], 1 }
 0x4be   :  { %3740 = vsyncpa [#allocation9], 1 }
 0x4bf   :  { %3741 = vsyncpa [#allocation12], 1 }
 0x4c0   :  { %3742 = vsyncpa [#allocation4], 1 }

// kernel: tpu_custom_call.1
= control target key start
LH: loop header
LB: loop body
LE: loop exit
PB: predicated region body
PF: predicated region fallthrough
CT: control target
= control target key end

     0   :  { %12 = vsyncpa [#allocation3], 0  ;;  %s5398_s0 = inlined_call_operand.hbm [shape: bf16[8,1664], index: 0, kind: input, shape index: {}]   ;;  %s5399_s1 = inlined_call_operand.hbm [shape: bf16[1664,512], index: 1, kind: input, shape index: {}]   ;;  %s5400_s2 = inlined_call_operand.hbm [shape: f32[1,512], index: 2, kind: input, shape index: {}]   ;;  %s5401_s3 = inlined_call_operand.hbm [shape: bf16[512,128], index: 3, kind: input, shape index: {}]   ;;  %s5402_s4 = inlined_call_operand.hbm [shape: f32[1,128], index: 4, kind: input, shape index: {}]   ;;  %s5403_s5 = inlined_call_operand.hbm [shape: bf16[128,128], index: 5, kind: input, shape index: {}]   ;;  %s5404_s6 = inlined_call_operand.hbm [shape: f32[1,128], index: 6, kind: input, shape index: {}]   ;;  %s5405_s7 = inlined_call_operand.hbm [shape: f32[8,128], index: 7, kind: output, shape index: {}]  }
   0x1   :  { %13 = vsyncpa [#allocation6], 0 }
   0x2   :  { %14 = vsyncpa [#allocation9], 0 }
   0x3   :  { %15 = vsyncpa [#allocation12], 0 }
   0x4   :  { %16 = vsyncpa [#allocation4], 0  ;;  %s5217_s24 = smov [#allocation5]   ;;  %s5031_s28 = scalar_lea.hbm %s5399_s1, 53248 }
   0x5   :  { %s32_s25 = sshll.u32 %s5217_s24, 4  ;;  %p5032_p0 = scmp.ne.s32.totalorder %s5399_s1, %s5031_s28  ;;  %s33_s25 = int_to_ptr.vmem [resolvable:$true] %s32_s25 }
   0x6   :  { %p5035_p1 = scmp.lt.u32.totalorder %s5031_s28, %s5399_s1 }
   0x8   :  { %p5037_p2 = pnand %p5035_p1, %p5032_p0 }
   0xa   :  { %5040 = shalt.err (!%p5037_p2)
}
   0xb   :  { %s5041_s10 = scalar_lea.vmem %s33_s25, 53248  ;;  %p5046_p4 = scmp.lt.s32.totalorder %s33_s25, %s33_s25 }
   0xc   :  { %p5042_p3 = scmp.ne.s32.totalorder %s33_s25, %s5041_s10  ;;  %p5047_p5 = scmp.lt.s32.totalorder %s5041_s10, %s5041_s10 }
   0xe   :  { %p5048_p6 = por %p5047_p5, %p5046_p4 }
  0x10   :  { %p5049_p7 = pnand %p5048_p6, %p5042_p3 }
  0x12   :  { %5052 = shalt.err (!%p5049_p7)
}
  0x13   :  { %s5218_s11 = smov 256   ;;  %s5219_s12 = smov 16  }
  0x14   :  { %38 = dma.hbm_to_vmem [thread:$0]  %s5399_s1, 53248, %s33_s25, [#allocation6], %s5218_s11, %s5218_s11, %s5219_s12  }
  0x15   :  { %s5220_s15 = smov [#allocation8]   ;;  %s5053_s19 = scalar_lea.hbm %s5401_s3, 4096 }
  0x16   :  { %s54_s16 = sshll.u32 %s5220_s15, 4  ;;  %p5054_p8 = scmp.ne.s32.totalorder %s5401_s3, %s5053_s19  ;;  %s55_s16 = int_to_ptr.vmem [resolvable:$true] %s54_s16 }
  0x17   :  { %p5057_p9 = scmp.lt.u32.totalorder %s5053_s19, %s5401_s3 }
  0x19   :  { %p5059_p10 = pnand %p5057_p9, %p5054_p8 }
  0x1b   :  { %5062 = shalt.err (!%p5059_p10)
}
  0x1c   :  { %s5063_s24 = scalar_lea.vmem %s55_s16, 4096  ;;  %p5068_p12 = scmp.lt.s32.totalorder %s55_s16, %s55_s16 }
  0x1d   :  { %p5064_p11 = scmp.ne.s32.totalorder %s55_s16, %s5063_s24  ;;  %p5069_p13 = scmp.lt.s32.totalorder %s5063_s24, %s5063_s24 }
  0x1f   :  { %p5070_p0 = por %p5069_p13, %p5068_p12 }
  0x21   :  { %p5071_p1 = pnand %p5070_p0, %p5064_p11 }
  0x23   :  { %5074 = shalt.err (!%p5071_p1)
}
  0x24   :  { %s5221_s1 = smov 64   ;;  %s5222_s25 = smov 4  }
  0x25   :  { %60 = dma.hbm_to_vmem [thread:$0]  %s5401_s3, 4096, %s55_s16, [#allocation9], %s5221_s1, %s5221_s1, %s5222_s25  }
  0x26   :  { %s5223_s28 = smov [#allocation11]   ;;  %s5224_s30 = smov [#allocation2]  }
  0x27   :  { %s76_s29 = sshll.u32 %s5223_s28, 4  ;;  %s23_s8 = sshll.u32 %s5224_s30, 4  ;;  %s77_s29 = int_to_ptr.vmem [resolvable:$true] %s76_s29  ;;  %s24_s8 = int_to_ptr.vmem [resolvable:$true] %s23_s8 }
  0x28   :  { %s5075_s11 = scalar_lea.hbm %s5403_s5, 1024 }
  0x29   :  { %p5076_p2 = scmp.ne.s32.totalorder %s5403_s5, %s5075_s11  ;;  %p5079_p3 = scmp.lt.u32.totalorder %s5075_s11, %s5403_s5 }
  0x2b   :  { %p5081_p4 = pnand %p5079_p3, %p5076_p2 }
  0x2d   :  { %5084 = shalt.err (!%p5081_p4)
}
  0x2e   :  { %s5085_s3 = scalar_lea.vmem %s77_s29, 1024  ;;  %p5090_p6 = scmp.lt.s32.totalorder %s77_s29, %s77_s29 }
  0x2f   :  { %p5086_p5 = scmp.ne.s32.totalorder %s77_s29, %s5085_s3  ;;  %p5091_p7 = scmp.lt.s32.totalorder %s5085_s3, %s5085_s3 }
  0x31   :  { %p5092_p8 = por %p5091_p7, %p5090_p6 }
  0x33   :  { %p5093_p9 = pnand %p5092_p8, %p5086_p5 }
  0x35   :  { %5096 = shalt.err (!%p5093_p9)
}
  0x36   :  { %82 = dma.hbm_to_vmem [thread:$0]  %s5403_s5, 1024, %s77_s29, [#allocation12], %s5221_s1, %s5221_s1, %s5222_s25  }
  0x37   :  { %s5097_s20 = scalar_lea.hbm %s5398_s0, 832 }
  0x38   :  { %p5098_p10 = scmp.ne.s32.totalorder %s5398_s0, %s5097_s20  ;;  %p5101_p11 = scmp.lt.u32.totalorder %s5097_s20, %s5398_s0 }
  0x3a   :  { %p5103_p12 = pnand %p5101_p11, %p5098_p10 }
  0x3c   :  { %5106 = shalt.err (!%p5103_p12)
}
  0x3d   :  { %s5107_s26 = scalar_lea.vmem %s24_s8, 832  ;;  %p5112_p0 = scmp.lt.s32.totalorder %s24_s8, %s24_s8 }
  0x3e   :  { %p5108_p13 = scmp.ne.s32.totalorder %s24_s8, %s5107_s26  ;;  %p5113_p1 = scmp.lt.s32.totalorder %s5107_s26, %s5107_s26 }
  0x40   :  { %p5114_p2 = por %p5113_p1, %p5112_p0 }
  0x42   :  { %p5115_p3 = pnand %p5114_p2, %p5108_p13 }
  0x44   :  { %5118 = shalt.err (!%p5115_p3)
}
  0x45   :  { %26 = dma.hbm_to_vmem [thread:$0]  %s5398_s0, 832, %s24_s8, [#allocation3]  }
  0x46   :  { %s5225_s25 = smov [#allocation7]   ;;  %s5226_s28 = smov [#allocation10]  }
  0x47   :  { %s45_s27 = sshll.u32 %s5225_s25, 4  ;;  %s67_s29 = sshll.u32 %s5226_s28, 4  ;;  %s46_s27 = int_to_ptr.vmem [resolvable:$true] %s45_s27  ;;  %s68_s29 = int_to_ptr.vmem [resolvable:$true] %s67_s29 }
  0x48   :  { %s5119_s10 = scalar_lea.hbm %s5400_s2, 64 }
  0x49   :  { %p5120_p4 = scmp.ne.s32.totalorder %s5400_s2, %s5119_s10  ;;  %p5123_p5 = scmp.lt.u32.totalorder %s5119_s10, %s5400_s2 }
  0x4b   :  { %p5125_p6 = pnand %p5123_p5, %p5120_p4 }
  0x4d   :  { %5128 = shalt.err (!%p5125_p6)
}
  0x4e   :  { %s5129_s0 = scalar_lea.vmem %s46_s27, 64  ;;  %p5134_p8 = scmp.lt.s32.totalorder %s46_s27, %s46_s27 }
  0x4f   :  { %p5130_p7 = scmp.ne.s32.totalorder %s46_s27, %s5129_s0  ;;  %p5135_p9 = scmp.lt.s32.totalorder %s5129_s0, %s5129_s0 }
  0x51   :  { %p5136_p10 = por %p5135_p9, %p5134_p8 }
  0x53   :  { %p5137_p11 = pnand %p5136_p10, %p5130_p7 }
  0x55   :  { %5140 = shalt.err (!%p5137_p11)
}
  0x56   :  { %48 = dma.hbm_to_vmem [thread:$0]  %s5400_s2, 64, %s46_s27, [#allocation6]  }
  0x57   :  { %s5141_s17 = scalar_lea.hbm %s5402_s4, 16 }
  0x58   :  { %p5142_p12 = scmp.ne.s32.totalorder %s5402_s4, %s5141_s17  ;;  %p5145_p13 = scmp.lt.u32.totalorder %s5141_s17, %s5402_s4 }
  0x5a   :  { %p5147_p0 = pnand %p5145_p13, %p5142_p12 }
  0x5c   :  { %5150 = shalt.err (!%p5147_p0)
}
  0x5d   :  { %s5151_s22 = scalar_lea.vmem %s68_s29, 16  ;;  %s5155_s23 = scalar_lea.vmem %s68_s29, 32 }
  0x5e   :  { %p5152_p1 = scmp.ne.s32.totalorder %s68_s29, %s5151_s22  ;;  %p5156_p2 = scmp.lt.s32.totalorder %s68_s29, %s68_s29 }
  0x5f   :  { %p5157_p3 = scmp.lt.s32.totalorder %s5155_s23, %s5151_s22 }
  0x61   :  { %p5158_p4 = por %p5157_p3, %p5156_p2 }
  0x63   :  { %p5159_p5 = pnand %p5158_p4, %p5152_p1 }
  0x65   :  { %5162 = shalt.err (!%p5159_p5)
}
  0x66   :  { %70 = dma.hbm_to_vmem [thread:$0]  %s5402_s4, 16, %s68_s29, [#allocation9]  }
  0x67   :  { %s5227_s26 = smov [#allocation13]   ;;  %s5163_s27 = scalar_lea.hbm %s5404_s6, 16 }
  0x68   :  { %s89_s5 = sshll.u32 %s5227_s26, 4  ;;  %p5164_p6 = scmp.ne.s32.totalorder %s5404_s6, %s5163_s27  ;;  %s90_s5 = int_to_ptr.vmem [resolvable:$true] %s89_s5 }
  0x69   :  { %p5167_p7 = scmp.lt.u32.totalorder %s5163_s27, %s5404_s6 }
  0x6b   :  { %p5169_p8 = pnand %p5167_p7, %p5164_p6 }
  0x6d   :  { %5172 = shalt.err (!%p5169_p8)
}
  0x6e   :  { %s5173_s11 = scalar_lea.vmem %s90_s5, 16  ;;  %s5177_s4 = scalar_lea.vmem %s90_s5, 32 }
  0x6f   :  { %p5174_p9 = scmp.ne.s32.totalorder %s90_s5, %s5173_s11  ;;  %p5178_p10 = scmp.lt.s32.totalorder %s90_s5, %s90_s5 }
  0x70   :  { %p5179_p11 = scmp.lt.s32.totalorder %s5177_s4, %s5173_s11 }
  0x72   :  { %p5180_p12 = por %p5179_p11, %p5178_p10 }
  0x74   :  { %p5181_p13 = pnand %p5180_p12, %p5174_p9 }
  0x76   :  { %5184 = shalt.err (!%p5181_p13)
}
  0x77   :  { %92 = dma.hbm_to_vmem [thread:$0]  %s5404_s6, 16, %s90_s5, [#allocation12]  }
  0x78   :  { %5207 = dma.done.wait [#allocation3], 832  }
  0x79   :  { %5208 = vsyncadd [#allocation3], 4294966464 }
  0x7a   :  { %5209 = dma.done.wait [#allocation6], 53312  }
  0x7b   :  { %5210 = vsyncadd [#allocation6], 4294913984 }
  0x7c   :  { %5211 = dma.done.wait [#allocation9], 4112  }
  0x7d   :  { %5212 = vsyncadd [#allocation9], 4294963184 }
  0x7e   :  { %5213 = dma.done.wait [#allocation12], 1040  }
  0x7f   :  { %5214 = vsyncadd [#allocation12], 4294966256  ;;  %v4354_v0 = vld [vmem:[#allocation5 + $0x4] ss:$16 sps:$4 sm:$0xff]   ;;  %v4356_v1 = vld [vmem:[#allocation5 + $0xc] ss:$16 sps:$4 sm:$0xff]  }
  0x80   :  { %2686 = vmatprep.subr.bf16.mxu0 %v4354_v0  ;;  %v4358_v2 = vld [vmem:[#allocation5] ss:$16 sps:$4 sm:$0xff]   ;;  %v4359_v3 = vld [vmem:[#allocation5 + $0x8] ss:$16 sps:$4 sm:$0xff]   ;;  %2973 = vmatprep.subr.bf16.mxu1 %v4356_v1  ;;  %v4360_v4 = vld [vmem:[#allocation5 + $0x24] ss:$16 sps:$4 sm:$0xff]  }
  0x81   :  { %2687 = vmatpush1.bf16.msra.mxu0 %v4358_v2  ;;  %2974 = vmatpush1.bf16.msra.mxu1 %v4359_v3  ;;  %v4362_v5 = vld [vmem:[#allocation5 + $0x2c] ss:$16 sps:$4 sm:$0xff]   ;;  %v4364_v6 = vld [vmem:[#allocation5 + $0x20] ss:$16 sps:$4 sm:$0xff]   ;;  %v4365_v7 = vld [vmem:[#allocation5 + $0x28] ss:$16 sps:$4 sm:$0xff]  }
  0x82   :  { %2688 = vmatprep.subr.bf16.mxu0 %v4360_v4  ;;  %2975 = vmatprep.subr.bf16.mxu1 %v4362_v5  ;;  %v4366_v8 = vld [vmem:[#allocation5 + $0x44] ss:$16 sps:$4 sm:$0xff]   ;;  %v4368_v9 = vld [vmem:[#allocation5 + $0x4c] ss:$16 sps:$4 sm:$0xff]   ;;  %v4370_v10 = vld [vmem:[#allocation5 + $0x40] ss:$16 sps:$4 sm:$0xff]  }
  0x83   :  { %v4371_v11 = vld [vmem:[#allocation5 + $0x48] ss:$16 sps:$4 sm:$0xff]   ;;  %v4372_v12 = vld [vmem:[#allocation5 + $0x64] ss:$16 sps:$4 sm:$0xff]   ;;  %v4374_v13 = vld [vmem:[#allocation5 + $0x6c] ss:$16 sps:$4 sm:$0xff]  }
  0x84   :  { %v4376_v14 = vld [vmem:[#allocation5 + $0x60] ss:$16 sps:$4 sm:$0xff]   ;;  %v4377_v15 = vld [vmem:[#allocation5 + $0x68] ss:$16 sps:$4 sm:$0xff]   ;;  %v4378_v16 = vld [vmem:[#allocation5 + $0x84] ss:$16 sps:$4 sm:$0xff]  }
  0x85   :  { %2689 = vmatpush1.bf16.msra.mxu0 %v4364_v6  ;;  %2976 = vmatpush1.bf16.msra.mxu1 %v4365_v7  ;;  %v4380_v17 = vld [vmem:[#allocation5 + $0x8c] ss:$16 sps:$4 sm:$0xff]   ;;  %v4382_v18 = vld [vmem:[#allocation5 + $0x80] ss:$16 sps:$4 sm:$0xff]   ;;  %v4383_v19 = vld [vmem:[#allocation5 + $0x88] ss:$16 sps:$4 sm:$0xff]  }
  0x86   :  { %2690 = vmatprep.subr.bf16.mxu0 %v4366_v8  ;;  %2977 = vmatprep.subr.bf16.mxu1 %v4368_v9  ;;  %v4384_v20 = vld [vmem:[#allocation5 + $0xa4] ss:$16 sps:$4 sm:$0xff]   ;;  %v4386_v21 = vld [vmem:[#allocation5 + $0xac] ss:$16 sps:$4 sm:$0xff]   ;;  %v4388_v22 = vld [vmem:[#allocation5 + $0xa0] ss:$16 sps:$4 sm:$0xff]  }
  0x87   :  { %v4389_v23 = vld [vmem:[#allocation5 + $0xa8] ss:$16 sps:$4 sm:$0xff]   ;;  %v4390_v24 = vld [vmem:[#allocation5 + $0xc4] ss:$16 sps:$4 sm:$0xff]   ;;  %v4392_v25 = vld [vmem:[#allocation5 + $0xcc] ss:$16 sps:$4 sm:$0xff]  }
  0x88   :  { %v4394_v26 = vld [vmem:[#allocation5 + $0xc0] ss:$16 sps:$4 sm:$0xff]   ;;  %v4395_v27 = vld [vmem:[#allocation5 + $0xc8] ss:$16 sps:$4 sm:$0xff]   ;;  %v4396_v28 = vld [vmem:[#allocation5 + $0xe4] ss:$16 sps:$4 sm:$0xff]  }
  0x89   :  { %2691 = vmatpush1.bf16.msra.mxu0 %v4370_v10  ;;  %2978 = vmatpush1.bf16.msra.mxu1 %v4371_v11  ;;  %v4398_v29 = vld [vmem:[#allocation5 + $0xec] ss:$16 sps:$4 sm:$0xff]   ;;  %v4400_v30 = vld [vmem:[#allocation5 + $0xe0] ss:$16 sps:$4 sm:$0xff]   ;;  %v4401_v31 = vld [vmem:[#allocation5 + $0xe8] ss:$16 sps:$4 sm:$0xff]  }
  0x8a   :  { %2692 = vmatprep.subr.bf16.mxu0 %v4372_v12  ;;  %2979 = vmatprep.subr.bf16.mxu1 %v4374_v13  ;;  %v4402_v32 = vld [vmem:[#allocation5 + $0x104] ss:$16 sps:$4 sm:$0xff]   ;;  %v4404_v33 = vld [vmem:[#allocation5 + $0x10c] ss:$16 sps:$4 sm:$0xff]   ;;  %v4406_v34 = vld [vmem:[#allocation5 + $0x100] ss:$16 sps:$4 sm:$0xff]  }
  0x8b   :  { %v4407_v35 = vld [vmem:[#allocation5 + $0x108] ss:$16 sps:$4 sm:$0xff]   ;;  %v4408_v36 = vld [vmem:[#allocation5 + $0x124] ss:$16 sps:$4 sm:$0xff]   ;;  %v4410_v37 = vld [vmem:[#allocation5 + $0x12c] ss:$16 sps:$4 sm:$0xff]  }
  0x8c   :  { %v4412_v38 = vld [vmem:[#allocation5 + $0x120] ss:$16 sps:$4 sm:$0xff]   ;;  %v4413_v39 = vld [vmem:[#allocation5 + $0x128] ss:$16 sps:$4 sm:$0xff]   ;;  %v4414_v40 = vld [vmem:[#allocation5 + $0x144] ss:$16 sps:$4 sm:$0xff]  }
  0x8d   :  { %2693 = vmatpush1.bf16.msra.mxu0 %v4376_v14  ;;  %2980 = vmatpush1.bf16.msra.mxu1 %v4377_v15  ;;  %v4416_v41 = vld [vmem:[#allocation5 + $0x14c] ss:$16 sps:$4 sm:$0xff]   ;;  %v4418_v42 = vld [vmem:[#allocation5 + $0x140] ss:$16 sps:$4 sm:$0xff]   ;;  %v4419_v43 = vld [vmem:[#allocation5 + $0x148] ss:$16 sps:$4 sm:$0xff]  }
  0x8e   :  { %2694 = vmatprep.subr.bf16.mxu0 %v4378_v16  ;;  %2981 = vmatprep.subr.bf16.mxu1 %v4380_v17  ;;  %v4420_v44 = vld [vmem:[#allocation5 + $0x164] ss:$16 sps:$4 sm:$0xff]   ;;  %v4422_v45 = vld [vmem:[#allocation5 + $0x16c] ss:$16 sps:$4 sm:$0xff]   ;;  %v4424_v47 = vld [vmem:[#allocation5 + $0x160] ss:$16 sps:$4 sm:$0xff]  }
  0x8f   :  { %v115_v46 = vld [vmem:[#allocation2] sm:$0xff]  ;;  %v4425_v49 = vld [vmem:[#allocation5 + $0x168] ss:$16 sps:$4 sm:$0xff]   ;;  %v4426_v50 = vld [vmem:[#allocation5 + $0x184] ss:$16 sps:$4 sm:$0xff]   ;;  %vm5230_vm0 = vmmov 0  }
  0x90   :  { %v3744_v48 = vcombine.high %v115_v46, %v115_v46  ;;  %v4428_v51 = vld [vmem:[#allocation5 + $0x18c] ss:$16 sps:$4 sm:$0xff]   ;;  %v4430_v52 = vld [vmem:[#allocation5 + $0x180] ss:$16 sps:$4 sm:$0xff]   ;;  %v4431_v53 = vld [vmem:[#allocation5 + $0x188] ss:$16 sps:$4 sm:$0xff]   ;;  %v3743_v4 = vcombine.low %v115_v46, %v115_v46 }
  0x91   :  { %2695 = vmatpush1.bf16.msra.mxu0 %v4382_v18  ;;  %2982 = vmatpush1.bf16.msra.mxu1 %v4383_v19  ;;  %v4432_v54 = vld [vmem:[#allocation5 + $0x1a4] ss:$16 sps:$4 sm:$0xff]   ;;  %v4434_v55 = vld [vmem:[#allocation5 + $0x1ac] ss:$16 sps:$4 sm:$0xff]   ;;  %v4436_v56 = vld [vmem:[#allocation5 + $0x1a0] ss:$16 sps:$4 sm:$0xff]  }
  0x92   :  { %2696 = vmatprep.subr.bf16.mxu0 %v4384_v20  ;;  %2983 = vmatprep.subr.bf16.mxu1 %v4386_v21  ;;  %v4437_v57 = vld [vmem:[#allocation5 + $0x1a8] ss:$16 sps:$4 sm:$0xff]   ;;  %v4438_v58 = vld [vmem:[#allocation5 + $0x1c4] ss:$16 sps:$4 sm:$0xff]   ;;  %v4440_v59 = vld [vmem:[#allocation5 + $0x1cc] ss:$16 sps:$4 sm:$0xff]  }
  0x93   :  { %2718 = vmatprep.mubr.bf16.mxu0 %v3744_v48  ;;  %3005 = vmatprep.mubr.bf16.mxu1 %v3744_v48  ;;  %v4442_v60 = vld [vmem:[#allocation5 + $0x1c0] ss:$16 sps:$4 sm:$0xff]   ;;  %v4443_v61 = vld [vmem:[#allocation5 + $0x1c8] ss:$16 sps:$4 sm:$0xff]   ;;  %v4444_v62 = vld [vmem:[#allocation5 + $0x1e4] ss:$16 sps:$4 sm:$0xff]  }
  0x94   :  { %v4446_v63 = vld [vmem:[#allocation5 + $0x1ec] ss:$16 sps:$4 sm:$0xff]   ;;  %v4448_v0 = vld [vmem:[#allocation5 + $0x1e0] ss:$16 sps:$4 sm:$0xff]   ;;  %v4449_v1 = vld [vmem:[#allocation5 + $0x1e8] ss:$16 sps:$4 sm:$0xff]  }
  0x95   :  { %2697 = vmatpush1.bf16.msra.mxu0 %v4388_v22  ;;  %2984 = vmatpush1.bf16.msra.mxu1 %v4389_v23  ;;  %v4454_v2 = vld [vmem:[#allocation5 + $0x204] ss:$16 sps:$4 sm:$0xff]   ;;  %v4457_v3 = vld [vmem:[#allocation5 + $0x20c] ss:$16 sps:$4 sm:$0xff]   ;;  %v4452_v5 = vld [vmem:[#allocation5 + $0x200] ss:$16 sps:$4 sm:$0xff]  }
  0x96   :  { %2698 = vmatprep.subr.bf16.mxu0 %v4390_v24  ;;  %2985 = vmatprep.subr.bf16.mxu1 %v4392_v25  ;;  %v4455_v6 = vld [vmem:[#allocation5 + $0x208] ss:$16 sps:$4 sm:$0xff]   ;;  %v4460_v7 = vld [vmem:[#allocation5 + $0x224] ss:$16 sps:$4 sm:$0xff]   ;;  %v4463_v8 = vld [vmem:[#allocation5 + $0x22c] ss:$16 sps:$4 sm:$0xff]  }
  0x97   :  { %v4458_v9 = vld [vmem:[#allocation5 + $0x220] ss:$16 sps:$4 sm:$0xff]   ;;  %v4461_v10 = vld [vmem:[#allocation5 + $0x228] ss:$16 sps:$4 sm:$0xff]   ;;  %v4466_v11 = vld [vmem:[#allocation5 + $0x244] ss:$16 sps:$4 sm:$0xff]  }
  0x98   :  { %v4469_v12 = vld [vmem:[#allocation5 + $0x24c] ss:$16 sps:$4 sm:$0xff]   ;;  %v4464_v13 = vld [vmem:[#allocation5 + $0x240] ss:$16 sps:$4 sm:$0xff]   ;;  %v4467_v14 = vld [vmem:[#allocation5 + $0x248] ss:$16 sps:$4 sm:$0xff]  }
  0x99   :  { %2699 = vmatpush1.bf16.msra.mxu0 %v4394_v26  ;;  %2986 = vmatpush1.bf16.msra.mxu1 %v4395_v27  ;;  %v4472_v15 = vld [vmem:[#allocation5 + $0x264] ss:$16 sps:$4 sm:$0xff]   ;;  %v4475_v16 = vld [vmem:[#allocation5 + $0x26c] ss:$16 sps:$4 sm:$0xff]   ;;  %v4470_v17 = vld [vmem:[#allocation5 + $0x260] ss:$16 sps:$4 sm:$0xff]  }
  0x9a   :  { %2700 = vmatprep.subr.bf16.mxu0 %v4396_v28  ;;  %2987 = vmatprep.subr.bf16.mxu1 %v4398_v29  ;;  %v4473_v18 = vld [vmem:[#allocation5 + $0x268] ss:$16 sps:$4 sm:$0xff]   ;;  %v4478_v19 = vld [vmem:[#allocation5 + $0x284] ss:$16 sps:$4 sm:$0xff]   ;;  %v4481_v20 = vld [vmem:[#allocation5 + $0x28c] ss:$16 sps:$4 sm:$0xff]  }
  0x9b   :  { %v4476_v21 = vld [vmem:[#allocation5 + $0x280] ss:$16 sps:$4 sm:$0xff]   ;;  %v4479_v22 = vld [vmem:[#allocation5 + $0x288] ss:$16 sps:$4 sm:$0xff]   ;;  %v4484_v23 = vld [vmem:[#allocation5 + $0x2a4] ss:$16 sps:$4 sm:$0xff]  }
  0x9c   :  { %v4487_v24 = vld [vmem:[#allocation5 + $0x2ac] ss:$16 sps:$4 sm:$0xff]   ;;  %v4482_v25 = vld [vmem:[#allocation5 + $0x2a0] ss:$16 sps:$4 sm:$0xff]   ;;  %v4485_v26 = vld [vmem:[#allocation5 + $0x2a8] ss:$16 sps:$4 sm:$0xff]  }
  0x9d   :  { %2701 = vmatpush1.bf16.msra.mxu0 %v4400_v30  ;;  %2988 = vmatpush1.bf16.msra.mxu1 %v4401_v31  ;;  %v4490_v27 = vld [vmem:[#allocation5 + $0x2c4] ss:$16 sps:$4 sm:$0xff]   ;;  %v4493_v28 = vld [vmem:[#allocation5 + $0x2cc] ss:$16 sps:$4 sm:$0xff]   ;;  %v4488_v31 = vld [vmem:[#allocation5 + $0x2c0] ss:$16 sps:$4 sm:$0xff]  }
  0x9e   :  { %2702 = vmatprep.subr.bf16.mxu0 %v4402_v32  ;;  %2989 = vmatprep.subr.bf16.mxu1 %v4404_v33  ;;  %v5356_v29 = vld [vmem:[#allocation2 + $0x8] sm:$0xff]  ;;  %v4517_v46 = vld [vmem:[#allocation5 + $0x34c] ss:$16 sps:$4 sm:$0xff]   ;;  %s5231_s6 = smov [#allocation14]  }
  0x9f   :  { %v3746_v30 = vcombine.high %v5356_v29, %v5356_v29  ;;  %v4491_v32 = vld [vmem:[#allocation5 + $0x2c8] ss:$16 sps:$4 sm:$0xff]   ;;  %v4496_v33 = vld [vmem:[#allocation5 + $0x2e4] ss:$16 sps:$4 sm:$0xff]   ;;  %s3731_s13 = sshll.u32 %s5231_s6, 4  ;;  %s3732_s13 = int_to_ptr.vmem [resolvable:$true] %s3731_s13 }
  0xa0   :  { %v4515_v48 = vld [vmem:[#allocation5 + $0x348] ss:$16 sps:$4 sm:$0xff]   ;;  %s5185_s14 = scalar_lea.vmem %s3732_s13, 128  ;;  %p5190_p1 = scmp.lt.s32.totalorder %s3732_s13, %s3732_s13 }
  0xa1   :  { %2703 = vmatpush1.bf16.msra.mxu0 %v4406_v34  ;;  %2990 = vmatpush1.bf16.msra.mxu1 %v4407_v35  ;;  %v4499_v34 = vld [vmem:[#allocation5 + $0x2ec] ss:$16 sps:$4 sm:$0xff]   ;;  %v4494_v35 = vld [vmem:[#allocation5 + $0x2e0] ss:$16 sps:$4 sm:$0xff]   ;;  %p5186_p0 = scmp.ne.s32.totalorder %s3732_s13, %s5185_s14  ;;  %p5191_p2 = scmp.lt.s32.totalorder %s5185_s14, %s5185_s14 }
  0xa2   :  { %2704 = vmatprep.subr.bf16.mxu0 %v4408_v36  ;;  %2991 = vmatprep.subr.bf16.mxu1 %v4410_v37  ;;  %v4497_v36 = vld [vmem:[#allocation5 + $0x2e8] ss:$16 sps:$4 sm:$0xff]   ;;  %v4502_v37 = vld [vmem:[#allocation5 + $0x304] ss:$16 sps:$4 sm:$0xff]  }
  0xa3   :  { %p5192_p3 = por %p5191_p2, %p5190_p1 }
  0xa5   :  { %2705 = vmatpush1.bf16.msra.mxu0 %v4412_v38  ;;  %2992 = vmatpush1.bf16.msra.mxu1 %v4413_v39  ;;  %v4505_v38 = vld [vmem:[#allocation5 + $0x30c] ss:$16 sps:$4 sm:$0xff]   ;;  %v4500_v39 = vld [vmem:[#allocation5 + $0x300] ss:$16 sps:$4 sm:$0xff]   ;;  %p5193_p4 = pnand %p5192_p3, %p5186_p0 }
  0xa6   :  { %2706 = vmatprep.subr.bf16.mxu0 %v4414_v40  ;;  %2993 = vmatprep.subr.bf16.mxu1 %v4416_v41  ;;  %v4503_v40 = vld [vmem:[#allocation5 + $0x308] ss:$16 sps:$4 sm:$0xff]   ;;  %v4508_v41 = vld [vmem:[#allocation5 + $0x324] ss:$16 sps:$4 sm:$0xff]  }
  0xa9   :  { %2707 = vmatpush1.bf16.msra.mxu0 %v4418_v42  ;;  %2994 = vmatpush1.bf16.msra.mxu1 %v4419_v43  ;;  %v4511_v42 = vld [vmem:[#allocation5 + $0x32c] ss:$16 sps:$4 sm:$0xff]   ;;  %v4506_v43 = vld [vmem:[#allocation5 + $0x320] ss:$16 sps:$4 sm:$0xff]  }
  0xaa   :  { %2708 = vmatprep.subr.bf16.mxu0 %v4420_v44  ;;  %2995 = vmatprep.subr.bf16.mxu1 %v4422_v45  ;;  %v4509_v44 = vld [vmem:[#allocation5 + $0x328] ss:$16 sps:$4 sm:$0xff]   ;;  %v4514_v45 = vld [vmem:[#allocation5 + $0x344] ss:$16 sps:$4 sm:$0xff]  }
  0xad   :  { %2709 = vmatpush1.bf16.msra.mxu0 %v4424_v47  ;;  %2996 = vmatpush1.bf16.msra.mxu1 %v4425_v49  ;;  %v4512_v47 = vld [vmem:[#allocation5 + $0x340] ss:$16 sps:$4 sm:$0xff]   ;;  %v4520_v49 = vld [vmem:[#allocation5 + $0x364] ss:$16 sps:$4 sm:$0xff]  }
  0xae   :  { %2710 = vmatprep.subr.bf16.mxu0 %v4426_v50  ;;  %2997 = vmatprep.subr.bf16.mxu1 %v4428_v51  ;;  %v4523_v50 = vld [vmem:[#allocation5 + $0x36c] ss:$16 sps:$4 sm:$0xff]   ;;  %v4518_v51 = vld [vmem:[#allocation5 + $0x360] ss:$16 sps:$4 sm:$0xff]  }
  0xb1   :  { %2711 = vmatpush1.bf16.msra.mxu0 %v4430_v52  ;;  %2998 = vmatpush1.bf16.msra.mxu1 %v4431_v53  ;;  %v4521_v52 = vld [vmem:[#allocation5 + $0x368] ss:$16 sps:$4 sm:$0xff]   ;;  %v4526_v53 = vld [vmem:[#allocation5 + $0x384] ss:$16 sps:$4 sm:$0xff]  }
  0xb2   :  { %2712 = vmatprep.subr.bf16.mxu0 %v4432_v54  ;;  %2999 = vmatprep.subr.bf16.mxu1 %v4434_v55  ;;  %v4529_v54 = vld [vmem:[#allocation5 + $0x38c] ss:$16 sps:$4 sm:$0xff]   ;;  %v4524_v55 = vld [vmem:[#allocation5 + $0x380] ss:$16 sps:$4 sm:$0xff]  }
  0xb5   :  { %2713 = vmatpush1.bf16.msra.mxu0 %v4436_v56  ;;  %3000 = vmatpush1.bf16.msra.mxu1 %v4437_v57  ;;  %v4527_v56 = vld [vmem:[#allocation5 + $0x388] ss:$16 sps:$4 sm:$0xff]   ;;  %v4532_v57 = vld [vmem:[#allocation5 + $0x3a4] ss:$16 sps:$4 sm:$0xff]  }
  0xb6   :  { %2714 = vmatprep.subr.bf16.mxu0 %v4438_v58  ;;  %3001 = vmatprep.subr.bf16.mxu1 %v4440_v59  ;;  %v4535_v58 = vld [vmem:[#allocation5 + $0x3ac] ss:$16 sps:$4 sm:$0xff]   ;;  %v4530_v59 = vld [vmem:[#allocation5 + $0x3a0] ss:$16 sps:$4 sm:$0xff]  }
  0xb9   :  { %2715 = vmatpush1.bf16.msra.mxu0 %v4442_v60  ;;  %3002 = vmatpush1.bf16.msra.mxu1 %v4443_v61  ;;  %v4533_v60 = vld [vmem:[#allocation5 + $0x3a8] ss:$16 sps:$4 sm:$0xff]   ;;  %v4538_v61 = vld [vmem:[#allocation5 + $0x3c4] ss:$16 sps:$4 sm:$0xff]  }
  0xba   :  { %2716 = vmatprep.subr.bf16.mxu0 %v4444_v62  ;;  %3003 = vmatprep.subr.bf16.mxu1 %v4446_v63  ;;  %v4541_v62 = vld [vmem:[#allocation5 + $0x3cc] ss:$16 sps:$4 sm:$0xff]   ;;  %v4536_v63 = vld [vmem:[#allocation5 + $0x3c0] ss:$16 sps:$4 sm:$0xff]  }
  0xbd   :  { %2717 = vmatpush1.bf16.msra.mxu0 %v4448_v0  ;;  %3004 = vmatpush1.bf16.msra.mxu1 %v4449_v1  ;;  %v4539_v0 = vld [vmem:[#allocation5 + $0x3c8] ss:$16 sps:$4 sm:$0xff]   ;;  %v4544_v1 = vld [vmem:[#allocation5 + $0x3e4] ss:$16 sps:$4 sm:$0xff]  }
  0xbe   :  { %2727 = vmatprep.subr.bf16.mxu0 %v4454_v2  ;;  %3014 = vmatprep.subr.bf16.mxu1 %v4457_v3  ;;  %v4547_v2 = vld [vmem:[#allocation5 + $0x3ec] ss:$16 sps:$4 sm:$0xff]   ;;  %v4542_v3 = vld [vmem:[#allocation5 + $0x3e0] ss:$16 sps:$4 sm:$0xff]  }
  0xc0   :  { %2719 = vmatmul.mubr.bf16.vlgmr.msra.gmra.mrb[0].mxu0 %v3743_v4  ;;  %3006 = vmatmul.mubr.bf16.vlgmr.msra.gmra.mrb[0].mxu1 %v3743_v4  ;;  %v4545_v4 = vld [vmem:[#allocation5 + $0x3e8] ss:$16 sps:$4 sm:$0xff]  }
  0xc1   :  { %2728 = vmatpush1.bf16.msra.mxu0 %v4452_v5  ;;  %3015 = vmatpush1.bf16.msra.mxu1 %v4455_v6  ;;  %v4552_v5 = vld [vmem:[#allocation5 + $0x404] ss:$16 sps:$4 sm:$0xff]   ;;  %v4555_v6 = vld [vmem:[#allocation5 + $0x40c] ss:$16 sps:$4 sm:$0xff]  }
  0xc2   :  { %2729 = vmatprep.subr.bf16.mxu0 %v4460_v7  ;;  %3016 = vmatprep.subr.bf16.mxu1 %v4463_v8  ;;  %v3745_v7 = vcombine.low %v5356_v29, %v5356_v29  ;;  %v4550_v8 = vld [vmem:[#allocation5 + $0x400] ss:$16 sps:$4 sm:$0xff]   ;;  %v4585_v29 = vld [vmem:[#allocation5 + $0x4ac] ss:$16 sps:$4 sm:$0xff]  }
  0xc3   :  { %2759 = vmatprep.mubr.bf16.mxu0 %v3746_v30  ;;  %3046 = vmatprep.mubr.bf16.mxu1 %v3746_v30  ;;  %v4580_v30 = vld [vmem:[#allocation5 + $0x4a0] ss:$16 sps:$4 sm:$0xff]  }
  0xc5   :  { %2730 = vmatpush1.bf16.msra.mxu0 %v4458_v9  ;;  %3017 = vmatpush1.bf16.msra.mxu1 %v4461_v10  ;;  %v4553_v9 = vld [vmem:[#allocation5 + $0x408] ss:$16 sps:$4 sm:$0xff]   ;;  %v4558_v10 = vld [vmem:[#allocation5 + $0x424] ss:$16 sps:$4 sm:$0xff]  }
  0xc6   :  { %2731 = vmatprep.subr.bf16.mxu0 %v4466_v11  ;;  %3018 = vmatprep.subr.bf16.mxu1 %v4469_v12  ;;  %v5362_v11 = vld [vmem:[#allocation2 + $0x10] sm:$0xff] }
  0xc7   :  { %v4561_v12 = vld [vmem:[#allocation5 + $0x42c] ss:$16 sps:$4 sm:$0xff]  }
  0xc9   :  { %2732 = vmatpush1.bf16.msra.mxu0 %v4464_v13  ;;  %3019 = vmatpush1.bf16.msra.mxu1 %v4467_v14  ;;  %v3748_v13 = vcombine.high %v5362_v11, %v5362_v11  ;;  %v4556_v14 = vld [vmem:[#allocation5 + $0x420] ss:$16 sps:$4 sm:$0xff]  }
  0xca   :  { %2733 = vmatprep.subr.bf16.mxu0 %v4472_v15  ;;  %3020 = vmatprep.subr.bf16.mxu1 %v4475_v16  ;;  %v4559_v15 = vld [vmem:[#allocation5 + $0x428] ss:$16 sps:$4 sm:$0xff]   ;;  %v4564_v16 = vld [vmem:[#allocation5 + $0x444] ss:$16 sps:$4 sm:$0xff]  }
  0xcd   :  { %2734 = vmatpush1.bf16.msra.mxu0 %v4470_v17  ;;  %3021 = vmatpush1.bf16.msra.mxu1 %v4473_v18  ;;  %v4567_v17 = vld [vmem:[#allocation5 + $0x44c] ss:$16 sps:$4 sm:$0xff]   ;;  %v4562_v18 = vld [vmem:[#allocation5 + $0x440] ss:$16 sps:$4 sm:$0xff]  }
  0xce   :  { %2735 = vmatprep.subr.bf16.mxu0 %v4478_v19  ;;  %3022 = vmatprep.subr.bf16.mxu1 %v4481_v20  ;;  %v4565_v19 = vld [vmem:[#allocation5 + $0x448] ss:$16 sps:$4 sm:$0xff]   ;;  %v4570_v20 = vld [vmem:[#allocation5 + $0x464] ss:$16 sps:$4 sm:$0xff]  }
  0xd1   :  { %2736 = vmatpush1.bf16.msra.mxu0 %v4476_v21  ;;  %3023 = vmatpush1.bf16.msra.mxu1 %v4479_v22  ;;  %v4573_v21 = vld [vmem:[#allocation5 + $0x46c] ss:$16 sps:$4 sm:$0xff]   ;;  %v4568_v22 = vld [vmem:[#allocation5 + $0x460] ss:$16 sps:$4 sm:$0xff]  }
  0xd2   :  { %2737 = vmatprep.subr.bf16.mxu0 %v4484_v23  ;;  %3024 = vmatprep.subr.bf16.mxu1 %v4487_v24  ;;  %v4571_v23 = vld [vmem:[#allocation5 + $0x468] ss:$16 sps:$4 sm:$0xff]   ;;  %v4576_v24 = vld [vmem:[#allocation5 + $0x484] ss:$16 sps:$4 sm:$0xff]  }
  0xd5   :  { %2738 = vmatpush1.bf16.msra.mxu0 %v4482_v25  ;;  %3025 = vmatpush1.bf16.msra.mxu1 %v4485_v26  ;;  %v4579_v25 = vld [vmem:[#allocation5 + $0x48c] ss:$16 sps:$4 sm:$0xff]   ;;  %v4574_v26 = vld [vmem:[#allocation5 + $0x480] ss:$16 sps:$4 sm:$0xff]  }
  0xd6   :  { %2739 = vmatprep.subr.bf16.mxu0 %v4490_v27  ;;  %3026 = vmatprep.subr.bf16.mxu1 %v4493_v28  ;;  %v4577_v27 = vld [vmem:[#allocation5 + $0x488] ss:$16 sps:$4 sm:$0xff]   ;;  %v4582_v28 = vld [vmem:[#allocation5 + $0x4a4] ss:$16 sps:$4 sm:$0xff]  }
  0xd9   :  { %2740 = vmatpush1.bf16.msra.mxu0 %v4488_v31  ;;  %3027 = vmatpush1.bf16.msra.mxu1 %v4491_v32  ;;  %v4583_v31 = vld [vmem:[#allocation5 + $0x4a8] ss:$16 sps:$4 sm:$0xff]   ;;  %v4588_v32 = vld [vmem:[#allocation5 + $0x4c4] ss:$16 sps:$4 sm:$0xff]  }
  0xda   :  { %2741 = vmatprep.subr.bf16.mxu0 %v4496_v33  ;;  %3028 = vmatprep.subr.bf16.mxu1 %v4499_v34  ;;  %v4591_v33 = vld [vmem:[#allocation5 + $0x4cc] ss:$16 sps:$4 sm:$0xff]   ;;  %v4586_v34 = vld [vmem:[#allocation5 + $0x4c0] ss:$16 sps:$4 sm:$0xff]  }
  0xdd   :  { %2742 = vmatpush1.bf16.msra.mxu0 %v4494_v35  ;;  %3029 = vmatpush1.bf16.msra.mxu1 %v4497_v36  ;;  %v4589_v35 = vld [vmem:[#allocation5 + $0x4c8] ss:$16 sps:$4 sm:$0xff]   ;;  %v4594_v36 = vld [vmem:[#allocation5 + $0x4e4] ss:$16 sps:$4 sm:$0xff]  }
  0xde   :  { %2743 = vmatprep.subr.bf16.mxu0 %v4502_v37  ;;  %3030 = vmatprep.subr.bf16.mxu1 %v4505_v38  ;;  %v4597_v37 = vld [vmem:[#allocation5 + $0x4ec] ss:$16 sps:$4 sm:$0xff]   ;;  %v4592_v38 = vld [vmem:[#allocation5 + $0x4e0] ss:$16 sps:$4 sm:$0xff]  }
  0xe1   :  { %2744 = vmatpush1.bf16.msra.mxu0 %v4500_v39  ;;  %3031 = vmatpush1.bf16.msra.mxu1 %v4503_v40  ;;  %v4595_v39 = vld [vmem:[#allocation5 + $0x4e8] ss:$16 sps:$4 sm:$0xff]   ;;  %v4600_v40 = vld [vmem:[#allocation5 + $0x504] ss:$16 sps:$4 sm:$0xff]  }
  0xe2   :  { %2745 = vmatprep.subr.bf16.mxu0 %v4508_v41  ;;  %3032 = vmatprep.subr.bf16.mxu1 %v4511_v42  ;;  %v4603_v41 = vld [vmem:[#allocation5 + $0x50c] ss:$16 sps:$4 sm:$0xff]   ;;  %v4598_v42 = vld [vmem:[#allocation5 + $0x500] ss:$16 sps:$4 sm:$0xff]  }
  0xe5   :  { %2746 = vmatpush1.bf16.msra.mxu0 %v4506_v43  ;;  %3033 = vmatpush1.bf16.msra.mxu1 %v4509_v44  ;;  %v4601_v43 = vld [vmem:[#allocation5 + $0x508] ss:$16 sps:$4 sm:$0xff]   ;;  %v4606_v44 = vld [vmem:[#allocation5 + $0x524] ss:$16 sps:$4 sm:$0xff]  }
  0xe6   :  { %2747 = vmatprep.subr.bf16.mxu0 %v4514_v45  ;;  %3034 = vmatprep.subr.bf16.mxu1 %v4517_v46  ;;  %v4609_v45 = vld [vmem:[#allocation5 + $0x52c] ss:$16 sps:$4 sm:$0xff]   ;;  %v4604_v46 = vld [vmem:[#allocation5 + $0x520] ss:$16 sps:$4 sm:$0xff]  }
  0xe9   :  { %2748 = vmatpush1.bf16.msra.mxu0 %v4512_v47  ;;  %3035 = vmatpush1.bf16.msra.mxu1 %v4515_v48  ;;  %v4607_v47 = vld [vmem:[#allocation5 + $0x528] ss:$16 sps:$4 sm:$0xff]   ;;  %v4612_v48 = vld [vmem:[#allocation5 + $0x544] ss:$16 sps:$4 sm:$0xff]  }
  0xea   :  { %2749 = vmatprep.subr.bf16.mxu0 %v4520_v49  ;;  %3036 = vmatprep.subr.bf16.mxu1 %v4523_v50  ;;  %v4615_v49 = vld [vmem:[#allocation5 + $0x54c] ss:$16 sps:$4 sm:$0xff]   ;;  %v4610_v50 = vld [vmem:[#allocation5 + $0x540] ss:$16 sps:$4 sm:$0xff]  }
  0xed   :  { %2750 = vmatpush1.bf16.msra.mxu0 %v4518_v51  ;;  %3037 = vmatpush1.bf16.msra.mxu1 %v4521_v52  ;;  %v4613_v51 = vld [vmem:[#allocation5 + $0x548] ss:$16 sps:$4 sm:$0xff]   ;;  %v4618_v52 = vld [vmem:[#allocation5 + $0x564] ss:$16 sps:$4 sm:$0xff]  }
  0xee   :  { %2751 = vmatprep.subr.bf16.mxu0 %v4526_v53  ;;  %3038 = vmatprep.subr.bf16.mxu1 %v4529_v54  ;;  %v4621_v53 = vld [vmem:[#allocation5 + $0x56c] ss:$16 sps:$4 sm:$0xff]   ;;  %v4616_v54 = vld [vmem:[#allocation5 + $0x560] ss:$16 sps:$4 sm:$0xff]  }
  0xf1   :  { %2752 = vmatpush1.bf16.msra.mxu0 %v4524_v55  ;;  %3039 = vmatpush1.bf16.msra.mxu1 %v4527_v56  ;;  %v4619_v55 = vld [vmem:[#allocation5 + $0x568] ss:$16 sps:$4 sm:$0xff]   ;;  %v4624_v56 = vld [vmem:[#allocation5 + $0x584] ss:$16 sps:$4 sm:$0xff]  }
  0xf2   :  { %2753 = vmatprep.subr.bf16.mxu0 %v4532_v57  ;;  %3040 = vmatprep.subr.bf16.mxu1 %v4535_v58  ;;  %v4627_v57 = vld [vmem:[#allocation5 + $0x58c] ss:$16 sps:$4 sm:$0xff]   ;;  %v4622_v58 = vld [vmem:[#allocation5 + $0x580] ss:$16 sps:$4 sm:$0xff]  }
  0xf5   :  { %2754 = vmatpush1.bf16.msra.mxu0 %v4530_v59  ;;  %3041 = vmatpush1.bf16.msra.mxu1 %v4533_v60  ;;  %v4625_v59 = vld [vmem:[#allocation5 + $0x588] ss:$16 sps:$4 sm:$0xff]   ;;  %v4630_v60 = vld [vmem:[#allocation5 + $0x5a4] ss:$16 sps:$4 sm:$0xff]  }
  0xf6   :  { %2755 = vmatprep.subr.bf16.mxu0 %v4538_v61  ;;  %3042 = vmatprep.subr.bf16.mxu1 %v4541_v62  ;;  %v4633_v61 = vld [vmem:[#allocation5 + $0x5ac] ss:$16 sps:$4 sm:$0xff]   ;;  %v4628_v62 = vld [vmem:[#allocation5 + $0x5a0] ss:$16 sps:$4 sm:$0xff]  }
  0xf9   :  { %2756 = vmatpush1.bf16.msra.mxu0 %v4536_v63  ;;  %3043 = vmatpush1.bf16.msra.mxu1 %v4539_v0  ;;  %v4631_v63 = vld [vmem:[#allocation5 + $0x5a8] ss:$16 sps:$4 sm:$0xff]   ;;  %v4636_v0 = vld [vmem:[#allocation5 + $0x5c4] ss:$16 sps:$4 sm:$0xff]  }
  0xfa   :  { %2757 = vmatprep.subr.bf16.mxu0 %v4544_v1  ;;  %3044 = vmatprep.subr.bf16.mxu1 %v4547_v2  ;;  %v4639_v1 = vld [vmem:[#allocation5 + $0x5cc] ss:$16 sps:$4 sm:$0xff]   ;;  %v4634_v2 = vld [vmem:[#allocation5 + $0x5c0] ss:$16 sps:$4 sm:$0xff]  }
  0xfd   :  { %2758 = vmatpush1.bf16.msra.mxu0 %v4542_v3  ;;  %3045 = vmatpush1.bf16.msra.mxu1 %v4545_v4  ;;  %v4637_v3 = vld [vmem:[#allocation5 + $0x5c8] ss:$16 sps:$4 sm:$0xff]   ;;  %v4642_v4 = vld [vmem:[#allocation5 + $0x5e4] ss:$16 sps:$4 sm:$0xff]  }
  0xfe   :  { %2768 = vmatprep.subr.bf16.mxu0 %v4552_v5  ;;  %3055 = vmatprep.subr.bf16.mxu1 %v4555_v6  ;;  %v4645_v5 = vld [vmem:[#allocation5 + $0x5ec] ss:$16 sps:$4 sm:$0xff]   ;;  %v4640_v6 = vld [vmem:[#allocation5 + $0x5e0] ss:$16 sps:$4 sm:$0xff]  }
 0x100   :  { %2760 = vmatmul.mubr.bf16.vlgmr.msra.gmra.mrb[0].mxu0 %v3745_v7  ;;  %3047 = vmatmul.mubr.bf16.vlgmr.msra.gmra.mrb[0].mxu1 %v3745_v7  ;;  %v4643_v7 = vld [vmem:[#allocation5 + $0x5e8] ss:$16 sps:$4 sm:$0xff]  }
 0x101   :  { %2769 = vmatpush1.bf16.msra.mxu0 %v4550_v8  ;;  %3056 = vmatpush1.bf16.msra.mxu1 %v4553_v9  ;;  %v4650_v8 = vld [vmem:[#allocation5 + $0x604] ss:$16 sps:$4 sm:$0xff]   ;;  %v4653_v9 = vld [vmem:[#allocation5 + $0x60c] ss:$16 sps:$4 sm:$0xff]  }
 0x102   :  { %2770 = vmatprep.subr.bf16.mxu0 %v4558_v10  ;;  %3057 = vmatprep.subr.bf16.mxu1 %v4561_v12  ;;  %v4648_v10 = vld [vmem:[#allocation5 + $0x600] ss:$16 sps:$4 sm:$0xff]   ;;  %v3747_v12 = vcombine.low %v5362_v11, %v5362_v11  ;;  %v4665_v11 = vld [vmem:[#allocation5 + $0x64c] ss:$16 sps:$4 sm:$0xff]  }
 0x103   :  { %2800 = vmatprep.mubr.bf16.mxu0 %v3748_v13  ;;  %3087 = vmatprep.mubr.bf16.mxu1 %v3748_v13  ;;  %v4651_v13 = vld [vmem:[#allocation5 + $0x608] ss:$16 sps:$4 sm:$0xff]  }
 0x105   :  { %2771 = vmatpush1.bf16.msra.mxu0 %v4556_v14  ;;  %3058 = vmatpush1.bf16.msra.mxu1 %v4559_v15  ;;  %v5368_v14 = vld [vmem:[#allocation2 + $0x18] sm:$0xff] }
 0x106   :  { %2772 = vmatprep.subr.bf16.mxu0 %v4564_v16  ;;  %3059 = vmatprep.subr.bf16.mxu1 %v4567_v17  ;;  %v4656_v15 = vld [vmem:[#allocation5 + $0x624] ss:$16 sps:$4 sm:$0xff]   ;;  %v4659_v16 = vld [vmem:[#allocation5 + $0x62c] ss:$16 sps:$4 sm:$0xff]   ;;  %v3750_v17 = vcombine.high %v5368_v14, %v5368_v14 }
 0x109   :  { %2773 = vmatpush1.bf16.msra.mxu0 %v4562_v18  ;;  %3060 = vmatpush1.bf16.msra.mxu1 %v4565_v19  ;;  %v4654_v18 = vld [vmem:[#allocation5 + $0x620] ss:$16 sps:$4 sm:$0xff]   ;;  %v4657_v19 = vld [vmem:[#allocation5 + $0x628] ss:$16 sps:$4 sm:$0xff]  }
 0x10a   :  { %2774 = vmatprep.subr.bf16.mxu0 %v4570_v20  ;;  %3061 = vmatprep.subr.bf16.mxu1 %v4573_v21  ;;  %v4662_v20 = vld [vmem:[#allocation5 + $0x644] ss:$16 sps:$4 sm:$0xff]   ;;  %v4660_v21 = vld [vmem:[#allocation5 + $0x640] ss:$16 sps:$4 sm:$0xff]  }
 0x10d   :  { %2775 = vmatpush1.bf16.msra.mxu0 %v4568_v22  ;;  %3062 = vmatpush1.bf16.msra.mxu1 %v4571_v23  ;;  %v4663_v22 = vld [vmem:[#allocation5 + $0x648] ss:$16 sps:$4 sm:$0xff]   ;;  %v4668_v23 = vld [vmem:[#allocation5 + $0x664] ss:$16 sps:$4 sm:$0xff]  }
 0x10e   :  { %2776 = vmatprep.subr.bf16.mxu0 %v4576_v24  ;;  %3063 = vmatprep.subr.bf16.mxu1 %v4579_v25  ;;  %v4671_v24 = vld [vmem:[#allocation5 + $0x66c] ss:$16 sps:$4 sm:$0xff]   ;;  %v4666_v25 = vld [vmem:[#allocation5 + $0x660] ss:$16 sps:$4 sm:$0xff]  }
 0x111   :  { %2777 = vmatpush1.bf16.msra.mxu0 %v4574_v26  ;;  %3064 = vmatpush1.bf16.msra.mxu1 %v4577_v27  ;;  %v4669_v26 = vld [vmem:[#allocation5 + $0x668] ss:$16 sps:$4 sm:$0xff]   ;;  %v4674_v27 = vld [vmem:[#allocation5 + $0x684] ss:$16 sps:$4 sm:$0xff]  }
 0x112   :  { %2778 = vmatprep.subr.bf16.mxu0 %v4582_v28  ;;  %3065 = vmatprep.subr.bf16.mxu1 %v4585_v29  ;;  %v4677_v28 = vld [vmem:[#allocation5 + $0x68c] ss:$16 sps:$4 sm:$0xff]   ;;  %v4672_v29 = vld [vmem:[#allocation5 + $0x680] ss:$16 sps:$4 sm:$0xff]  }
 0x115   :  { %2779 = vmatpush1.bf16.msra.mxu0 %v4580_v30  ;;  %3066 = vmatpush1.bf16.msra.mxu1 %v4583_v31  ;;  %v4675_v30 = vld [vmem:[#allocation5 + $0x688] ss:$16 sps:$4 sm:$0xff]   ;;  %v4680_v31 = vld [vmem:[#allocation5 + $0x6a4] ss:$16 sps:$4 sm:$0xff]  }
 0x116   :  { %2780 = vmatprep.subr.bf16.mxu0 %v4588_v32  ;;  %3067 = vmatprep.subr.bf16.mxu1 %v4591_v33  ;;  %v4683_v32 = vld [vmem:[#allocation5 + $0x6ac] ss:$16 sps:$4 sm:$0xff]   ;;  %v4678_v33 = vld [vmem:[#allocation5 + $0x6a0] ss:$16 sps:$4 sm:$0xff]  }
 0x119   :  { %2781 = vmatpush1.bf16.msra.mxu0 %v4586_v34  ;;  %3068 = vmatpush1.bf16.msra.mxu1 %v4589_v35  ;;  %v4681_v34 = vld [vmem:[#allocation5 + $0x6a8] ss:$16 sps:$4 sm:$0xff]   ;;  %v4686_v35 = vld [vmem:[#allocation5 + $0x6c4] ss:$16 sps:$4 sm:$0xff]  }
 0x11a   :  { %2782 = vmatprep.subr.bf16.mxu0 %v4594_v36  ;;  %3069 = vmatprep.subr.bf16.mxu1 %v4597_v37  ;;  %v4689_v36 = vld [vmem:[#allocation5 + $0x6cc] ss:$16 sps:$4 sm:$0xff]   ;;  %v4684_v37 = vld [vmem:[#allocation5 + $0x6c0] ss:$16 sps:$4 sm:$0xff]  }
 0x11d   :  { %2783 = vmatpush1.bf16.msra.mxu0 %v4592_v38  ;;  %3070 = vmatpush1.bf16.msra.mxu1 %v4595_v39  ;;  %v4687_v38 = vld [vmem:[#allocation5 + $0x6c8] ss:$16 sps:$4 sm:$0xff]   ;;  %v4692_v39 = vld [vmem:[#allocation5 + $0x6e4] ss:$16 sps:$4 sm:$0xff]  }
 0x11e   :  { %2784 = vmatprep.subr.bf16.mxu0 %v4600_v40  ;;  %3071 = vmatprep.subr.bf16.mxu1 %v4603_v41  ;;  %v4695_v40 = vld [vmem:[#allocation5 + $0x6ec] ss:$16 sps:$4 sm:$0xff]   ;;  %v4690_v41 = vld [vmem:[#allocation5 + $0x6e0] ss:$16 sps:$4 sm:$0xff]  }
 0x121   :  { %2785 = vmatpush1.bf16.msra.mxu0 %v4598_v42  ;;  %3072 = vmatpush1.bf16.msra.mxu1 %v4601_v43  ;;  %v4693_v42 = vld [vmem:[#allocation5 + $0x6e8] ss:$16 sps:$4 sm:$0xff]   ;;  %v4698_v43 = vld [vmem:[#allocation5 + $0x704] ss:$16 sps:$4 sm:$0xff]  }
 0x122   :  { %2786 = vmatprep.subr.bf16.mxu0 %v4606_v44  ;;  %3073 = vmatprep.subr.bf16.mxu1 %v4609_v45  ;;  %v4701_v44 = vld [vmem:[#allocation5 + $0x70c] ss:$16 sps:$4 sm:$0xff]   ;;  %v4696_v45 = vld [vmem:[#allocation5 + $0x700] ss:$16 sps:$4 sm:$0xff]  }
 0x125   :  { %2787 = vmatpush1.bf16.msra.mxu0 %v4604_v46  ;;  %3074 = vmatpush1.bf16.msra.mxu1 %v4607_v47  ;;  %v4699_v46 = vld [vmem:[#allocation5 + $0x708] ss:$16 sps:$4 sm:$0xff]   ;;  %v4704_v47 = vld [vmem:[#allocation5 + $0x724] ss:$16 sps:$4 sm:$0xff]  }
 0x126   :  { %2788 = vmatprep.subr.bf16.mxu0 %v4612_v48  ;;  %3075 = vmatprep.subr.bf16.mxu1 %v4615_v49  ;;  %v4707_v48 = vld [vmem:[#allocation5 + $0x72c] ss:$16 sps:$4 sm:$0xff]   ;;  %v4702_v49 = vld [vmem:[#allocation5 + $0x720] ss:$16 sps:$4 sm:$0xff]  }
 0x129   :  { %2789 = vmatpush1.bf16.msra.mxu0 %v4610_v50  ;;  %3076 = vmatpush1.bf16.msra.mxu1 %v4613_v51  ;;  %v4705_v50 = vld [vmem:[#allocation5 + $0x728] ss:$16 sps:$4 sm:$0xff]   ;;  %v4710_v51 = vld [vmem:[#allocation5 + $0x744] ss:$16 sps:$4 sm:$0xff]  }
 0x12a   :  { %2790 = vmatprep.subr.bf16.mxu0 %v4618_v52  ;;  %3077 = vmatprep.subr.bf16.mxu1 %v4621_v53  ;;  %v4713_v52 = vld [vmem:[#allocation5 + $0x74c] ss:$16 sps:$4 sm:$0xff]   ;;  %v4708_v53 = vld [vmem:[#allocation5 + $0x740] ss:$16 sps:$4 sm:$0xff]  }
 0x12d   :  { %2791 = vmatpush1.bf16.msra.mxu0 %v4616_v54  ;;  %3078 = vmatpush1.bf16.msra.mxu1 %v4619_v55  ;;  %v4711_v54 = vld [vmem:[#allocation5 + $0x748] ss:$16 sps:$4 sm:$0xff]   ;;  %v4716_v55 = vld [vmem:[#allocation5 + $0x764] ss:$16 sps:$4 sm:$0xff]  }
 0x12e   :  { %2792 = vmatprep.subr.bf16.mxu0 %v4624_v56  ;;  %3079 = vmatprep.subr.bf16.mxu1 %v4627_v57  ;;  %v4719_v56 = vld [vmem:[#allocation5 + $0x76c] ss:$16 sps:$4 sm:$0xff]   ;;  %v4714_v57 = vld [vmem:[#allocation5 + $0x760] ss:$16 sps:$4 sm:$0xff]  }
 0x131   :  { %2793 = vmatpush1.bf16.msra.mxu0 %v4622_v58  ;;  %3080 = vmatpush1.bf16.msra.mxu1 %v4625_v59  ;;  %v4717_v58 = vld [vmem:[#allocation5 + $0x768] ss:$16 sps:$4 sm:$0xff]   ;;  %v4722_v59 = vld [vmem:[#allocation5 + $0x784] ss:$16 sps:$4 sm:$0xff]  }
 0x132   :  { %2794 = vmatprep.subr.bf16.mxu0 %v4630_v60  ;;  %3081 = vmatprep.subr.bf16.mxu1 %v4633_v61  ;;  %v4725_v60 = vld [vmem:[#allocation5 + $0x78c] ss:$16 sps:$4 sm:$0xff]   ;;  %v4720_v61 = vld [vmem:[#allocation5 + $0x780] ss:$16 sps:$4 sm:$0xff]  }
 0x135   :  { %2795 = vmatpush1.bf16.msra.mxu0 %v4628_v62  ;;  %3082 = vmatpush1.bf16.msra.mxu1 %v4631_v63  ;;  %v4723_v62 = vld [vmem:[#allocation5 + $0x788] ss:$16 sps:$4 sm:$0xff]   ;;  %v4728_v63 = vld [vmem:[#allocation5 + $0x7a4] ss:$16 sps:$4 sm:$0xff]  }
 0x136   :  { %2796 = vmatprep.subr.bf16.mxu0 %v4636_v0  ;;  %3083 = vmatprep.subr.bf16.mxu1 %v4639_v1  ;;  %v4731_v0 = vld [vmem:[#allocation5 + $0x7ac] ss:$16 sps:$4 sm:$0xff]   ;;  %v4726_v1 = vld [vmem:[#allocation5 + $0x7a0] ss:$16 sps:$4 sm:$0xff]  }
 0x139   :  { %2797 = vmatpush1.bf16.msra.mxu0 %v4634_v2  ;;  %3084 = vmatpush1.bf16.msra.mxu1 %v4637_v3  ;;  %v4729_v2 = vld [vmem:[#allocation5 + $0x7a8] ss:$16 sps:$4 sm:$0xff]   ;;  %v4734_v3 = vld [vmem:[#allocation5 + $0x7c4] ss:$16 sps:$4 sm:$0xff]  }
 0x13a   :  { %2798 = vmatprep.subr.bf16.mxu0 %v4642_v4  ;;  %3085 = vmatprep.subr.bf16.mxu1 %v4645_v5  ;;  %v4737_v4 = vld [vmem:[#allocation5 + $0x7cc] ss:$16 sps:$4 sm:$0xff]   ;;  %v4732_v5 = vld [vmem:[#allocation5 + $0x7c0] ss:$16 sps:$4 sm:$0xff]  }
 0x13d   :  { %2799 = vmatpush1.bf16.msra.mxu0 %v4640_v6  ;;  %3086 = vmatpush1.bf16.msra.mxu1 %v4643_v7  ;;  %v4735_v6 = vld [vmem:[#allocation5 + $0x7c8] ss:$16 sps:$4 sm:$0xff]   ;;  %v4740_v7 = vld [vmem:[#allocation5 + $0x7e4] ss:$16 sps:$4 sm:$0xff]  }
 0x13e   :  { %2809 = vmatprep.subr.bf16.mxu0 %v4650_v8  ;;  %3096 = vmatprep.subr.bf16.mxu1 %v4653_v9  ;;  %v4743_v8 = vld [vmem:[#allocation5 + $0x7ec] ss:$16 sps:$4 sm:$0xff]   ;;  %v4738_v9 = vld [vmem:[#allocation5 + $0x7e0] ss:$16 sps:$4 sm:$0xff]  }
 0x140   :  { %2801 = vmatmul.mubr.bf16.vlgmr.msra.gmra.mrb[0].mxu0 %v3747_v12  ;;  %3088 = vmatmul.mubr.bf16.vlgmr.msra.gmra.mrb[0].mxu1 %v3747_v12  ;;  %v4748_v12 = vld [vmem:[#allocation5 + $0x804] ss:$16 sps:$4 sm:$0xff]  }
 0x141   :  { %2810 = vmatpush1.bf16.msra.mxu0 %v4648_v10  ;;  %3097 = vmatpush1.bf16.msra.mxu1 %v4651_v13  ;;  %v4741_v10 = vld [vmem:[#allocation5 + $0x7e8] ss:$16 sps:$4 sm:$0xff]   ;;  %v4751_v13 = vld [vmem:[#allocation5 + $0x80c] ss:$16 sps:$4 sm:$0xff]  }
 0x142   :  { %2811 = vmatprep.subr.bf16.mxu0 %v4656_v15  ;;  %3098 = vmatprep.subr.bf16.mxu1 %v4659_v16  ;;  %v4746_v15 = vld [vmem:[#allocation5 + $0x800] ss:$16 sps:$4 sm:$0xff]   ;;  %v3749_v16 = vcombine.low %v5368_v14, %v5368_v14  ;;  %v4760_v14 = vld [vmem:[#allocation5 + $0x844] ss:$16 sps:$4 sm:$0xff]  }
 0x143   :  { %2841 = vmatprep.mubr.bf16.mxu0 %v3750_v17  ;;  %3128 = vmatprep.mubr.bf16.mxu1 %v3750_v17  ;;  %v5374_v17 = vld [vmem:[#allocation2 + $0x20] sm:$0xff] }
 0x145   :  { %2812 = vmatpush1.bf16.msra.mxu0 %v4654_v18  ;;  %3099 = vmatpush1.bf16.msra.mxu1 %v4657_v19  ;;  %v4749_v18 = vld [vmem:[#allocation5 + $0x808] ss:$16 sps:$4 sm:$0xff]   ;;  %v4754_v19 = vld [vmem:[#allocation5 + $0x824] ss:$16 sps:$4 sm:$0xff]  }
 0x146   :  { %2813 = vmatprep.subr.bf16.mxu0 %v4662_v20  ;;  %3100 = vmatprep.subr.bf16.mxu1 %v4665_v11  ;;  %v4757_v20 = vld [vmem:[#allocation5 + $0x82c] ss:$16 sps:$4 sm:$0xff]   ;;  %v3752_v11 = vcombine.high %v5374_v17, %v5374_v17 }
 0x149   :  { %2814 = vmatpush1.bf16.msra.mxu0 %v4660_v21  ;;  %3101 = vmatpush1.bf16.msra.mxu1 %v4663_v22  ;;  %v4752_v21 = vld [vmem:[#allocation5 + $0x820] ss:$16 sps:$4 sm:$0xff]   ;;  %v4755_v22 = vld [vmem:[#allocation5 + $0x828] ss:$16 sps:$4 sm:$0xff]  }
 0x14a   :  { %2815 = vmatprep.subr.bf16.mxu0 %v4668_v23  ;;  %3102 = vmatprep.subr.bf16.mxu1 %v4671_v24  ;;  %v4763_v23 = vld [vmem:[#allocation5 + $0x84c] ss:$16 sps:$4 sm:$0xff]   ;;  %v4758_v24 = vld [vmem:[#allocation5 + $0x840] ss:$16 sps:$4 sm:$0xff]  }
 0x14d   :  { %2816 = vmatpush1.bf16.msra.mxu0 %v4666_v25  ;;  %3103 = vmatpush1.bf16.msra.mxu1 %v4669_v26  ;;  %v4761_v25 = vld [vmem:[#allocation5 + $0x848] ss:$16 sps:$4 sm:$0xff]   ;;  %v4766_v26 = vld [vmem:[#allocation5 + $0x864] ss:$16 sps:$4 sm:$0xff]  }
 0x14e   :  { %2817 = vmatprep.subr.bf16.mxu0 %v4674_v27  ;;  %3104 = vmatprep.subr.bf16.mxu1 %v4677_v28  ;;  %v4769_v27 = vld [vmem:[#allocation5 + $0x86c] ss:$16 sps:$4 sm:$0xff]   ;;  %v4764_v28 = vld [vmem:[#allocation5 + $0x860] ss:$16 sps:$4 sm:$0xff]  }
 0x151   :  { %2818 = vmatpush1.bf16.msra.mxu0 %v4672_v29  ;;  %3105 = vmatpush1.bf16.msra.mxu1 %v4675_v30  ;;  %v4767_v29 = vld [vmem:[#allocation5 + $0x868] ss:$16 sps:$4 sm:$0xff]   ;;  %v4772_v30 = vld [vmem:[#allocation5 + $0x884] ss:$16 sps:$4 sm:$0xff]  }
 0x152   :  { %2819 = vmatprep.subr.bf16.mxu0 %v4680_v31  ;;  %3106 = vmatprep.subr.bf16.mxu1 %v4683_v32  ;;  %v4775_v31 = vld [vmem:[#allocation5 + $0x88c] ss:$16 sps:$4 sm:$0xff]   ;;  %v4770_v32 = vld [vmem:[#allocation5 + $0x880] ss:$16 sps:$4 sm:$0xff]  }
 0x155   :  { %2820 = vmatpush1.bf16.msra.mxu0 %v4678_v33  ;;  %3107 = vmatpush1.bf16.msra.mxu1 %v4681_v34  ;;  %v4773_v33 = vld [vmem:[#allocation5 + $0x888] ss:$16 sps:$4 sm:$0xff]   ;;  %v4778_v34 = vld [vmem:[#allocation5 + $0x8a4] ss:$16 sps:$4 sm:$0xff]  }
 0x156   :  { %2821 = vmatprep.subr.bf16.mxu0 %v4686_v35  ;;  %3108 = vmatprep.subr.bf16.mxu1 %v4689_v36  ;;  %v4781_v35 = vld [vmem:[#allocation5 + $0x8ac] ss:$16 sps:$4 sm:$0xff]   ;;  %v4776_v36 = vld [vmem:[#allocation5 + $0x8a0] ss:$16 sps:$4 sm:$0xff]  }
 0x159   :  { %2822 = vmatpush1.bf16.msra.mxu0 %v4684_v37  ;;  %3109 = vmatpush1.bf16.msra.mxu1 %v4687_v38  ;;  %v4779_v37 = vld [vmem:[#allocation5 + $0x8a8] ss:$16 sps:$4 sm:$0xff]   ;;  %v4784_v38 = vld [vmem:[#allocation5 + $0x8c4] ss:$16 sps:$4 sm:$0xff]  }
 0x15a   :  { %2823 = vmatprep.subr.bf16.mxu0 %v4692_v39  ;;  %3110 = vmatprep.subr.bf16.mxu1 %v4695_v40  ;;  %v4787_v39 = vld [vmem:[#allocation5 + $0x8cc] ss:$16 sps:$4 sm:$0xff]   ;;  %v4782_v40 = vld [vmem:[#allocation5 + $0x8c0] ss:$16 sps:$4 sm:$0xff]  }
 0x15d   :  { %2824 = vmatpush1.bf16.msra.mxu0 %v4690_v41  ;;  %3111 = vmatpush1.bf16.msra.mxu1 %v4693_v42  ;;  %v4785_v41 = vld [vmem:[#allocation5 + $0x8c8] ss:$16 sps:$4 sm:$0xff]   ;;  %v4790_v42 = vld [vmem:[#allocation5 + $0x8e4] ss:$16 sps:$4 sm:$0xff]  }
 0x15e   :  { %2825 = vmatprep.subr.bf16.mxu0 %v4698_v43  ;;  %3112 = vmatprep.subr.bf16.mxu1 %v4701_v44  ;;  %v4793_v43 = vld [vmem:[#allocation5 + $0x8ec] ss:$16 sps:$4 sm:$0xff]   ;;  %v4788_v44 = vld [vmem:[#allocation5 + $0x8e0] ss:$16 sps:$4 sm:$0xff]  }
 0x161   :  { %2826 = vmatpush1.bf16.msra.mxu0 %v4696_v45  ;;  %3113 = vmatpush1.bf16.msra.mxu1 %v4699_v46  ;;  %v4791_v45 = vld [vmem:[#allocation5 + $0x8e8] ss:$16 sps:$4 sm:$0xff]   ;;  %v4796_v46 = vld [vmem:[#allocation5 + $0x904] ss:$16 sps:$4 sm:$0xff]  }
 0x162   :  { %2827 = vmatprep.subr.bf16.mxu0 %v4704_v47  ;;  %3114 = vmatprep.subr.bf16.mxu1 %v4707_v48  ;;  %v4799_v47 = vld [vmem:[#allocation5 + $0x90c] ss:$16 sps:$4 sm:$0xff]   ;;  %v4794_v48 = vld [vmem:[#allocation5 + $0x900] ss:$16 sps:$4 sm:$0xff]  }
 0x165   :  { %2828 = vmatpush1.bf16.msra.mxu0 %v4702_v49  ;;  %3115 = vmatpush1.bf16.msra.mxu1 %v4705_v50  ;;  %v4797_v49 = vld [vmem:[#allocation5 + $0x908] ss:$16 sps:$4 sm:$0xff]   ;;  %v4802_v50 = vld [vmem:[#allocation5 + $0x924] ss:$16 sps:$4 sm:$0xff]  }
 0x166   :  { %2829 = vmatprep.subr.bf16.mxu0 %v4710_v51  ;;  %3116 = vmatprep.subr.bf16.mxu1 %v4713_v52  ;;  %v4805_v51 = vld [vmem:[#allocation5 + $0x92c] ss:$16 sps:$4 sm:$0xff]   ;;  %v4800_v52 = vld [vmem:[#allocation5 + $0x920] ss:$16 sps:$4 sm:$0xff]  }
 0x169   :  { %2830 = vmatpush1.bf16.msra.mxu0 %v4708_v53  ;;  %3117 = vmatpush1.bf16.msra.mxu1 %v4711_v54  ;;  %v4803_v53 = vld [vmem:[#allocation5 + $0x928] ss:$16 sps:$4 sm:$0xff]   ;;  %v4808_v54 = vld [vmem:[#allocation5 + $0x944] ss:$16 sps:$4 sm:$0xff]  }
 0x16a   :  { %2831 = vmatprep.subr.bf16.mxu0 %v4716_v55  ;;  %3118 = vmatprep.subr.bf16.mxu1 %v4719_v56  ;;  %v4811_v55 = vld [vmem:[#allocation5 + $0x94c] ss:$16 sps:$4 sm:$0xff]   ;;  %v4806_v56 = vld [vmem:[#allocation5 + $0x940] ss:$16 sps:$4 sm:$0xff]  }
 0x16d   :  { %2832 = vmatpush1.bf16.msra.mxu0 %v4714_v57  ;;  %3119 = vmatpush1.bf16.msra.mxu1 %v4717_v58  ;;  %v4809_v57 = vld [vmem:[#allocation5 + $0x948] ss:$16 sps:$4 sm:$0xff]   ;;  %v4814_v58 = vld [vmem:[#allocation5 + $0x964] ss:$16 sps:$4 sm:$0xff]  }
 0x16e   :  { %2833 = vmatprep.subr.bf16.mxu0 %v4722_v59  ;;  %3120 = vmatprep.subr.bf16.mxu1 %v4725_v60  ;;  %v4817_v59 = vld [vmem:[#allocation5 + $0x96c] ss:$16 sps:$4 sm:$0xff]   ;;  %v4812_v60 = vld [vmem:[#allocation5 + $0x960] ss:$16 sps:$4 sm:$0xff]  }
 0x171   :  { %2834 = vmatpush1.bf16.msra.mxu0 %v4720_v61  ;;  %3121 = vmatpush1.bf16.msra.mxu1 %v4723_v62  ;;  %v4815_v61 = vld [vmem:[#allocation5 + $0x968] ss:$16 sps:$4 sm:$0xff]   ;;  %v4820_v62 = vld [vmem:[#allocation5 + $0x984] ss:$16 sps:$4 sm:$0xff]  }
 0x172   :  { %2835 = vmatprep.subr.bf16.mxu0 %v4728_v63  ;;  %3122 = vmatprep.subr.bf16.mxu1 %v4731_v0  ;;  %v4823_v63 = vld [vmem:[#allocation5 + $0x98c] ss:$16 sps:$4 sm:$0xff]   ;;  %v4818_v0 = vld [vmem:[#allocation5 + $0x980] ss:$16 sps:$4 sm:$0xff]  }
 0x175   :  { %2836 = vmatpush1.bf16.msra.mxu0 %v4726_v1  ;;  %3123 = vmatpush1.bf16.msra.mxu1 %v4729_v2  ;;  %v4821_v1 = vld [vmem:[#allocation5 + $0x988] ss:$16 sps:$4 sm:$0xff]   ;;  %v4826_v2 = vld [vmem:[#allocation5 + $0x9a4] ss:$16 sps:$4 sm:$0xff]  }
 0x176   :  { %2837 = vmatprep.subr.bf16.mxu0 %v4734_v3  ;;  %3124 = vmatprep.subr.bf16.mxu1 %v4737_v4  ;;  %v4829_v3 = vld [vmem:[#allocation5 + $0x9ac] ss:$16 sps:$4 sm:$0xff]   ;;  %v4824_v4 = vld [vmem:[#allocation5 + $0x9a0] ss:$16 sps:$4 sm:$0xff]  }
 0x179   :  { %2838 = vmatpush1.bf16.msra.mxu0 %v4732_v5  ;;  %3125 = vmatpush1.bf16.msra.mxu1 %v4735_v6  ;;  %v4827_v5 = vld [vmem:[#allocation5 + $0x9a8] ss:$16 sps:$4 sm:$0xff]   ;;  %v4832_v6 = vld [vmem:[#allocation5 + $0x9c4] ss:$16 sps:$4 sm:$0xff]  }
 0x17a   :  { %2839 = vmatprep.subr.bf16.mxu0 %v4740_v7  ;;  %3126 = vmatprep.subr.bf16.mxu1 %v4743_v8  ;;  %v4835_v7 = vld [vmem:[#allocation5 + $0x9cc] ss:$16 sps:$4 sm:$0xff]   ;;  %v4830_v8 = vld [vmem:[#allocation5 + $0x9c0] ss:$16 sps:$4 sm:$0xff]  }
 0x17d   :  { %2840 = vmatpush1.bf16.msra.mxu0 %v4738_v9  ;;  %3127 = vmatpush1.bf16.msra.mxu1 %v4741_v10  ;;  %v4833_v9 = vld [vmem:[#allocation5 + $0x9c8] ss:$16 sps:$4 sm:$0xff]   ;;  %v4838_v10 = vld [vmem:[#allocation5 + $0x9e4] ss:$16 sps:$4 sm:$0xff]  }
 0x17e   :  { %2850 = vmatprep.subr.bf16.mxu0 %v4748_v12  ;;  %3137 = vmatprep.subr.bf16.mxu1 %v4751_v13  ;;  %v4841_v12 = vld [vmem:[#allocation5 + $0x9ec] ss:$16 sps:$4 sm:$0xff]   ;;  %v4836_v13 = vld [vmem:[#allocation5 + $0x9e0] ss:$16 sps:$4 sm:$0xff]  }
 0x180   :  { %2842 = vmatmul.mubr.bf16.vlgmr.msra.gmra.mrb[0].mxu0 %v3749_v16  ;;  %3129 = vmatmul.mubr.bf16.vlgmr.msra.gmra.mrb[0].mxu1 %v3749_v16  ;;  %v4846_v16 = vld [vmem:[#allocation5 + $0xa04] ss:$16 sps:$4 sm:$0xff]  }
 0x181   :  { %2851 = vmatpush1.bf16.msra.mxu0 %v4746_v15  ;;  %3138 = vmatpush1.bf16.msra.mxu1 %v4749_v18  ;;  %v4839_v15 = vld [vmem:[#allocation5 + $0x9e8] ss:$16 sps:$4 sm:$0xff]   ;;  %v4849_v18 = vld [vmem:[#allocation5 + $0xa0c] ss:$16 sps:$4 sm:$0xff]  }
 0x182   :  { %2852 = vmatprep.subr.bf16.mxu0 %v4754_v19  ;;  %3139 = vmatprep.subr.bf16.mxu1 %v4757_v20  ;;  %v3751_v19 = vcombine.low %v5374_v17, %v5374_v17  ;;  %v5380_v20 = vld [vmem:[#allocation2 + $0x28] sm:$0xff] }
 0x183   :  { %2882 = vmatprep.mubr.bf16.mxu0 %v3752_v11  ;;  %3169 = vmatprep.mubr.bf16.mxu1 %v3752_v11  ;;  %v4844_v11 = vld [vmem:[#allocation5 + $0xa00] ss:$16 sps:$4 sm:$0xff]   ;;  %v4858_v17 = vld [vmem:[#allocation5 + $0xa44] ss:$16 sps:$4 sm:$0xff]  }
 0x185   :  { %2853 = vmatpush1.bf16.msra.mxu0 %v4752_v21  ;;  %3140 = vmatpush1.bf16.msra.mxu1 %v4755_v22  ;;  %v4847_v21 = vld [vmem:[#allocation5 + $0xa08] ss:$16 sps:$4 sm:$0xff]   ;;  %v4852_v22 = vld [vmem:[#allocation5 + $0xa24] ss:$16 sps:$4 sm:$0xff]  }
 0x186   :  { %2854 = vmatprep.subr.bf16.mxu0 %v4760_v14  ;;  %3141 = vmatprep.subr.bf16.mxu1 %v4763_v23  ;;  %v4855_v14 = vld [vmem:[#allocation5 + $0xa2c] ss:$16 sps:$4 sm:$0xff]   ;;  %v3754_v23 = vcombine.high %v5380_v20, %v5380_v20 }
 0x189   :  { %2855 = vmatpush1.bf16.msra.mxu0 %v4758_v24  ;;  %3142 = vmatpush1.bf16.msra.mxu1 %v4761_v25  ;;  %v4850_v24 = vld [vmem:[#allocation5 + $0xa20] ss:$16 sps:$4 sm:$0xff]   ;;  %v4853_v25 = vld [vmem:[#allocation5 + $0xa28] ss:$16 sps:$4 sm:$0xff]  }
 0x18a   :  { %2856 = vmatprep.subr.bf16.mxu0 %v4766_v26  ;;  %3143 = vmatprep.subr.bf16.mxu1 %v4769_v27  ;;  %v4861_v26 = vld [vmem:[#allocation5 + $0xa4c] ss:$16 sps:$4 sm:$0xff]   ;;  %v4856_v27 = vld [vmem:[#allocation5 + $0xa40] ss:$16 sps:$4 sm:$0xff]  }
 0x18d   :  { %2857 = vmatpush1.bf16.msra.mxu0 %v4764_v28  ;;  %3144 = vmatpush1.bf16.msra.mxu1 %v4767_v29  ;;  %v4859_v28 = vld [vmem:[#allocation5 + $0xa48] ss:$16 sps:$4 sm:$0xff]   ;;  %v4864_v29 = vld [vmem:[#allocation5 + $0xa64] ss:$16 sps:$4 sm:$0xff]  }
 0x18e   :  { %2858 = vmatprep.subr.bf16.mxu0 %v4772_v30  ;;  %3145 = vmatprep.subr.bf16.mxu1 %v4775_v31  ;;  %v4867_v30 = vld [vmem:[#allocation5 + $0xa6c] ss:$16 sps:$4 sm:$0xff]   ;;  %v4862_v31 = vld [vmem:[#allocation5 + $0xa60] ss:$16 sps:$4 sm:$0xff]  }
 0x191   :  { %2859 = vmatpush1.bf16.msra.mxu0 %v4770_v32  ;;  %3146 = vmatpush1.bf16.msra.mxu1 %v4773_v33  ;;  %v4865_v32 = vld [vmem:[#allocation5 + $0xa68] ss:$16 sps:$4 sm:$0xff]   ;;  %v4870_v33 = vld [vmem:[#allocation5 + $0xa84] ss:$16 sps:$4 sm:$0xff]  }
 0x192   :  { %2860 = vmatprep.subr.bf16.mxu0 %v4778_v34  ;;  %3147 = vmatprep.subr.bf16.mxu1 %v4781_v35  ;;  %v4873_v34 = vld [vmem:[#allocation5 + $0xa8c] ss:$16 sps:$4 sm:$0xff]   ;;  %v4868_v35 = vld [vmem:[#allocation5 + $0xa80] ss:$16 sps:$4 sm:$0xff]  }
 0x195   :  { %2861 = vmatpush1.bf16.msra.mxu0 %v4776_v36  ;;  %3148 = vmatpush1.bf16.msra.mxu1 %v4779_v37  ;;  %v4871_v36 = vld [vmem:[#allocation5 + $0xa88] ss:$16 sps:$4 sm:$0xff]   ;;  %v4876_v37 = vld [vmem:[#allocation5 + $0xaa4] ss:$16 sps:$4 sm:$0xff]  }
 0x196   :  { %2862 = vmatprep.subr.bf16.mxu0 %v4784_v38  ;;  %3149 = vmatprep.subr.bf16.mxu1 %v4787_v39  ;;  %v4879_v38 = vld [vmem:[#allocation5 + $0xaac] ss:$16 sps:$4 sm:$0xff]   ;;  %v4874_v39 = vld [vmem:[#allocation5 + $0xaa0] ss:$16 sps:$4 sm:$0xff]  }
 0x199   :  { %2863 = vmatpush1.bf16.msra.mxu0 %v4782_v40  ;;  %3150 = vmatpush1.bf16.msra.mxu1 %v4785_v41  ;;  %v4877_v40 = vld [vmem:[#allocation5 + $0xaa8] ss:$16 sps:$4 sm:$0xff]   ;;  %v4882_v41 = vld [vmem:[#allocation5 + $0xac4] ss:$16 sps:$4 sm:$0xff]  }
 0x19a   :  { %2864 = vmatprep.subr.bf16.mxu0 %v4790_v42  ;;  %3151 = vmatprep.subr.bf16.mxu1 %v4793_v43  ;;  %v4885_v42 = vld [vmem:[#allocation5 + $0xacc] ss:$16 sps:$4 sm:$0xff]   ;;  %v4880_v43 = vld [vmem:[#allocation5 + $0xac0] ss:$16 sps:$4 sm:$0xff]  }
 0x19d   :  { %2865 = vmatpush1.bf16.msra.mxu0 %v4788_v44  ;;  %3152 = vmatpush1.bf16.msra.mxu1 %v4791_v45  ;;  %v4883_v44 = vld [vmem:[#allocation5 + $0xac8] ss:$16 sps:$4 sm:$0xff]   ;;  %v4888_v45 = vld [vmem:[#allocation5 + $0xae4] ss:$16 sps:$4 sm:$0xff]  }
 0x19e   :  { %2866 = vmatprep.subr.bf16.mxu0 %v4796_v46  ;;  %3153 = vmatprep.subr.bf16.mxu1 %v4799_v47  ;;  %v4891_v46 = vld [vmem:[#allocation5 + $0xaec] ss:$16 sps:$4 sm:$0xff]   ;;  %v4886_v47 = vld [vmem:[#allocation5 + $0xae0] ss:$16 sps:$4 sm:$0xff]  }
 0x1a1   :  { %2867 = vmatpush1.bf16.msra.mxu0 %v4794_v48  ;;  %3154 = vmatpush1.bf16.msra.mxu1 %v4797_v49  ;;  %v4889_v48 = vld [vmem:[#allocation5 + $0xae8] ss:$16 sps:$4 sm:$0xff]   ;;  %v4894_v49 = vld [vmem:[#allocation5 + $0xb04] ss:$16 sps:$4 sm:$0xff]  }
 0x1a2   :  { %2868 = vmatprep.subr.bf16.mxu0 %v4802_v50  ;;  %3155 = vmatprep.subr.bf16.mxu1 %v4805_v51  ;;  %v4897_v50 = vld [vmem:[#allocation5 + $0xb0c] ss:$16 sps:$4 sm:$0xff]   ;;  %v4892_v51 = vld [vmem:[#allocation5 + $0xb00] ss:$16 sps:$4 sm:$0xff]  }
 0x1a5   :  { %2869 = vmatpush1.bf16.msra.mxu0 %v4800_v52  ;;  %3156 = vmatpush1.bf16.msra.mxu1 %v4803_v53  ;;  %v4895_v52 = vld [vmem:[#allocation5 + $0xb08] ss:$16 sps:$4 sm:$0xff]   ;;  %v4900_v53 = vld [vmem:[#allocation5 + $0xb24] ss:$16 sps:$4 sm:$0xff]  }
 0x1a6   :  { %2870 = vmatprep.subr.bf16.mxu0 %v4808_v54  ;;  %3157 = vmatprep.subr.bf16.mxu1 %v4811_v55  ;;  %v4903_v54 = vld [vmem:[#allocation5 + $0xb2c] ss:$16 sps:$4 sm:$0xff]   ;;  %v4898_v55 = vld [vmem:[#allocation5 + $0xb20] ss:$16 sps:$4 sm:$0xff]  }
 0x1a9   :  { %2871 = vmatpush1.bf16.msra.mxu0 %v4806_v56  ;;  %3158 = vmatpush1.bf16.msra.mxu1 %v4809_v57  ;;  %v4901_v56 = vld [vmem:[#allocation5 + $0xb28] ss:$16 sps:$4 sm:$0xff]   ;;  %v4906_v57 = vld [vmem:[#allocation5 + $0xb44] ss:$16 sps:$4 sm:$0xff]  }
 0x1aa   :  { %2872 = vmatprep.subr.bf16.mxu0 %v4814_v58  ;;  %3159 = vmatprep.subr.bf16.mxu1 %v4817_v59  ;;  %v4909_v58 = vld [vmem:[#allocation5 + $0xb4c] ss:$16 sps:$4 sm:$0xff]   ;;  %v4904_v59 = vld [vmem:[#allocation5 + $0xb40] ss:$16 sps:$4 sm:$0xff]  }
 0x1ad   :  { %2873 = vmatpush1.bf16.msra.mxu0 %v4812_v60  ;;  %3160 = vmatpush1.bf16.msra.mxu1 %v4815_v61  ;;  %v4907_v60 = vld [vmem:[#allocation5 + $0xb48] ss:$16 sps:$4 sm:$0xff]   ;;  %v4912_v61 = vld [vmem:[#allocation5 + $0xb64] ss:$16 sps:$4 sm:$0xff]  }
 0x1ae   :  { %2874 = vmatprep.subr.bf16.mxu0 %v4820_v62  ;;  %3161 = vmatprep.subr.bf16.mxu1 %v4823_v63  ;;  %v4915_v62 = vld [vmem:[#allocation5 + $0xb6c] ss:$16 sps:$4 sm:$0xff]   ;;  %v4910_v63 = vld [vmem:[#allocation5 + $0xb60] ss:$16 sps:$4 sm:$0xff]  }
 0x1b1   :  { %2875 = vmatpush1.bf16.msra.mxu0 %v4818_v0  ;;  %3162 = vmatpush1.bf16.msra.mxu1 %v4821_v1  ;;  %v4913_v0 = vld [vmem:[#allocation5 + $0xb68] ss:$16 sps:$4 sm:$0xff]   ;;  %v4918_v1 = vld [vmem:[#allocation5 + $0xb84] ss:$16 sps:$4 sm:$0xff]  }
 0x1b2   :  { %2876 = vmatprep.subr.bf16.mxu0 %v4826_v2  ;;  %3163 = vmatprep.subr.bf16.mxu1 %v4829_v3  ;;  %v4921_v2 = vld [vmem:[#allocation5 + $0xb8c] ss:$16 sps:$4 sm:$0xff]   ;;  %v4916_v3 = vld [vmem:[#allocation5 + $0xb80] ss:$16 sps:$4 sm:$0xff]  }
 0x1b5   :  { %2877 = vmatpush1.bf16.msra.mxu0 %v4824_v4  ;;  %3164 = vmatpush1.bf16.msra.mxu1 %v4827_v5  ;;  %v4919_v4 = vld [vmem:[#allocation5 + $0xb88] ss:$16 sps:$4 sm:$0xff]   ;;  %v4924_v5 = vld [vmem:[#allocation5 + $0xba4] ss:$16 sps:$4 sm:$0xff]  }
 0x1b6   :  { %2878 = vmatprep.subr.bf16.mxu0 %v4832_v6  ;;  %3165 = vmatprep.subr.bf16.mxu1 %v4835_v7  ;;  %v4927_v6 = vld [vmem:[#allocation5 + $0xbac] ss:$16 sps:$4 sm:$0xff]   ;;  %v4922_v7 = vld [vmem:[#allocation5 + $0xba0] ss:$16 sps:$4 sm:$0xff]  }
 0x1b9   :  { %2879 = vmatpush1.bf16.msra.mxu0 %v4830_v8  ;;  %3166 = vmatpush1.bf16.msra.mxu1 %v4833_v9  ;;  %v4925_v8 = vld [vmem:[#allocation5 + $0xba8] ss:$16 sps:$4 sm:$0xff]   ;;  %v4930_v9 = vld [vmem:[#allocation5 + $0xbc4] ss:$16 sps:$4 sm:$0xff]  }
 0x1ba   :  { %2880 = vmatprep.subr.bf16.mxu0 %v4838_v10  ;;  %3167 = vmatprep.subr.bf16.mxu1 %v4841_v12  ;;  %v4933_v10 = vld [vmem:[#allocation5 + $0xbcc] ss:$16 sps:$4 sm:$0xff]   ;;  %v4928_v12 = vld [vmem:[#allocation5 + $0xbc0] ss:$16 sps:$4 sm:$0xff]  }
 0x1bd   :  { %2881 = vmatpush1.bf16.msra.mxu0 %v4836_v13  ;;  %3168 = vmatpush1.bf16.msra.mxu1 %v4839_v15  ;;  %v4931_v13 = vld [vmem:[#allocation5 + $0xbc8] ss:$16 sps:$4 sm:$0xff]   ;;  %v4936_v15 = vld [vmem:[#allocation5 + $0xbe4] ss:$16 sps:$4 sm:$0xff]  }
 0x1be   :  { %2891 = vmatprep.subr.bf16.mxu0 %v4846_v16  ;;  %3178 = vmatprep.subr.bf16.mxu1 %v4849_v18  ;;  %v4939_v16 = vld [vmem:[#allocation5 + $0xbec] ss:$16 sps:$4 sm:$0xff]   ;;  %v4934_v18 = vld [vmem:[#allocation5 + $0xbe0] ss:$16 sps:$4 sm:$0xff]  }
 0x1c0   :  { %2883 = vmatmul.mubr.bf16.vlgmr.msra.gmra.mrb[0].mxu0 %v3751_v19  ;;  %3170 = vmatmul.mubr.bf16.vlgmr.msra.gmra.mrb[0].mxu1 %v3751_v19  ;;  %v4937_v19 = vld [vmem:[#allocation5 + $0xbe8] ss:$16 sps:$4 sm:$0xff]  }
 0x1c1   :  { %2892 = vmatpush1.bf16.msra.mxu0 %v4844_v11  ;;  %3179 = vmatpush1.bf16.msra.mxu1 %v4847_v21  ;;  %v4944_v11 = vld [vmem:[#allocation5 + $0xc04] ss:$16 sps:$4 sm:$0xff]   ;;  %v4947_v21 = vld [vmem:[#allocation5 + $0xc0c] ss:$16 sps:$4 sm:$0xff]  }
 0x1c2   :  { %2893 = vmatprep.subr.bf16.mxu0 %v4852_v22  ;;  %3180 = vmatprep.subr.bf16.mxu1 %v4855_v14  ;;  %v3753_v22 = vcombine.low %v5380_v20, %v5380_v20  ;;  %v4942_v14 = vld [vmem:[#allocation5 + $0xc00] ss:$16 sps:$4 sm:$0xff]  }
 0x1c3   :  { %2923 = vmatprep.mubr.bf16.mxu0 %v3754_v23  ;;  %3210 = vmatprep.mubr.bf16.mxu1 %v3754_v23  ;;  %v4945_v23 = vld [vmem:[#allocation5 + $0xc08] ss:$16 sps:$4 sm:$0xff]   ;;  %v4954_v20 = vld [vmem:[#allocation5 + $0xc40] ss:$16 sps:$4 sm:$0xff]  }
 0x1c5   :  { %2894 = vmatpush1.bf16.msra.mxu0 %v4850_v24  ;;  %3181 = vmatpush1.bf16.msra.mxu1 %v4853_v25  ;;  %v4950_v24 = vld [vmem:[#allocation5 + $0xc24] ss:$16 sps:$4 sm:$0xff]   ;;  %v4953_v25 = vld [vmem:[#allocation5 + $0xc2c] ss:$16 sps:$4 sm:$0xff]  }
 0x1c6   :  { %2895 = vmatprep.subr.bf16.mxu0 %v4858_v17  ;;  %3182 = vmatprep.subr.bf16.mxu1 %v4861_v26  ;;  %v4948_v17 = vld [vmem:[#allocation5 + $0xc20] ss:$16 sps:$4 sm:$0xff]   ;;  %v4951_v26 = vld [vmem:[#allocation5 + $0xc28] ss:$16 sps:$4 sm:$0xff]  }
 0x1c9   :  { %2896 = vmatpush1.bf16.msra.mxu0 %v4856_v27  ;;  %3183 = vmatpush1.bf16.msra.mxu1 %v4859_v28  ;;  %v4956_v27 = vld [vmem:[#allocation5 + $0xc44] ss:$16 sps:$4 sm:$0xff]   ;;  %v4959_v28 = vld [vmem:[#allocation5 + $0xc4c] ss:$16 sps:$4 sm:$0xff]  }
 0x1ca   :  { %2897 = vmatprep.subr.bf16.mxu0 %v4864_v29  ;;  %3184 = vmatprep.subr.bf16.mxu1 %v4867_v30  ;;  %v5228_v29 = vmov 0   ;;  %v4957_v30 = vld [vmem:[#allocation5 + $0xc48] ss:$16 sps:$4 sm:$0xff]  }
 0x1cd   :  { %2898 = vmatpush1.bf16.msra.mxu0 %v4862_v31  ;;  %3185 = vmatpush1.bf16.msra.mxu1 %v4865_v32  ;;  %v4962_v31 = vld [vmem:[#allocation5 + $0xc64] ss:$16 sps:$4 sm:$0xff]   ;;  %v4965_v32 = vld [vmem:[#allocation5 + $0xc6c] ss:$16 sps:$4 sm:$0xff]  }
 0x1ce   :  { %2899 = vmatprep.subr.bf16.mxu0 %v4870_v33  ;;  %3186 = vmatprep.subr.bf16.mxu1 %v4873_v34  ;;  %v4960_v33 = vld [vmem:[#allocation5 + $0xc60] ss:$16 sps:$4 sm:$0xff]   ;;  %v4963_v34 = vld [vmem:[#allocation5 + $0xc68] ss:$16 sps:$4 sm:$0xff]  }
 0x1d1   :  { %2900 = vmatpush1.bf16.msra.mxu0 %v4868_v35  ;;  %3187 = vmatpush1.bf16.msra.mxu1 %v4871_v36  ;;  %v4968_v35 = vld [vmem:[#allocation5 + $0xc84] ss:$16 sps:$4 sm:$0xff]   ;;  %v4971_v36 = vld [vmem:[#allocation5 + $0xc8c] ss:$16 sps:$4 sm:$0xff]  }
 0x1d2   :  { %2901 = vmatprep.subr.bf16.mxu0 %v4876_v37  ;;  %3188 = vmatprep.subr.bf16.mxu1 %v4879_v38  ;;  %v4966_v37 = vld [vmem:[#allocation5 + $0xc80] ss:$16 sps:$4 sm:$0xff]   ;;  %v4969_v38 = vld [vmem:[#allocation5 + $0xc88] ss:$16 sps:$4 sm:$0xff]  }
 0x1d5   :  { %2902 = vmatpush1.bf16.msra.mxu0 %v4874_v39  ;;  %3189 = vmatpush1.bf16.msra.mxu1 %v4877_v40  ;;  %v4974_v39 = vld [vmem:[#allocation5 + $0xca4] ss:$16 sps:$4 sm:$0xff]   ;;  %v4977_v40 = vld [vmem:[#allocation5 + $0xcac] ss:$16 sps:$4 sm:$0xff]  }
 0x1d6   :  { %2903 = vmatprep.subr.bf16.mxu0 %v4882_v41  ;;  %3190 = vmatprep.subr.bf16.mxu1 %v4885_v42  ;;  %v4972_v41 = vld [vmem:[#allocation5 + $0xca0] ss:$16 sps:$4 sm:$0xff]   ;;  %v4975_v42 = vld [vmem:[#allocation5 + $0xca8] ss:$16 sps:$4 sm:$0xff]  }
 0x1d9   :  { %2904 = vmatpush1.bf16.msra.mxu0 %v4880_v43  ;;  %3191 = vmatpush1.bf16.msra.mxu1 %v4883_v44  ;;  %v4980_v43 = vld [vmem:[#allocation5 + $0xcc4] ss:$16 sps:$4 sm:$0xff]   ;;  %v4983_v44 = vld [vmem:[#allocation5 + $0xccc] ss:$16 sps:$4 sm:$0xff]  }
 0x1da   :  { %2905 = vmatprep.subr.bf16.mxu0 %v4888_v45  ;;  %3192 = vmatprep.subr.bf16.mxu1 %v4891_v46  ;;  %v4978_v45 = vld [vmem:[#allocation5 + $0xcc0] ss:$16 sps:$4 sm:$0xff]   ;;  %v4981_v46 = vld [vmem:[#allocation5 + $0xcc8] ss:$16 sps:$4 sm:$0xff]  }
 0x1dd   :  { %2906 = vmatpush1.bf16.msra.mxu0 %v4886_v47  ;;  %3193 = vmatpush1.bf16.msra.mxu1 %v4889_v48  ;;  %v4986_v47 = vld [vmem:[#allocation5 + $0xce4] ss:$16 sps:$4 sm:$0xff]   ;;  %v4989_v48 = vld [vmem:[#allocation5 + $0xcec] ss:$16 sps:$4 sm:$0xff]  }
 0x1de   :  { %2907 = vmatprep.subr.bf16.mxu0 %v4894_v49  ;;  %3194 = vmatprep.subr.bf16.mxu1 %v4897_v50  ;;  %v4984_v49 = vld [vmem:[#allocation5 + $0xce0] ss:$16 sps:$4 sm:$0xff]   ;;  %v4987_v50 = vld [vmem:[#allocation5 + $0xce8] ss:$16 sps:$4 sm:$0xff]  }
 0x1e1   :  { %2908 = vmatpush1.bf16.msra.mxu0 %v4892_v51  ;;  %3195 = vmatpush1.bf16.msra.mxu1 %v4895_v52  ;;  %v4991_v51 = vld [vmem:[#allocation8 + $0x40] sm:$0xff]  }
 0x1e2   :  { %2909 = vmatprep.subr.bf16.mxu0 %v4900_v53  ;;  %3196 = vmatprep.subr.bf16.mxu1 %v4903_v54  ;;  %v4992_v52 = vld [vmem:[#allocation8 + $0xc0] sm:$0xff]   ;;  %v4990_v53 = vld [vmem:[#allocation2 + $0x30] ss:$0 sps:$4 sm:$0xff]  }
 0x1e3   :  { %v4993_v54 = vld [vmem:[#allocation8] sm:$0xff]  }
 0x1e5   :  { %2910 = vmatpush1.bf16.msra.mxu0 %v4898_v55  ;;  %3197 = vmatpush1.bf16.msra.mxu1 %v4901_v56  ;;  %v4994_v55 = vld [vmem:[#allocation8 + $0x80] sm:$0xff]   ;;  %v4995_v56 = vld [vmem:[#allocation8 + $0x48] sm:$0xff]  }
 0x1e6   :  { %2911 = vmatprep.subr.bf16.mxu0 %v4906_v57  ;;  %3198 = vmatprep.subr.bf16.mxu1 %v4909_v58  ;;  %v4996_v57 = vld [vmem:[#allocation8 + $0xc8] sm:$0xff]  }
 0x1e7   :  { %v4997_v58 = vld [vmem:[#allocation8 + $0x8] sm:$0xff]  }
 0x1e9   :  { %2912 = vmatpush1.bf16.msra.mxu0 %v4904_v59  ;;  %3199 = vmatpush1.bf16.msra.mxu1 %v4907_v60  ;;  %v4998_v59 = vld [vmem:[#allocation8 + $0x88] sm:$0xff]   ;;  %v4999_v60 = vld [vmem:[#allocation8 + $0x50] sm:$0xff]  }
 0x1ea   :  { %2913 = vmatprep.subr.bf16.mxu0 %v4912_v61  ;;  %3200 = vmatprep.subr.bf16.mxu1 %v4915_v62  ;;  %v5000_v61 = vld [vmem:[#allocation8 + $0xd0] sm:$0xff]  }
 0x1eb   :  { %v5001_v62 = vld [vmem:[#allocation8 + $0x10] sm:$0xff]  }
 0x1ed   :  { %2914 = vmatpush1.bf16.msra.mxu0 %v4910_v63  ;;  %3201 = vmatpush1.bf16.msra.mxu1 %v4913_v0  ;;  %v5002_v63 = vld [vmem:[#allocation8 + $0x90] sm:$0xff]   ;;  %v5003_v0 = vld [vmem:[#allocation8 + $0x58] sm:$0xff]  }
 0x1ee   :  { %2915 = vmatprep.subr.bf16.mxu0 %v4918_v1  ;;  %3202 = vmatprep.subr.bf16.mxu1 %v4921_v2  ;;  %v5004_v1 = vld [vmem:[#allocation8 + $0xd8] sm:$0xff]  }
 0x1ef   :  { %v5005_v2 = vld [vmem:[#allocation8 + $0x18] sm:$0xff]  }
 0x1f1   :  { %2916 = vmatpush1.bf16.msra.mxu0 %v4916_v3  ;;  %3203 = vmatpush1.bf16.msra.mxu1 %v4919_v4  ;;  %v5006_v3 = vld [vmem:[#allocation8 + $0x98] sm:$0xff]   ;;  %v5007_v4 = vld [vmem:[#allocation8 + $0x60] sm:$0xff]  }
 0x1f2   :  { %2917 = vmatprep.subr.bf16.mxu0 %v4924_v5  ;;  %3204 = vmatprep.subr.bf16.mxu1 %v4927_v6  ;;  %v5008_v5 = vld [vmem:[#allocation8 + $0xe0] sm:$0xff]  }
 0x1f3   :  { %v5009_v6 = vld [vmem:[#allocation8 + $0x20] sm:$0xff]  }
 0x1f5   :  { %2918 = vmatpush1.bf16.msra.mxu0 %v4922_v7  ;;  %3205 = vmatpush1.bf16.msra.mxu1 %v4925_v8  ;;  %v5010_v7 = vld [vmem:[#allocation8 + $0xa0] sm:$0xff]   ;;  %v5011_v8 = vld [vmem:[#allocation8 + $0x68] sm:$0xff]  }
 0x1f6   :  { %2919 = vmatprep.subr.bf16.mxu0 %v4930_v9  ;;  %3206 = vmatprep.subr.bf16.mxu1 %v4933_v10  ;;  %v5012_v9 = vld [vmem:[#allocation8 + $0xe8] sm:$0xff]  }
 0x1f7   :  { %v5013_v10 = vld [vmem:[#allocation8 + $0x28] sm:$0xff]  }
 0x1f9   :  { %2920 = vmatpush1.bf16.msra.mxu0 %v4928_v12  ;;  %3207 = vmatpush1.bf16.msra.mxu1 %v4931_v13  ;;  %v5014_v12 = vld [vmem:[#allocation8 + $0xa8] sm:$0xff]   ;;  %v5015_v13 = vld [vmem:[#allocation8 + $0x70] sm:$0xff]  }
 0x1fa   :  { %2921 = vmatprep.subr.bf16.mxu0 %v4936_v15  ;;  %3208 = vmatprep.subr.bf16.mxu1 %v4939_v16  ;;  %v5016_v15 = vld [vmem:[#allocation8 + $0xf0] sm:$0xff]  }
 0x1fb   :  { %v5017_v16 = vld [vmem:[#allocation8 + $0x30] sm:$0xff]  }
 0x1fd   :  { %2922 = vmatpush1.bf16.msra.mxu0 %v4934_v18  ;;  %3209 = vmatpush1.bf16.msra.mxu1 %v4937_v19  ;;  %v5018_v18 = vld [vmem:[#allocation8 + $0xb0] sm:$0xff]   ;;  %v5019_v19 = vld [vmem:[#allocation8 + $0x78] sm:$0xff]  }
 0x1fe   :  { %2932 = vmatprep.subr.bf16.mxu0 %v4944_v11  ;;  %3219 = vmatprep.subr.bf16.mxu1 %v4947_v21  ;;  %v5020_v11 = vld [vmem:[#allocation8 + $0xf8] sm:$0xff]  }
 0x1ff   :  { %v5021_v21 = vld [vmem:[#allocation8 + $0x38] sm:$0xff]  }
 0x200   :  { %2924 = vmatmul.mubr.bf16.vlgmr.msra.gmra.mrb[0].mxu0 %v3753_v22  ;;  %3211 = vmatmul.mubr.bf16.vlgmr.msra.gmra.mrb[0].mxu1 %v3753_v22  ;;  %v5022_v22 = vld [vmem:[#allocation8 + $0xb8] sm:$0xff]  }
 0x201   :  { %2933 = vmatpush1.bf16.msra.mxu0 %v4942_v14  ;;  %3220 = vmatpush1.bf16.msra.mxu1 %v4945_v23  ;;  %v5229_v14 = vmov 0.0   ;;  %v540_v23 = vlaneseq }
 0x202   :  { %2934 = vmatprep.subr.bf16.mxu0 %v4950_v24  ;;  %3221 = vmatprep.subr.bf16.mxu1 %v4953_v25 }
 0x203   :  { %2964 = vmatprep.mubr.bf16.mxu0 %v5228_v29  ;;  %3251 = vmatprep.mubr.bf16.mxu1 %v5228_v29  ;;  %v541_v24 = vshrl.u32 %v540_v23, 7 }
 0x205   :  { %2935 = vmatpush1.bf16.msra.mxu0 %v4948_v17  ;;  %3222 = vmatpush1.bf16.msra.mxu1 %v4951_v26  ;;  %v542_v25 = vsub.s32 0, %v541_v24  ;;  %v550_v17 = vsub.s32 2, %v541_v24  ;;  %v538_v26 = vld [vmem:[#allocation7] sm:$0xf] }
 0x206   :  { %2936 = vmatprep.subr.bf16.mxu0 %v4956_v27  ;;  %3223 = vmatprep.subr.bf16.mxu1 %v4959_v28  ;;  %v546_v27 = vsub.s32 1, %v541_v24  ;;  %v554_v28 = vsub.s32 3, %v541_v24 }
 0x207   :  { %v543_v29 = vrot.slane %v538_v26, %v542_v25 }
 0x209   :  { %2937 = vmatpush1.bf16.msra.mxu0 %v4954_v20  ;;  %3224 = vmatpush1.bf16.msra.mxu1 %v4957_v30  ;;  %v551_v20 = vrot.slane %v538_v26, %v550_v17  ;;  %v547_v30 = vrot.slane %v538_v26, %v546_v27 }
 0x20a   :  { %2938 = vmatprep.subr.bf16.mxu0 %v4962_v31  ;;  %3225 = vmatprep.subr.bf16.mxu1 %v4965_v32  ;;  %v555_v31 = vrot.slane %v538_v26, %v554_v28 }
 0x20d   :  { %2939 = vmatpush1.bf16.msra.mxu0 %v4960_v33  ;;  %3226 = vmatpush1.bf16.msra.mxu1 %v4963_v34 }
 0x20e   :  { %2940 = vmatprep.subr.bf16.mxu0 %v4968_v35  ;;  %3227 = vmatprep.subr.bf16.mxu1 %v4971_v36 }
 0x211   :  { %2941 = vmatpush1.bf16.msra.mxu0 %v4966_v37  ;;  %3228 = vmatpush1.bf16.msra.mxu1 %v4969_v38 }
 0x212   :  { %2942 = vmatprep.subr.bf16.mxu0 %v4974_v39  ;;  %3229 = vmatprep.subr.bf16.mxu1 %v4977_v40 }
 0x215   :  { %2943 = vmatpush1.bf16.msra.mxu0 %v4972_v41  ;;  %3230 = vmatpush1.bf16.msra.mxu1 %v4975_v42 }
 0x216   :  { %2944 = vmatprep.subr.bf16.mxu0 %v4980_v43  ;;  %3231 = vmatprep.subr.bf16.mxu1 %v4983_v44 }
 0x219   :  { %2945 = vmatpush1.bf16.msra.mxu0 %v4978_v45  ;;  %3232 = vmatpush1.bf16.msra.mxu1 %v4981_v46 }
 0x21a   :  { %2946 = vmatprep.subr.bf16.mxu0 %v4986_v47  ;;  %3233 = vmatprep.subr.bf16.mxu1 %v4989_v48 }
 0x21d   :  { %2947 = vmatpush1.bf16.msra.mxu0 %v4984_v49  ;;  %3234 = vmatpush1.bf16.msra.mxu1 %v4987_v50  ;;  %v5023_v50 = vld [vmem:[#allocation11] sm:$0xff]  }
 0x21e   :  { %4214 = vmatprep.subr.bf16.mxu0 %v4991_v51  ;;  %4236 = vmatprep.subr.bf16.mxu1 %v4992_v52 }
 0x220   :  { %2965 = vmatmul.mubr.bf16.vlgmr.msra.gmra.mrb[0].mxu0 %v4990_v53  ;;  %3252 = vmatmul.mubr.bf16.vlgmr.msra.gmra.mrb[0].mxu1 %v4990_v53  ;;  %v5024_v53 = vld [vmem:[#allocation11 + $0x8] sm:$0xff]  }
 0x221   :  { %4215 = vmatpush3.bf16.msra.mxu0 %v4993_v54  ;;  %4237 = vmatpush3.bf16.msra.mxu1 %v4994_v55  ;;  %v5025_v54 = vld [vmem:[#allocation11 + $0x10] sm:$0xff]   ;;  %v5026_v55 = vld [vmem:[#allocation11 + $0x18] sm:$0xff]  }
 0x222   :  { %4216 = vmatprep.subr.bf16.mxu0 %v4995_v56  ;;  %4238 = vmatprep.subr.bf16.mxu1 %v4996_v57  ;;  %v5027_v56 = vld [vmem:[#allocation11 + $0x20] sm:$0xff]   ;;  %v5028_v57 = vld [vmem:[#allocation11 + $0x28] sm:$0xff]  }
 0x225   :  { %4217 = vmatpush3.bf16.msra.mxu0 %v4997_v58  ;;  %4239 = vmatpush3.bf16.msra.mxu1 %v4998_v59  ;;  %v5029_v58 = vld [vmem:[#allocation11 + $0x30] sm:$0xff]   ;;  %v5030_v59 = vld [vmem:[#allocation11 + $0x38] sm:$0xff]  }
 0x226   :  { %4218 = vmatprep.subr.bf16.mxu0 %v4999_v60  ;;  %4240 = vmatprep.subr.bf16.mxu1 %v5000_v61 }
 0x229   :  { %4219 = vmatpush3.bf16.msra.mxu0 %v5001_v62  ;;  %4241 = vmatpush3.bf16.msra.mxu1 %v5002_v63  ;;  %v4172_v62 = vld [vmem:[#allocation10] ss:$0 sm:$0xff] }
 0x22a   :  { %4220 = vmatprep.subr.bf16.mxu0 %v5003_v0  ;;  %4242 = vmatprep.subr.bf16.mxu1 %v5004_v1 }
 0x22d   :  { %4221 = vmatpush3.bf16.msra.mxu0 %v5005_v2  ;;  %4243 = vmatpush3.bf16.msra.mxu1 %v5006_v3 }
 0x22e   :  { %4222 = vmatprep.subr.bf16.mxu0 %v5007_v4  ;;  %4244 = vmatprep.subr.bf16.mxu1 %v5008_v5 }
 0x231   :  { %4223 = vmatpush3.bf16.msra.mxu0 %v5009_v6  ;;  %4245 = vmatpush3.bf16.msra.mxu1 %v5010_v7 }
 0x232   :  { %4224 = vmatprep.subr.bf16.mxu0 %v5011_v8  ;;  %4246 = vmatprep.subr.bf16.mxu1 %v5012_v9 }
 0x235   :  { %4225 = vmatpush3.bf16.msra.mxu0 %v5013_v10  ;;  %4247 = vmatpush3.bf16.msra.mxu1 %v5014_v12  ;;  %v4205_v12 = vld [vmem:[#allocation13] ss:$0 sm:$0xff] }
 0x236   :  { %4226 = vmatprep.subr.bf16.mxu0 %v5015_v13  ;;  %4248 = vmatprep.subr.bf16.mxu1 %v5016_v15 }
 0x239   :  { %4227 = vmatpush3.bf16.msra.mxu0 %v5017_v16  ;;  %4249 = vmatpush3.bf16.msra.mxu1 %v5018_v18 }
 0x23a   :  { %4228 = vmatprep.subr.bf16.mxu0 %v5019_v19  ;;  %4250 = vmatprep.subr.bf16.mxu1 %v5020_v11 }
 0x23d   :  { %4229 = vmatpush3.bf16.msra.mxu0 %v5021_v21  ;;  %4251 = vmatpush3.bf16.msra.mxu1 %v5022_v22 }
 0x23e   :  { %4267 = vmatprep.subr.bf16.mxu0 %v5229_v14 }
 0x2f3   :  { %v2966_v32 = vpop.f32.mrb[0].mxu0  ;;  %v3253_v33 = vpop.f32.mrb[0].mxu1 }
 0x2f4   :  { %v4287_v34 = vadd.f32 %v2966_v32, %v543_v29  ;;  %v4289_v35 = vadd.f32 %v3253_v33, %v551_v20  ;;  %v2968_v36 = vpop.f32.mrb[1].mxu0  ;;  %v3255_v37 = vpop.f32.mrb[1].mxu1 }
 0x2f5   :  { %v4288_v38 = vadd.f32 %v2968_v36, %v547_v30  ;;  %v4290_v39 = vadd.f32 %v3255_v37, %v555_v31  ;;  %v2970_v40 = vpop.f32.mrb[2].mxu0  ;;  %v3257_v41 = vpop.f32.mrb[2].mxu1 }
 0x2f6   :  { %v3260_v42 = vmax.f32 %v4287_v34, 0.0  ;;  %v3262_v43 = vmax.f32 %v4289_v35, 0.0  ;;  %v2971_v44 = vpop.f32.mrb[3].mxu0  ;;  %v3258_v45 = vpop.f32.mrb[3].mxu1 }
 0x2f7   :  { %v3261_v46 = vmax.f32 %v4288_v38, 0.0  ;;  %v3263_v47 = vmax.f32 %v4290_v39, 0.0 }
 0x2f8   :  { %v3264_v51 = vpack.c.bf16 %v3260_v42, %v3260_v42  ;;  %v3266_v52 = vpack.c.bf16 %v3262_v43, %v3262_v43 }
 0x2f9   :  { %v3265_v48 = vpack.c.bf16 %v3261_v46, %v3261_v46  ;;  %v3267_v49 = vpack.c.bf16 %v3263_v47, %v3263_v47 }
 0x2fb   :  { %3563 = vmatprep.mubr.bf16.mxu0 %v3265_v48  ;;  %3603 = vmatprep.mubr.bf16.mxu1 %v3267_v49 }
 0x2fc   :  { %3564 = vmatmul.mubr.bf16.vlgmr.msra.gmra.mrb[4].mxu0 %v3264_v51  ;;  %3604 = vmatmul.mubr.bf16.vlgmr.msra.gmra.mrb[4].mxu1 %v3266_v52 }
 0x2fd   :  { %4268 = vmatpush3.bf16.msra.mxu0 %v5023_v50  ;;  %4283 = vmatprep.mubr.msk.bf16.mxu0 %vm5230_vm0, %v5229_v14 }
 0x2fe   :  { %4269 = vmatprep.subr.bf16.mxu0 %v5229_v14 }
 0x301   :  { %4270 = vmatpush3.bf16.msra.mxu0 %v5024_v53 }
 0x302   :  { %4271 = vmatprep.subr.bf16.mxu0 %v5229_v14 }
 0x305   :  { %4272 = vmatpush3.bf16.msra.mxu0 %v5025_v54 }
 0x306   :  { %4273 = vmatprep.subr.bf16.mxu0 %v5229_v14 }
 0x309   :  { %4274 = vmatpush3.bf16.msra.mxu0 %v5026_v55 }
 0x30a   :  { %4275 = vmatprep.subr.bf16.mxu0 %v5229_v14 }
 0x30d   :  { %4276 = vmatpush3.bf16.msra.mxu0 %v5027_v56 }
 0x30e   :  { %4277 = vmatprep.subr.bf16.mxu0 %v5229_v14 }
 0x311   :  { %4278 = vmatpush3.bf16.msra.mxu0 %v5028_v57 }
 0x312   :  { %4279 = vmatprep.subr.bf16.mxu0 %v5229_v14 }
 0x315   :  { %4280 = vmatpush3.bf16.msra.mxu0 %v5029_v58 }
 0x316   :  { %4281 = vmatprep.subr.bf16.mxu0 %v5229_v14 }
 0x319   :  { %4282 = vmatpush3.bf16.msra.mxu0 %v5030_v59 }
 0x3cf   :  { %v4230_v60 = vpop.f32.mrb[4].mxu0  ;;  %v4252_v61 = vpop.f32.mrb[4].mxu1 }
 0x3d0   :  { %v4231_v63 = vpop.f32.mrb[5].mxu0  ;;  %v4253_v0 = vpop.f32.mrb[5].mxu1 }
 0x3d1   :  { %v4232_v1 = vadd.f32 %v4231_v63, %v4230_v60  ;;  %v4254_v2 = vadd.f32 %v4253_v0, %v4252_v61  ;;  %v4233_v3 = vpop.f32.mrb[6].mxu0  ;;  %v4255_v4 = vpop.f32.mrb[6].mxu1 }
 0x3d2   :  { %v4234_v5 = vpop.f32.mrb[7].mxu0  ;;  %v4256_v6 = vpop.f32.mrb[7].mxu1 }
 0x3d3   :  { %v3566_v7 = vadd.f32 %v4232_v1, %v4172_v62 }
 0x3d5   :  { %v3606_v8 = vadd.f32 %v4254_v2, %v3566_v7 }
 0x3d7   :  { %v3611_v9 = vmax.f32 %v3606_v8, 0.0 }
 0x3d9   :  { %v3612_v10 = vpack.c.bf16 %v3611_v9, %v3611_v9 }
 0x3db   :  { %4284 = vmatmul.mubr.bf16.vlgmr.msra.gmra.mrb[8].mxu0 %v3612_v10 }
 0x4ae   :  { %v3718_v13 = vpop.f32.mrb[8].mxu0 }
 0x4af   :  { %v3719_v15 = vadd.f32 %v4205_v12, %v3718_v13  ;;  %v4285_v16 = vpop.f32.mrb[9].mxu0 }
 0x4b0   :  { %v3721_v18 = vpop.f32.mrb[10].mxu0 }
 0x4b1   :  { %3724 = vst [vmem:[#allocation14] sm:$0xff] %v3719_v15  ;;  %v4286_v19 = vpop.f32.mrb[11].mxu0 }
 0x4b2   :  { %5196 = shalt.err (!%p5193_p4)
}
 0x4b3   :  { %s5197_s15 = scalar_lea.hbm %s5405_s7, 128 }
 0x4b4   :  { %p5198_p5 = scmp.ne.s32.totalorder %s5405_s7, %s5197_s15  ;;  %p5201_p6 = scmp.lt.u32.totalorder %s5197_s15, %s5405_s7 }
 0x4b6   :  { %p5203_p7 = pnand %p5201_p6, %p5198_p5 }
 0x4b8   :  { %5206 = shalt.err (!%p5203_p7)
}
 0x4b9   :  { %3734 = dma.vmem_to_hbm [thread:$0]  %s3732_s13, 128, %s5405_s7, [#allocation4]  }
 0x4ba   :  { %5215 = dma.done.wait [#allocation4], 128  }
 0x4bb   :  { %5216 = vsyncadd [#allocation4], 4294967168 }
 0x4bc   :  { %3738 = vsyncpa [#allocation3], 1 }
 0x4bd   :  { %3739 = vsyncpa [#allocation6], 1 }
 0x4be   :  { %3740 = vsyncpa [#allocation9], 1 }
 0x4bf   :  { %3741 = vsyncpa [#allocation12], 1 }
 0x4c0   :  { %3742 = vsyncpa [#allocation4], 1 }

</bundles_post_ra>
